<compile_context>
chip_gen: v7x
topology: tpu7x:2x2x1
jax: 0.10.0
libtpu: 0.0.40
codegen_flags: <defaults>
</compile_context>

<pallas_src>
import math
import functools

import numpy as np
import jax
import jax.numpy as jnp
from jax import lax
from jax.experimental import pallas as pl
from jax.experimental.pallas import tpu as pltpu

EPS = 1e-5
_VMEM_LIMIT = 64 * 1024 * 1024

_PARAMS = pltpu.CompilerParams(
    dimension_semantics=("parallel",),
    vmem_limit_bytes=_VMEM_LIMIT,
)


# --------------------------- in-kernel helpers -------------------------------

def _ln(x, g, b):
    """LayerNorm over the last dim. x: (N, D) f32, g/b: (1, D) f32."""
    mean = jnp.mean(x, axis=-1, keepdims=True)
    var = jnp.mean(jnp.square(x - mean), axis=-1, keepdims=True)
    return (x - mean) * lax.rsqrt(var + EPS) * g + b


def _mha(q, k, v, wo, bo, nhead, mask=None):
    """Multi-head attention core on f32 activations.

    q: (Sq, C), k/v: (Sk, C) f32 (already projected).  wo: (C, C) bf16,
    bo: (1, C) f32.  mask: optional additive (1, Sk) f32.  Returns (Sq, C) f32.
    Heads are unrolled with static lane slices so all ops stay 2-D (no in-kernel
    3-D reshapes/transposes); the per-head out-projection is accumulated, which
    also removes the head-concat.
    """
    _, C = q.shape
    dh = C // nhead
    scale = 1.0 / math.sqrt(dh)
    acc = None
    for h in range(nhead):
        sl = slice(h * dh, (h + 1) * dh)
        qh = q[:, sl].astype(jnp.bfloat16)
        kh = k[:, sl].astype(jnp.bfloat16)
        vh = v[:, sl].astype(jnp.bfloat16)
        # scores: contract the last dims directly (no explicit transpose).
        s = lax.dot_general(qh, kh, (((1,), (1,)), ((), ())),
                            preferred_element_type=jnp.float32) * scale
        if mask is not None:
            s = s + mask
        m = jnp.max(s, axis=-1, keepdims=True)
        p = jnp.exp(s - m)
        p = p * pl.reciprocal(jnp.sum(p, axis=-1, keepdims=True), approx=True)
        oh = jnp.dot(p.astype(jnp.bfloat16), vh,
                     preferred_element_type=jnp.float32)            # (Sq, dh)
        ch = jnp.dot(oh.astype(jnp.bfloat16), wo[sl, :],
                     preferred_element_type=jnp.float32)            # (Sq, C)
        acc = ch if acc is None else acc + ch
    return acc + bo


# ------------------------------ fused kernels --------------------------------

def _self_block_kernel(vis_ref, pos_ref, n1g_ref, n1b_ref,
                       wqk_ref, bqk_ref, wv_ref, bv_ref, wo_ref, bo_ref,
                       sag_ref, sab_ref, o_ref, *, nhead):
    C = vis_ref.shape[2]
    x = vis_ref[0].astype(jnp.float32)                               # (S, C)
    x2 = _ln(x, n1g_ref[...], n1b_ref[...])                          # norm1
    qk_in = (x2 + pos_ref[...]).astype(jnp.bfloat16)                 # + vis_pos (folded)

    # fused Q|K projection (lane-dense 2C output), separate V projection on x2.
    qk = jnp.dot(qk_in, wqk_ref[...],
                 preferred_element_type=jnp.float32) + bqk_ref[...]  # (S, 2C)
    v = jnp.dot(x2.astype(jnp.bfloat16), wv_ref[...],
                preferred_element_type=jnp.float32) + bv_ref[...]    # (S, C)

    attn = _mha(qk[:, :C], qk[:, C:], v, wo_ref[...], bo_ref[...], nhead)
    out = _ln(attn, sag_ref[...], sab_ref[...])                      # self_attn_norm
    o_ref[0] = (x + out).astype(o_ref.dtype)                         # residual (dropout=id)


def _cross_block_kernel(vis_ref, txt_ref, vpos_ref, tpos_ref, mask_ref,
                        n2g_ref, n2b_ref,
                        wq_ref, bq_ref, wk_ref, bk_ref, wv_ref, bv_ref,
                        wo_ref, bo_ref, cag_ref, cab_ref, o_ref, *, nhead):
    x = vis_ref[0].astype(jnp.float32)                               # (S, C)
    t = txt_ref[0].astype(jnp.float32)                               # (L, C)
    x2 = _ln(x, n2g_ref[...], n2b_ref[...])                          # norm2
    q_in = (x2 + vpos_ref[...]).astype(jnp.bfloat16)                 # + vis_pos
    k_in = (t + tpos_ref[...]).astype(jnp.bfloat16)                  # + txt_pos

    q = jnp.dot(q_in, wq_ref[...], preferred_element_type=jnp.float32) + bq_ref[...]
    k = jnp.dot(k_in, wk_ref[...], preferred_element_type=jnp.float32) + bk_ref[...]
    v = jnp.dot(t.astype(jnp.bfloat16), wv_ref[...],
                preferred_element_type=jnp.float32) + bv_ref[...]

    attn = _mha(q, k, v, wo_ref[...], bo_ref[...], nhead, mask=mask_ref[0])
    out = _ln(attn, cag_ref[...], cab_ref[...])                      # cross_attn_norm
    o_ref[0] = (x + out).astype(o_ref.dtype)                         # residual


def _ffn_block_kernel(vis_ref, n3g_ref, n3b_ref,
                      w1_ref, b1_ref, lng_ref, lnb_ref, w2_ref, b2_ref, o_ref):
    x = vis_ref[0].astype(jnp.float32)                               # (S, C)
    x2 = _ln(x, n3g_ref[...], n3b_ref[...])                          # norm3
    h = jnp.dot(x2.astype(jnp.bfloat16), w1_ref[...],
                preferred_element_type=jnp.float32) + b1_ref[...]    # (S, FF)
    h = jnp.maximum(h, 0.0)                                          # ReLU
    h = _ln(h, lng_ref[...], lnb_ref[...])                           # LayerNorm(ff)
    out = jnp.dot(h.astype(jnp.bfloat16), w2_ref[...],
                  preferred_element_type=jnp.float32) + b2_ref[...]  # (S, C)
    o_ref[0] = (x + out).astype(o_ref.dtype)                         # residual


def _final_norm_kernel(x_ref, g_ref, b_ref, o_ref):
    x = x_ref[0].astype(jnp.float32)
    o_ref[0] = _ln(x, g_ref[...], b_ref[...]).astype(o_ref.dtype)


# ------------------------------ kernel wrappers ------------------------------

def _batch3d(shape):
    return pl.BlockSpec(shape, lambda b: (b, 0, 0))


def _const2d(shape):
    return pl.BlockSpec(shape, lambda b: (0, 0))


def self_attn_block(vis, vis_pos, lp, nhead):
    B, S, C = vis.shape
    p = lp["self_attn"]
    return pl.pallas_call(
        functools.partial(_self_block_kernel, nhead=nhead),
        out_shape=jax.ShapeDtypeStruct((B, S, C), vis.dtype),
        grid=(B,),
        in_specs=[
            _batch3d((1, S, C)),                          # vis
            _const2d((S, C)),                             # vis_pos
            _const2d((1, C)), _const2d((1, C)),           # norm1 g/b
            _const2d((C, 2 * C)), _const2d((1, 2 * C)),   # wqk / bqk
            _const2d((C, C)), _const2d((1, C)),           # wv / bv
            _const2d((C, C)), _const2d((1, C)),           # wo / bo
            _const2d((1, C)), _const2d((1, C)),           # self_attn_norm g/b
        ],
        out_specs=_batch3d((1, S, C)),
        compiler_params=_PARAMS,
    )(vis, vis_pos, lp["norm1_g"], lp["norm1_b"],
      p["wqk"], p["bqk"], p["wv"], p["bv"], p["wo"], p["bo"],
      lp["sa_norm_g"], lp["sa_norm_b"])


def cross_attn_block(vis, txt, vis_pos, txt_pos, addmask, lp, nhead):
    B, S, C = vis.shape
    L = txt.shape[1]
    p = lp["cross_attn"]
    return pl.pallas_call(
        functools.partial(_cross_block_kernel, nhead=nhead),
        out_shape=jax.ShapeDtypeStruct((B, S, C), vis.dtype),
        grid=(B,),
        in_specs=[
            _batch3d((1, S, C)),                          # vis
            _batch3d((1, L, C)),                          # txt
            _const2d((S, C)),                             # vis_pos
            _const2d((L, C)),                             # txt_pos
            _batch3d((1, 1, L)),                          # additive key-padding mask
            _const2d((1, C)), _const2d((1, C)),           # norm2 g/b
            _const2d((C, C)), _const2d((1, C)),           # wq / bq
            _const2d((C, C)), _const2d((1, C)),           # wk / bk
            _const2d((C, C)), _const2d((1, C)),           # wv / bv
            _const2d((C, C)), _const2d((1, C)),           # wo / bo
            _const2d((1, C)), _const2d((1, C)),           # cross_attn_norm g/b
        ],
        out_specs=_batch3d((1, S, C)),
        compiler_params=_PARAMS,
    )(vis, txt, vis_pos, txt_pos, addmask,
      lp["norm2_g"], lp["norm2_b"],
      p["wq"], p["bq"], p["wk"], p["bk"], p["wv"], p["bv"], p["wo"], p["bo"],
      lp["ca_norm_g"], lp["ca_norm_b"])


def ffn_block(vis, lp):
    B, S, C = vis.shape
    p = lp["ffn"]
    FF = p["w1"].shape[1]
    return pl.pallas_call(
        _ffn_block_kernel,
        out_shape=jax.ShapeDtypeStruct((B, S, C), vis.dtype),
        grid=(B,),
        in_specs=[
            _batch3d((1, S, C)),                          # vis
            _const2d((1, C)), _const2d((1, C)),           # norm3 g/b
            _const2d((C, FF)), _const2d((1, FF)),         # w1 / b1
            _const2d((1, FF)), _const2d((1, FF)),         # ffn-LayerNorm g/b
            _const2d((FF, C)), _const2d((1, C)),          # w2 / b2
        ],
        out_specs=_batch3d((1, S, C)),
        compiler_params=_PARAMS,
    )(vis, lp["norm3_g"], lp["norm3_b"],
      p["w1"], p["b1"], p["ln_g"], p["ln_b"], p["w2"], p["b2"])


def final_layer_norm(x, g, b):
    B, S, C = x.shape
    return pl.pallas_call(
        _final_norm_kernel,
        out_shape=jax.ShapeDtypeStruct((B, S, C), x.dtype),
        grid=(B,),
        in_specs=[_batch3d((1, S, C)), _const2d((1, C)), _const2d((1, C))],
        out_specs=_batch3d((1, S, C)),
        compiler_params=_PARAMS,
    )(x, g, b)


# ----------------------- positional encodings (host constants) ---------------

@functools.lru_cache(maxsize=None)
def pos1d(d_model, length):
    pe = np.zeros((length, d_model), np.float32)
    position = np.arange(length, dtype=np.float32)[:, None]
    div = np.exp(np.arange(0, d_model, 2, dtype=np.float32)
                 * -(math.log(10000.0) / d_model))
    pe[:, 0::2] = np.sin(position * div)
    pe[:, 1::2] = np.cos(position * div)
    return jnp.asarray(pe)                                           # (L, D)


@functools.lru_cache(maxsize=None)
def pos2d(d_model, height, width):
    pe = np.zeros((d_model, height, width), np.float32)
    half = d_model // 2
    div = np.exp(np.arange(0.0, half, 2, dtype=np.float32)
                 * -(math.log(10000.0) / half))
    pos_w = np.arange(0.0, width, dtype=np.float32)[:, None]
    pos_h = np.arange(0.0, height, dtype=np.float32)[:, None]
    pe[0:half:2, :, :] = np.sin(pos_w * div).T[:, None, :].repeat(height, axis=1)
    pe[1:half:2, :, :] = np.cos(pos_w * div).T[:, None, :].repeat(height, axis=1)
    pe[half::2, :, :] = np.sin(pos_h * div).T[:, :, None].repeat(width, axis=2)
    pe[half + 1::2, :, :] = np.cos(pos_h * div).T[:, :, None].repeat(width, axis=2)
    # matches torch: reshape(-1, 1, H*W).permute(2, 1, 0) -> (HW, d_model)
    return jnp.asarray(pe.reshape(d_model, height * width).T)        # (HW, C)


# --------------------------------- forward -----------------------------------

def decoder_forward(vis, txt, pad_mask, params, nhead):
    """vis: (B, C, H, W), txt: (B, L, C), pad_mask: (B, L) bool -> (B, C, H*W)."""
    B, C, H, W = vis.shape
    _, L, D = txt.shape
    assert D == C and C % nhead == 0

    vis_pos = pos2d(C, H, W)                                         # (HW, C) constant
    txt_pos = pos1d(D, L)                                            # (L, C) constant

    x = jnp.transpose(vis.reshape(B, C, H * W), (0, 2, 1))           # (B, HW, C)
    # True marks padded (ignored) keys. -1e30 (not -inf) keeps fully-padded rows finite.
    addmask = jnp.where(pad_mask, -1e30, 0.0).astype(jnp.float32).reshape(B, 1, L)

    for lp in params["layers"]:
        x = self_attn_block(x, vis_pos, lp, nhead)
        x = cross_attn_block(x, txt, vis_pos, txt_pos, addmask, lp, nhead)
        x = ffn_block(x, lp)

    x = final_layer_norm(x, params["norm_g"], params["norm_b"])      # (B, HW, C)
    return jnp.transpose(x, (0, 2, 1))                               # (B, C, HW)


# -------------------------------- param init ---------------------------------

def init_params(key, num_layers, d_model, dim_ffn):
    def ones(c):
        return jnp.ones((1, c), jnp.float32)

    def zeros(c):
        return jnp.zeros((1, c), jnp.float32)

    def w(k, shape, s=0.05):
        # matmul weights stored in bf16 (MXU operands); biases/LN params stay f32.
        return (jax.random.normal(k, shape, jnp.float32) * s).astype(jnp.bfloat16)

    layers = []
    for _ in range(num_layers):
        key, kqk, kv, ko, kcq, kck, kcv, kco, k1, k2 = jax.random.split(key, 10)
        lp = {
            "norm1_g": ones(d_model), "norm1_b": zeros(d_model),
            "norm2_g": ones(d_model), "norm2_b": zeros(d_model),
            "norm3_g": ones(d_model), "norm3_b": zeros(d_model),
            "sa_norm_g": ones(d_model), "sa_norm_b": zeros(d_model),
            "ca_norm_g": ones(d_model), "ca_norm_b": zeros(d_model),
            "self_attn": {
                "wqk": w(kqk, (d_model, 2 * d_model)), "bqk": zeros(2 * d_model),
                "wv": w(kv, (d_model, d_model)), "bv": zeros(d_model),
                "wo": w(ko, (d_model, d_model)), "bo": zeros(d_model),
            },
            "cross_attn": {
                "wq": w(kcq, (d_model, d_model)), "bq": zeros(d_model),
                "wk": w(kck, (d_model, d_model)), "bk": zeros(d_model),
                "wv": w(kcv, (d_model, d_model)), "bv": zeros(d_model),
                "wo": w(kco, (d_model, d_model)), "bo": zeros(d_model),
            },
            "ffn": {
                "w1": w(k1, (d_model, dim_ffn)), "b1": zeros(dim_ffn),
                "ln_g": ones(dim_ffn), "ln_b": zeros(dim_ffn),
                "w2": w(k2, (dim_ffn, d_model)), "b2": zeros(d_model),
            },
        }
        layers.append(lp)
    return {"layers": layers, "norm_g": ones(d_model), "norm_b": zeros(d_model)}


# ----------------------------------- main -------------------------------------

if __name__ == "__main__":
    # Small shapes consistent with the module's forward.
    B, d_model, H, W = 2, 64, 4, 4
    L = 8
    nhead = 4
    dim_ffn = 128
    num_layers = 2

    key = jax.random.PRNGKey(0)
    k_vis, k_txt, k_params = jax.random.split(key, 3)

    vis = jax.random.normal(k_vis, (B, d_model, H, W), jnp.float32)
    txt = jax.random.normal(k_txt, (B, L, d_model), jnp.float32)
    # valid lengths 6 and 5 -> True marks padded (ignored) keys
    pad_mask = jnp.arange(L)[None, :] >= jnp.array([6, 5])[:, None]

    params = init_params(k_params, num_layers, d_model, dim_ffn)

    fwd = jax.jit(functools.partial(decoder_forward, nhead=nhead))
    out = jax.block_until_ready(fwd(vis, txt, pad_mask, params))

    assert out.shape == (B, d_model, H * W), out.shape
    assert bool(jnp.all(jnp.isfinite(out)))
    print("KERNEL_OK")
</pallas_src>

<mosaic_0001>
module attributes {stable_mosaic.version = 11 : i64} {
  func.func @_cross_block_kernel(%arg0: i32, %arg1: memref<1x16x64xf32, #tpu.memory_space<vmem>>, %arg2: memref<1x8x64xf32, #tpu.memory_space<vmem>>, %arg3: memref<16x64xf32, #tpu.memory_space<vmem>>, %arg4: memref<8x64xf32, #tpu.memory_space<vmem>>, %arg5: memref<1x1x8xf32, #tpu.memory_space<vmem>>, %arg6: memref<1x64xf32, #tpu.memory_space<vmem>>, %arg7: memref<1x64xf32, #tpu.memory_space<vmem>>, %arg8: memref<64x64xbf16, #tpu.memory_space<vmem>>, %arg9: memref<1x64xf32, #tpu.memory_space<vmem>>, %arg10: memref<64x64xbf16, #tpu.memory_space<vmem>>, %arg11: memref<1x64xf32, #tpu.memory_space<vmem>>, %arg12: memref<64x64xbf16, #tpu.memory_space<vmem>>, %arg13: memref<1x64xf32, #tpu.memory_space<vmem>>, %arg14: memref<64x64xbf16, #tpu.memory_space<vmem>>, %arg15: memref<1x64xf32, #tpu.memory_space<vmem>>, %arg16: memref<1x64xf32, #tpu.memory_space<vmem>>, %arg17: memref<1x64xf32, #tpu.memory_space<vmem>>, %arg18: memref<1x16x64xf32, #tpu.memory_space<vmem>>) attributes {dimension_semantics = [#tpu.dimension_semantics<parallel>], iteration_bounds = array<i64: 2>, scalar_prefetch = 0 : i64, scratch_operands = 0 : i64, tpu.core_type = #tpu.core_type<tc>, window_params = [{transform_indices = @transform_0, window_bounds = array<i64: 1, 16, 64>}, {transform_indices = @transform_1, window_bounds = array<i64: 1, 8, 64>}, {pipeline_mode = #tpu.pipeline_mode<synchronous>, transform_indices = @transform_2, window_bounds = array<i64: 16, 64>}, {pipeline_mode = #tpu.pipeline_mode<synchronous>, transform_indices = @transform_3, window_bounds = array<i64: 8, 64>}, {transform_indices = @transform_4, window_bounds = array<i64: 1, 1, 8>}, {pipeline_mode = #tpu.pipeline_mode<synchronous>, transform_indices = @transform_5, window_bounds = array<i64: 1, 64>}, {pipeline_mode = #tpu.pipeline_mode<synchronous>, transform_indices = @transform_6, window_bounds = array<i64: 1, 64>}, {pipeline_mode = #tpu.pipeline_mode<synchronous>, transform_indices = @transform_7, window_bounds = array<i64: 64, 64>}, {pipeline_mode = #tpu.pipeline_mode<synchronous>, transform_indices = @transform_8, window_bounds = array<i64: 1, 64>}, {pipeline_mode = #tpu.pipeline_mode<synchronous>, transform_indices = @transform_9, window_bounds = array<i64: 64, 64>}, {pipeline_mode = #tpu.pipeline_mode<synchronous>, transform_indices = @transform_10, window_bounds = array<i64: 1, 64>}, {pipeline_mode = #tpu.pipeline_mode<synchronous>, transform_indices = @transform_11, window_bounds = array<i64: 64, 64>}, {pipeline_mode = #tpu.pipeline_mode<synchronous>, transform_indices = @transform_12, window_bounds = array<i64: 1, 64>}, {pipeline_mode = #tpu.pipeline_mode<synchronous>, transform_indices = @transform_13, window_bounds = array<i64: 64, 64>}, {pipeline_mode = #tpu.pipeline_mode<synchronous>, transform_indices = @transform_14, window_bounds = array<i64: 1, 64>}, {pipeline_mode = #tpu.pipeline_mode<synchronous>, transform_indices = @transform_15, window_bounds = array<i64: 1, 64>}, {pipeline_mode = #tpu.pipeline_mode<synchronous>, transform_indices = @transform_16, window_bounds = array<i64: 1, 64>}, {transform_indices = @transform_17, window_bounds = array<i64: 1, 16, 64>}]} {
    %c0 = arith.constant 0 : index
    %c0_0 = arith.constant 0 : index
    %c0_1 = arith.constant 0 : index
    %0 = vector.load %arg1[%c0, %c0_0, %c0_1] : memref<1x16x64xf32, #tpu.memory_space<vmem>>, vector<1x16x64xf32>
    %1 = vector.shape_cast %0 : vector<1x16x64xf32> to vector<16x64xf32>
    %c0_2 = arith.constant 0 : index
    %c0_3 = arith.constant 0 : index
    %c0_4 = arith.constant 0 : index
    %2 = vector.load %arg2[%c0_2, %c0_3, %c0_4] : memref<1x8x64xf32, #tpu.memory_space<vmem>>, vector<1x8x64xf32>
    %3 = vector.shape_cast %2 : vector<1x8x64xf32> to vector<8x64xf32>
    %c0_5 = arith.constant 0 : index
    %c0_6 = arith.constant 0 : index
    %4 = vector.load %arg6[%c0_5, %c0_6] : memref<1x64xf32, #tpu.memory_space<vmem>>, vector<1x64xf32>
    %c0_7 = arith.constant 0 : index
    %c0_8 = arith.constant 0 : index
    %5 = vector.load %arg7[%c0_7, %c0_8] : memref<1x64xf32, #tpu.memory_space<vmem>>, vector<1x64xf32>
    %cst = arith.constant dense<0.000000e+00> : vector<16xf32>
    %6 = vector.multi_reduction <add>, %1, %cst [1] : vector<16x64xf32> to vector<16xf32>
    %7 = vector.shape_cast %6 : vector<16xf32> to vector<16x1xf32>
    %cst_9 = arith.constant 6.400000e+01 : f32
    %8 = vector.broadcast %cst_9 : f32 to vector<16x1xf32>
    %9 = arith.divf %7, %8 : vector<16x1xf32>
    %10 = vector.broadcast %9 : vector<16x1xf32> to vector<16x64xf32>
    %11 = arith.subf %1, %10 : vector<16x64xf32>
    %12 = arith.mulf %11, %11 : vector<16x64xf32>
    %cst_10 = arith.constant dense<0.000000e+00> : vector<16xf32>
    %13 = vector.multi_reduction <add>, %12, %cst_10 [1] : vector<16x64xf32> to vector<16xf32>
    %14 = vector.shape_cast %13 : vector<16xf32> to vector<16x1xf32>
    %cst_11 = arith.constant 6.400000e+01 : f32
    %15 = vector.broadcast %cst_11 : f32 to vector<16x1xf32>
    %16 = arith.divf %14, %15 : vector<16x1xf32>
    %17 = vector.broadcast %9 : vector<16x1xf32> to vector<16x64xf32>
    %18 = arith.subf %1, %17 : vector<16x64xf32>
    %cst_12 = arith.constant 9.99999974E-6 : f32
    %19 = vector.broadcast %cst_12 : f32 to vector<16x1xf32>
    %20 = arith.addf %16, %19 : vector<16x1xf32>
    %21 = math.rsqrt %20 : vector<16x1xf32>
    %22 = vector.broadcast %21 : vector<16x1xf32> to vector<16x64xf32>
    %23 = arith.mulf %18, %22 : vector<16x64xf32>
    %24 = vector.broadcast %4 : vector<1x64xf32> to vector<16x64xf32>
    %25 = arith.mulf %23, %24 : vector<16x64xf32>
    %26 = vector.broadcast %5 : vector<1x64xf32> to vector<16x64xf32>
    %27 = arith.addf %25, %26 : vector<16x64xf32>
    %c0_13 = arith.constant 0 : index
    %c0_14 = arith.constant 0 : index
    %28 = vector.load %arg3[%c0_13, %c0_14] : memref<16x64xf32, #tpu.memory_space<vmem>>, vector<16x64xf32>
    %29 = arith.addf %27, %28 : vector<16x64xf32>
    %30 = arith.truncf %29 : vector<16x64xf32> to vector<16x64xbf16>
    %c0_15 = arith.constant 0 : index
    %c0_16 = arith.constant 0 : index
    %31 = vector.load %arg4[%c0_15, %c0_16] : memref<8x64xf32, #tpu.memory_space<vmem>>, vector<8x64xf32>
    %32 = arith.addf %3, %31 : vector<8x64xf32>
    %33 = arith.truncf %32 : vector<8x64xf32> to vector<8x64xbf16>
    %c0_17 = arith.constant 0 : index
    %c0_18 = arith.constant 0 : index
    %34 = vector.load %arg8[%c0_17, %c0_18] : memref<64x64xbf16, #tpu.memory_space<vmem>>, vector<64x64xbf16>
    %cst_19 = arith.constant dense<0.000000e+00> : vector<16x64xf32>
    %35 = tpu.matmul %30, %34, %cst_19 {dimension_numbers = #tpu.dot_dimension_numbers<[1], [0], [0], [1], [0, 0, 1, 1], [], []>} : vector<16x64xbf16>, vector<64x64xbf16>, vector<16x64xf32> -> vector<16x64xf32>
    %c0_20 = arith.constant 0 : index
    %c0_21 = arith.constant 0 : index
    %36 = vector.load %arg9[%c0_20, %c0_21] : memref<1x64xf32, #tpu.memory_space<vmem>>, vector<1x64xf32>
    %37 = vector.broadcast %36 : vector<1x64xf32> to vector<16x64xf32>
    %38 = arith.addf %35, %37 : vector<16x64xf32>
    %c0_22 = arith.constant 0 : index
    %c0_23 = arith.constant 0 : index
    %39 = vector.load %arg10[%c0_22, %c0_23] : memref<64x64xbf16, #tpu.memory_space<vmem>>, vector<64x64xbf16>
    %cst_24 = arith.constant dense<0.000000e+00> : vector<8x64xf32>
    %40 = tpu.matmul %33, %39, %cst_24 {dimension_numbers = #tpu.dot_dimension_numbers<[1], [0], [0], [1], [0, 0, 1, 1], [], []>} : vector<8x64xbf16>, vector<64x64xbf16>, vector<8x64xf32> -> vector<8x64xf32>
    %c0_25 = arith.constant 0 : index
    %c0_26 = arith.constant 0 : index
    %41 = vector.load %arg11[%c0_25, %c0_26] : memref<1x64xf32, #tpu.memory_space<vmem>>, vector<1x64xf32>
    %42 = vector.broadcast %41 : vector<1x64xf32> to vector<8x64xf32>
    %43 = arith.addf %40, %42 : vector<8x64xf32>
    %44 = arith.truncf %3 : vector<8x64xf32> to vector<8x64xbf16>
    %c0_27 = arith.constant 0 : index
    %c0_28 = arith.constant 0 : index
    %45 = vector.load %arg12[%c0_27, %c0_28] : memref<64x64xbf16, #tpu.memory_space<vmem>>, vector<64x64xbf16>
    %cst_29 = arith.constant dense<0.000000e+00> : vector<8x64xf32>
    %46 = tpu.matmul %44, %45, %cst_29 {dimension_numbers = #tpu.dot_dimension_numbers<[1], [0], [0], [1], [0, 0, 1, 1], [], []>} : vector<8x64xbf16>, vector<64x64xbf16>, vector<8x64xf32> -> vector<8x64xf32>
    %c0_30 = arith.constant 0 : index
    %c0_31 = arith.constant 0 : index
    %47 = vector.load %arg13[%c0_30, %c0_31] : memref<1x64xf32, #tpu.memory_space<vmem>>, vector<1x64xf32>
    %48 = vector.broadcast %47 : vector<1x64xf32> to vector<8x64xf32>
    %49 = arith.addf %46, %48 : vector<8x64xf32>
    %c0_32 = arith.constant 0 : index
    %c0_33 = arith.constant 0 : index
    %50 = vector.load %arg14[%c0_32, %c0_33] : memref<64x64xbf16, #tpu.memory_space<vmem>>, vector<64x64xbf16>
    %c0_34 = arith.constant 0 : index
    %c0_35 = arith.constant 0 : index
    %51 = vector.load %arg15[%c0_34, %c0_35] : memref<1x64xf32, #tpu.memory_space<vmem>>, vector<1x64xf32>
    %c0_36 = arith.constant 0 : index
    %c0_37 = arith.constant 0 : index
    %c0_38 = arith.constant 0 : index
    %52 = vector.load %arg5[%c0_36, %c0_37, %c0_38] : memref<1x1x8xf32, #tpu.memory_space<vmem>>, vector<1x1x8xf32>
    %53 = vector.shape_cast %52 : vector<1x1x8xf32> to vector<1x8xf32>
    %54 = vector.extract_strided_slice %38 {offsets = [0, 0], sizes = [16, 16], strides = [1, 1]} : vector<16x64xf32> to vector<16x16xf32>
    %55 = arith.truncf %54 : vector<16x16xf32> to vector<16x16xbf16>
    %56 = vector.extract_strided_slice %43 {offsets = [0, 0], sizes = [8, 16], strides = [1, 1]} : vector<8x64xf32> to vector<8x16xf32>
    %57 = arith.truncf %56 : vector<8x16xf32> to vector<8x16xbf16>
    %58 = vector.extract_strided_slice %49 {offsets = [0, 0], sizes = [8, 16], strides = [1, 1]} : vector<8x64xf32> to vector<8x16xf32>
    %59 = arith.truncf %58 : vector<8x16xf32> to vector<8x16xbf16>
    %cst_39 = arith.constant dense<0.000000e+00> : vector<16x8xf32>
    %60 = tpu.matmul %55, %57, %cst_39 {dimension_numbers = #tpu.dot_dimension_numbers<[1], [1], [0], [0], [0, 0, 1, 0], [], []>} : vector<16x16xbf16>, vector<8x16xbf16>, vector<16x8xf32> -> vector<16x8xf32>
    %cst_40 = arith.constant 2.500000e-01 : f32
    %61 = vector.broadcast %cst_40 : f32 to vector<16x8xf32>
    %62 = arith.mulf %60, %61 : vector<16x8xf32>
    %63 = vector.broadcast %53 : vector<1x8xf32> to vector<16x8xf32>
    %64 = arith.addf %62, %63 : vector<16x8xf32>
    %cst_41 = arith.constant dense<0xFF800000> : vector<16xf32>
    %65 = vector.multi_reduction <maximumf>, %64, %cst_41 [1] : vector<16x8xf32> to vector<16xf32>
    %66 = vector.shape_cast %65 : vector<16xf32> to vector<16x1xf32>
    %67 = vector.broadcast %66 : vector<16x1xf32> to vector<16x8xf32>
    %68 = arith.subf %64, %67 : vector<16x8xf32>
    %69 = math.exp %68 : vector<16x8xf32>
    %cst_42 = arith.constant dense<0.000000e+00> : vector<16xf32>
    %70 = vector.multi_reduction <add>, %69, %cst_42 [1] : vector<16x8xf32> to vector<16xf32>
    %71 = vector.shape_cast %70 : vector<16xf32> to vector<16x1xf32>
    %72 = tpu.reciprocal %71 {approx = true} : vector<16x1xf32> -> vector<16x1xf32>
    %73 = vector.broadcast %72 : vector<16x1xf32> to vector<16x8xf32>
    %74 = arith.mulf %69, %73 : vector<16x8xf32>
    %75 = arith.truncf %74 : vector<16x8xf32> to vector<16x8xbf16>
    %cst_43 = arith.constant dense<0.000000e+00> : vector<16x16xf32>
    %76 = tpu.matmul %75, %59, %cst_43 {dimension_numbers = #tpu.dot_dimension_numbers<[1], [0], [0], [1], [0, 0, 1, 1], [], []>} : vector<16x8xbf16>, vector<8x16xbf16>, vector<16x16xf32> -> vector<16x16xf32>
    %77 = arith.truncf %76 : vector<16x16xf32> to vector<16x16xbf16>
    %78 = vector.extract_strided_slice %50 {offsets = [0, 0], sizes = [16, 64], strides = [1, 1]} : vector<64x64xbf16> to vector<16x64xbf16>
    %cst_44 = arith.constant dense<0.000000e+00> : vector<16x64xf32>
    %79 = tpu.matmul %77, %78, %cst_44 {dimension_numbers = #tpu.dot_dimension_numbers<[1], [0], [0], [1], [0, 0, 1, 1], [], []>} : vector<16x16xbf16>, vector<16x64xbf16>, vector<16x64xf32> -> vector<16x64xf32>
    %80 = vector.extract_strided_slice %38 {offsets = [0, 16], sizes = [16, 16], strides = [1, 1]} : vector<16x64xf32> to vector<16x16xf32>
    %81 = arith.truncf %80 : vector<16x16xf32> to vector<16x16xbf16>
    %82 = vector.extract_strided_slice %43 {offsets = [0, 16], sizes = [8, 16], strides = [1, 1]} : vector<8x64xf32> to vector<8x16xf32>
    %83 = arith.truncf %82 : vector<8x16xf32> to vector<8x16xbf16>
    %84 = vector.extract_strided_slice %49 {offsets = [0, 16], sizes = [8, 16], strides = [1, 1]} : vector<8x64xf32> to vector<8x16xf32>
    %85 = arith.truncf %84 : vector<8x16xf32> to vector<8x16xbf16>
    %cst_45 = arith.constant dense<0.000000e+00> : vector<16x8xf32>
    %86 = tpu.matmul %81, %83, %cst_45 {dimension_numbers = #tpu.dot_dimension_numbers<[1], [1], [0], [0], [0, 0, 1, 0], [], []>} : vector<16x16xbf16>, vector<8x16xbf16>, vector<16x8xf32> -> vector<16x8xf32>
    %cst_46 = arith.constant 2.500000e-01 : f32
    %87 = vector.broadcast %cst_46 : f32 to vector<16x8xf32>
    %88 = arith.mulf %86, %87 : vector<16x8xf32>
    %89 = vector.broadcast %53 : vector<1x8xf32> to vector<16x8xf32>
    %90 = arith.addf %88, %89 : vector<16x8xf32>
    %cst_47 = arith.constant dense<0xFF800000> : vector<16xf32>
    %91 = vector.multi_reduction <maximumf>, %90, %cst_47 [1] : vector<16x8xf32> to vector<16xf32>
    %92 = vector.shape_cast %91 : vector<16xf32> to vector<16x1xf32>
    %93 = vector.broadcast %92 : vector<16x1xf32> to vector<16x8xf32>
    %94 = arith.subf %90, %93 : vector<16x8xf32>
    %95 = math.exp %94 : vector<16x8xf32>
    %cst_48 = arith.constant dense<0.000000e+00> : vector<16xf32>
    %96 = vector.multi_reduction <add>, %95, %cst_48 [1] : vector<16x8xf32> to vector<16xf32>
    %97 = vector.shape_cast %96 : vector<16xf32> to vector<16x1xf32>
    %98 = tpu.reciprocal %97 {approx = true} : vector<16x1xf32> -> vector<16x1xf32>
    %99 = vector.broadcast %98 : vector<16x1xf32> to vector<16x8xf32>
    %100 = arith.mulf %95, %99 : vector<16x8xf32>
    %101 = arith.truncf %100 : vector<16x8xf32> to vector<16x8xbf16>
    %cst_49 = arith.constant dense<0.000000e+00> : vector<16x16xf32>
    %102 = tpu.matmul %101, %85, %cst_49 {dimension_numbers = #tpu.dot_dimension_numbers<[1], [0], [0], [1], [0, 0, 1, 1], [], []>} : vector<16x8xbf16>, vector<8x16xbf16>, vector<16x16xf32> -> vector<16x16xf32>
    %103 = arith.truncf %102 : vector<16x16xf32> to vector<16x16xbf16>
    %104 = vector.extract_strided_slice %50 {offsets = [16, 0], sizes = [16, 64], strides = [1, 1]} : vector<64x64xbf16> to vector<16x64xbf16>
    %cst_50 = arith.constant dense<0.000000e+00> : vector<16x64xf32>
    %105 = tpu.matmul %103, %104, %cst_50 {dimension_numbers = #tpu.dot_dimension_numbers<[1], [0], [0], [1], [0, 0, 1, 1], [], []>} : vector<16x16xbf16>, vector<16x64xbf16>, vector<16x64xf32> -> vector<16x64xf32>
    %106 = arith.addf %79, %105 : vector<16x64xf32>
    %107 = vector.extract_strided_slice %38 {offsets = [0, 32], sizes = [16, 16], strides = [1, 1]} : vector<16x64xf32> to vector<16x16xf32>
    %108 = arith.truncf %107 : vector<16x16xf32> to vector<16x16xbf16>
    %109 = vector.extract_strided_slice %43 {offsets = [0, 32], sizes = [8, 16], strides = [1, 1]} : vector<8x64xf32> to vector<8x16xf32>
    %110 = arith.truncf %109 : vector<8x16xf32> to vector<8x16xbf16>
    %111 = vector.extract_strided_slice %49 {offsets = [0, 32], sizes = [8, 16], strides = [1, 1]} : vector<8x64xf32> to vector<8x16xf32>
    %112 = arith.truncf %111 : vector<8x16xf32> to vector<8x16xbf16>
    %cst_51 = arith.constant dense<0.000000e+00> : vector<16x8xf32>
    %113 = tpu.matmul %108, %110, %cst_51 {dimension_numbers = #tpu.dot_dimension_numbers<[1], [1], [0], [0], [0, 0, 1, 0], [], []>} : vector<16x16xbf16>, vector<8x16xbf16>, vector<16x8xf32> -> vector<16x8xf32>
    %cst_52 = arith.constant 2.500000e-01 : f32
    %114 = vector.broadcast %cst_52 : f32 to vector<16x8xf32>
    %115 = arith.mulf %113, %114 : vector<16x8xf32>
    %116 = vector.broadcast %53 : vector<1x8xf32> to vector<16x8xf32>
    %117 = arith.addf %115, %116 : vector<16x8xf32>
    %cst_53 = arith.constant dense<0xFF800000> : vector<16xf32>
    %118 = vector.multi_reduction <maximumf>, %117, %cst_53 [1] : vector<16x8xf32> to vector<16xf32>
    %119 = vector.shape_cast %118 : vector<16xf32> to vector<16x1xf32>
    %120 = vector.broadcast %119 : vector<16x1xf32> to vector<16x8xf32>
    %121 = arith.subf %117, %120 : vector<16x8xf32>
    %122 = math.exp %121 : vector<16x8xf32>
    %cst_54 = arith.constant dense<0.000000e+00> : vector<16xf32>
    %123 = vector.multi_reduction <add>, %122, %cst_54 [1] : vector<16x8xf32> to vector<16xf32>
    %124 = vector.shape_cast %123 : vector<16xf32> to vector<16x1xf32>
    %125 = tpu.reciprocal %124 {approx = true} : vector<16x1xf32> -> vector<16x1xf32>
    %126 = vector.broadcast %125 : vector<16x1xf32> to vector<16x8xf32>
    %127 = arith.mulf %122, %126 : vector<16x8xf32>
    %128 = arith.truncf %127 : vector<16x8xf32> to vector<16x8xbf16>
    %cst_55 = arith.constant dense<0.000000e+00> : vector<16x16xf32>
    %129 = tpu.matmul %128, %112, %cst_55 {dimension_numbers = #tpu.dot_dimension_numbers<[1], [0], [0], [1], [0, 0, 1, 1], [], []>} : vector<16x8xbf16>, vector<8x16xbf16>, vector<16x16xf32> -> vector<16x16xf32>
    %130 = arith.truncf %129 : vector<16x16xf32> to vector<16x16xbf16>
    %131 = vector.extract_strided_slice %50 {offsets = [32, 0], sizes = [16, 64], strides = [1, 1]} : vector<64x64xbf16> to vector<16x64xbf16>
    %cst_56 = arith.constant dense<0.000000e+00> : vector<16x64xf32>
    %132 = tpu.matmul %130, %131, %cst_56 {dimension_numbers = #tpu.dot_dimension_numbers<[1], [0], [0], [1], [0, 0, 1, 1], [], []>} : vector<16x16xbf16>, vector<16x64xbf16>, vector<16x64xf32> -> vector<16x64xf32>
    %133 = arith.addf %106, %132 : vector<16x64xf32>
    %134 = vector.extract_strided_slice %38 {offsets = [0, 48], sizes = [16, 16], strides = [1, 1]} : vector<16x64xf32> to vector<16x16xf32>
    %135 = arith.truncf %134 : vector<16x16xf32> to vector<16x16xbf16>
    %136 = vector.extract_strided_slice %43 {offsets = [0, 48], sizes = [8, 16], strides = [1, 1]} : vector<8x64xf32> to vector<8x16xf32>
    %137 = arith.truncf %136 : vector<8x16xf32> to vector<8x16xbf16>
    %138 = vector.extract_strided_slice %49 {offsets = [0, 48], sizes = [8, 16], strides = [1, 1]} : vector<8x64xf32> to vector<8x16xf32>
    %139 = arith.truncf %138 : vector<8x16xf32> to vector<8x16xbf16>
    %cst_57 = arith.constant dense<0.000000e+00> : vector<16x8xf32>
    %140 = tpu.matmul %135, %137, %cst_57 {dimension_numbers = #tpu.dot_dimension_numbers<[1], [1], [0], [0], [0, 0, 1, 0], [], []>} : vector<16x16xbf16>, vector<8x16xbf16>, vector<16x8xf32> -> vector<16x8xf32>
    %cst_58 = arith.constant 2.500000e-01 : f32
    %141 = vector.broadcast %cst_58 : f32 to vector<16x8xf32>
    %142 = arith.mulf %140, %141 : vector<16x8xf32>
    %143 = vector.broadcast %53 : vector<1x8xf32> to vector<16x8xf32>
    %144 = arith.addf %142, %143 : vector<16x8xf32>
    %cst_59 = arith.constant dense<0xFF800000> : vector<16xf32>
    %145 = vector.multi_reduction <maximumf>, %144, %cst_59 [1] : vector<16x8xf32> to vector<16xf32>
    %146 = vector.shape_cast %145 : vector<16xf32> to vector<16x1xf32>
    %147 = vector.broadcast %146 : vector<16x1xf32> to vector<16x8xf32>
    %148 = arith.subf %144, %147 : vector<16x8xf32>
    %149 = math.exp %148 : vector<16x8xf32>
    %cst_60 = arith.constant dense<0.000000e+00> : vector<16xf32>
    %150 = vector.multi_reduction <add>, %149, %cst_60 [1] : vector<16x8xf32> to vector<16xf32>
    %151 = vector.shape_cast %150 : vector<16xf32> to vector<16x1xf32>
    %152 = tpu.reciprocal %151 {approx = true} : vector<16x1xf32> -> vector<16x1xf32>
    %153 = vector.broadcast %152 : vector<16x1xf32> to vector<16x8xf32>
    %154 = arith.mulf %149, %153 : vector<16x8xf32>
    %155 = arith.truncf %154 : vector<16x8xf32> to vector<16x8xbf16>
    %cst_61 = arith.constant dense<0.000000e+00> : vector<16x16xf32>
    %156 = tpu.matmul %155, %139, %cst_61 {dimension_numbers = #tpu.dot_dimension_numbers<[1], [0], [0], [1], [0, 0, 1, 1], [], []>} : vector<16x8xbf16>, vector<8x16xbf16>, vector<16x16xf32> -> vector<16x16xf32>
    %157 = arith.truncf %156 : vector<16x16xf32> to vector<16x16xbf16>
    %158 = vector.extract_strided_slice %50 {offsets = [48, 0], sizes = [16, 64], strides = [1, 1]} : vector<64x64xbf16> to vector<16x64xbf16>
    %cst_62 = arith.constant dense<0.000000e+00> : vector<16x64xf32>
    %159 = tpu.matmul %157, %158, %cst_62 {dimension_numbers = #tpu.dot_dimension_numbers<[1], [0], [0], [1], [0, 0, 1, 1], [], []>} : vector<16x16xbf16>, vector<16x64xbf16>, vector<16x64xf32> -> vector<16x64xf32>
    %160 = arith.addf %133, %159 : vector<16x64xf32>
    %161 = vector.broadcast %51 : vector<1x64xf32> to vector<16x64xf32>
    %162 = arith.addf %160, %161 : vector<16x64xf32>
    %c0_63 = arith.constant 0 : index
    %c0_64 = arith.constant 0 : index
    %163 = vector.load %arg16[%c0_63, %c0_64] : memref<1x64xf32, #tpu.memory_space<vmem>>, vector<1x64xf32>
    %c0_65 = arith.constant 0 : index
    %c0_66 = arith.constant 0 : index
    %164 = vector.load %arg17[%c0_65, %c0_66] : memref<1x64xf32, #tpu.memory_space<vmem>>, vector<1x64xf32>
    %cst_67 = arith.constant dense<0.000000e+00> : vector<16xf32>
    %165 = vector.multi_reduction <add>, %162, %cst_67 [1] : vector<16x64xf32> to vector<16xf32>
    %166 = vector.shape_cast %165 : vector<16xf32> to vector<16x1xf32>
    %cst_68 = arith.constant 6.400000e+01 : f32
    %167 = vector.broadcast %cst_68 : f32 to vector<16x1xf32>
    %168 = arith.divf %166, %167 : vector<16x1xf32>
    %169 = vector.broadcast %168 : vector<16x1xf32> to vector<16x64xf32>
    %170 = arith.subf %162, %169 : vector<16x64xf32>
    %171 = arith.mulf %170, %170 : vector<16x64xf32>
    %cst_69 = arith.constant dense<0.000000e+00> : vector<16xf32>
    %172 = vector.multi_reduction <add>, %171, %cst_69 [1] : vector<16x64xf32> to vector<16xf32>
    %173 = vector.shape_cast %172 : vector<16xf32> to vector<16x1xf32>
    %cst_70 = arith.constant 6.400000e+01 : f32
    %174 = vector.broadcast %cst_70 : f32 to vector<16x1xf32>
    %175 = arith.divf %173, %174 : vector<16x1xf32>
    %176 = vector.broadcast %168 : vector<16x1xf32> to vector<16x64xf32>
    %177 = arith.subf %162, %176 : vector<16x64xf32>
    %cst_71 = arith.constant 9.99999974E-6 : f32
    %178 = vector.broadcast %cst_71 : f32 to vector<16x1xf32>
    %179 = arith.addf %175, %178 : vector<16x1xf32>
    %180 = math.rsqrt %179 : vector<16x1xf32>
    %181 = vector.broadcast %180 : vector<16x1xf32> to vector<16x64xf32>
    %182 = arith.mulf %177, %181 : vector<16x64xf32>
    %183 = vector.broadcast %163 : vector<1x64xf32> to vector<16x64xf32>
    %184 = arith.mulf %182, %183 : vector<16x64xf32>
    %185 = vector.broadcast %164 : vector<1x64xf32> to vector<16x64xf32>
    %186 = arith.addf %184, %185 : vector<16x64xf32>
    %187 = arith.addf %1, %186 : vector<16x64xf32>
    %c0_72 = arith.constant 0 : index
    %c0_73 = arith.constant 0 : index
    %c0_74 = arith.constant 0 : index
    %188 = vector.load %arg18[%c0_72, %c0_73, %c0_74] : memref<1x16x64xf32, #tpu.memory_space<vmem>>, vector<1x16x64xf32>
    %189 = vector.shape_cast %188 : vector<1x16x64xf32> to vector<16x64xf32>
    %190 = vector.shape_cast %187 : vector<16x64xf32> to vector<1x16x64xf32>
    tpu.vector_store %arg18[%c0_72, %c0_73, %c0_74], %190 {strides = array<i32>} : memref<1x16x64xf32, #tpu.memory_space<vmem>>, vector<1x16x64xf32>,
    return
  }
  func.func @transform_0(%arg0: i32) -> (i32, i32, i32) {
    %c0_i32 = arith.constant 0 : i32
    %c0_i32_0 = arith.constant 0 : i32
    %c0_i32_1 = arith.constant 0 : i32
    return %arg0, %c0_i32, %c0_i32_0 : i32, i32, i32
  }
  func.func @transform_1(%arg0: i32) -> (i32, i32, i32) {
    %c0_i32 = arith.constant 0 : i32
    %c0_i32_0 = arith.constant 0 : i32
    %c0_i32_1 = arith.constant 0 : i32
    return %arg0, %c0_i32, %c0_i32_0 : i32, i32, i32
  }
  func.func @transform_2(%arg0: i32) -> (i32, i32) {
    %c0_i32 = arith.constant 0 : i32
    %c0_i32_0 = arith.constant 0 : i32
    %c0_i32_1 = arith.constant 0 : i32
    return %c0_i32, %c0_i32_0 : i32, i32
  }
  func.func @transform_3(%arg0: i32) -> (i32, i32) {
    %c0_i32 = arith.constant 0 : i32
    %c0_i32_0 = arith.constant 0 : i32
    %c0_i32_1 = arith.constant 0 : i32
    return %c0_i32, %c0_i32_0 : i32, i32
  }
  func.func @transform_4(%arg0: i32) -> (i32, i32, i32) {
    %c0_i32 = arith.constant 0 : i32
    %c0_i32_0 = arith.constant 0 : i32
    %c0_i32_1 = arith.constant 0 : i32
    return %arg0, %c0_i32, %c0_i32_0 : i32, i32, i32
  }
  func.func @transform_5(%arg0: i32) -> (i32, i32) {
    %c0_i32 = arith.constant 0 : i32
    %c0_i32_0 = arith.constant 0 : i32
    %c0_i32_1 = arith.constant 0 : i32
    return %c0_i32, %c0_i32_0 : i32, i32
  }
  func.func @transform_6(%arg0: i32) -> (i32, i32) {
    %c0_i32 = arith.constant 0 : i32
    %c0_i32_0 = arith.constant 0 : i32
    %c0_i32_1 = arith.constant 0 : i32
    return %c0_i32, %c0_i32_0 : i32, i32
  }
  func.func @transform_7(%arg0: i32) -> (i32, i32) {
    %c0_i32 = arith.constant 0 : i32
    %c0_i32_0 = arith.constant 0 : i32
    %c0_i32_1 = arith.constant 0 : i32
    return %c0_i32, %c0_i32_0 : i32, i32
  }
  func.func @transform_8(%arg0: i32) -> (i32, i32) {
    %c0_i32 = arith.constant 0 : i32
    %c0_i32_0 = arith.constant 0 : i32
    %c0_i32_1 = arith.constant 0 : i32
    return %c0_i32, %c0_i32_0 : i32, i32
  }
  func.func @transform_9(%arg0: i32) -> (i32, i32) {
    %c0_i32 = arith.constant 0 : i32
    %c0_i32_0 = arith.constant 0 : i32
    %c0_i32_1 = arith.constant 0 : i32
    return %c0_i32, %c0_i32_0 : i32, i32
  }
  func.func @transform_10(%arg0: i32) -> (i32, i32) {
    %c0_i32 = arith.constant 0 : i32
    %c0_i32_0 = arith.constant 0 : i32
    %c0_i32_1 = arith.constant 0 : i32
    return %c0_i32, %c0_i32_0 : i32, i32
  }
  func.func @transform_11(%arg0: i32) -> (i32, i32) {
    %c0_i32 = arith.constant 0 : i32
    %c0_i32_0 = arith.constant 0 : i32
    %c0_i32_1 = arith.constant 0 : i32
    return %c0_i32, %c0_i32_0 : i32, i32
  }
  func.func @transform_12(%arg0: i32) -> (i32, i32) {
    %c0_i32 = arith.constant 0 : i32
    %c0_i32_0 = arith.constant 0 : i32
    %c0_i32_1 = arith.constant 0 : i32
    return %c0_i32, %c0_i32_0 : i32, i32
  }
  func.func @transform_13(%arg0: i32) -> (i32, i32) {
    %c0_i32 = arith.constant 0 : i32
    %c0_i32_0 = arith.constant 0 : i32
    %c0_i32_1 = arith.constant 0 : i32
    return %c0_i32, %c0_i32_0 : i32, i32
  }
  func.func @transform_14(%arg0: i32) -> (i32, i32) {
    %c0_i32 = arith.constant 0 : i32
    %c0_i32_0 = arith.constant 0 : i32
    %c0_i32_1 = arith.constant 0 : i32
    return %c0_i32, %c0_i32_0 : i32, i32
  }
  func.func @transform_15(%arg0: i32) -> (i32, i32) {
    %c0_i32 = arith.constant 0 : i32
    %c0_i32_0 = arith.constant 0 : i32
    %c0_i32_1 = arith.constant 0 : i32
    return %c0_i32, %c0_i32_0 : i32, i32
  }
  func.func @transform_16(%arg0: i32) -> (i32, i32) {
    %c0_i32 = arith.constant 0 : i32
    %c0_i32_0 = arith.constant 0 : i32
    %c0_i32_1 = arith.constant 0 : i32
    return %c0_i32, %c0_i32_0 : i32, i32
  }
  func.func @transform_17(%arg0: i32) -> (i32, i32, i32) {
    %c0_i32 = arith.constant 0 : i32
    %c0_i32_0 = arith.constant 0 : i32
    %c0_i32_1 = arith.constant 0 : i32
    return %arg0, %c0_i32, %c0_i32_0 : i32, i32, i32
  }
}

module attributes {stable_mosaic.version = 11 : i64} {
  func.func @_self_block_kernel(%arg0: i32, %arg1: memref<1x16x64xf32, #tpu.memory_space<vmem>>, %arg2: memref<16x64xf32, #tpu.memory_space<vmem>>, %arg3: memref<1x64xf32, #tpu.memory_space<vmem>>, %arg4: memref<1x64xf32, #tpu.memory_space<vmem>>, %arg5: memref<64x128xbf16, #tpu.memory_space<vmem>>, %arg6: memref<1x128xf32, #tpu.memory_space<vmem>>, %arg7: memref<64x64xbf16, #tpu.memory_space<vmem>>, %arg8: memref<1x64xf32, #tpu.memory_space<vmem>>, %arg9: memref<64x64xbf16, #tpu.memory_space<vmem>>, %arg10: memref<1x64xf32, #tpu.memory_space<vmem>>, %arg11: memref<1x64xf32, #tpu.memory_space<vmem>>, %arg12: memref<1x64xf32, #tpu.memory_space<vmem>>, %arg13: memref<1x16x64xf32, #tpu.memory_space<vmem>>) attributes {dimension_semantics = [#tpu.dimension_semantics<parallel>], iteration_bounds = array<i64: 2>, scalar_prefetch = 0 : i64, scratch_operands = 0 : i64, tpu.core_type = #tpu.core_type<tc>, window_params = [{transform_indices = @transform_0, window_bounds = array<i64: 1, 16, 64>}, {pipeline_mode = #tpu.pipeline_mode<synchronous>, transform_indices = @transform_1, window_bounds = array<i64: 16, 64>}, {pipeline_mode = #tpu.pipeline_mode<synchronous>, transform_indices = @transform_2, window_bounds = array<i64: 1, 64>}, {pipeline_mode = #tpu.pipeline_mode<synchronous>, transform_indices = @transform_3, window_bounds = array<i64: 1, 64>}, {pipeline_mode = #tpu.pipeline_mode<synchronous>, transform_indices = @transform_4, window_bounds = array<i64: 64, 128>}, {pipeline_mode = #tpu.pipeline_mode<synchronous>, transform_indices = @transform_5, window_bounds = array<i64: 1, 128>}, {pipeline_mode = #tpu.pipeline_mode<synchronous>, transform_indices = @transform_6, window_bounds = array<i64: 64, 64>}, {pipeline_mode = #tpu.pipeline_mode<synchronous>, transform_indices = @transform_7, window_bounds = array<i64: 1, 64>}, {pipeline_mode = #tpu.pipeline_mode<synchronous>, transform_indices = @transform_8, window_bounds = array<i64: 64, 64>}, {pipeline_mode = #tpu.pipeline_mode<synchronous>, transform_indices = @transform_9, window_bounds = array<i64: 1, 64>}, {pipeline_mode = #tpu.pipeline_mode<synchronous>, transform_indices = @transform_10, window_bounds = array<i64: 1, 64>}, {pipeline_mode = #tpu.pipeline_mode<synchronous>, transform_indices = @transform_11, window_bounds = array<i64: 1, 64>}, {transform_indices = @transform_12, window_bounds = array<i64: 1, 16, 64>}]} {
    %c0 = arith.constant 0 : index
    %c0_0 = arith.constant 0 : index
    %c0_1 = arith.constant 0 : index
    %0 = vector.load %arg1[%c0, %c0_0, %c0_1] : memref<1x16x64xf32, #tpu.memory_space<vmem>>, vector<1x16x64xf32>
    %1 = vector.shape_cast %0 : vector<1x16x64xf32> to vector<16x64xf32>
    %c0_2 = arith.constant 0 : index
    %c0_3 = arith.constant 0 : index
    %2 = vector.load %arg3[%c0_2, %c0_3] : memref<1x64xf32, #tpu.memory_space<vmem>>, vector<1x64xf32>
    %c0_4 = arith.constant 0 : index
    %c0_5 = arith.constant 0 : index
    %3 = vector.load %arg4[%c0_4, %c0_5] : memref<1x64xf32, #tpu.memory_space<vmem>>, vector<1x64xf32>
    %cst = arith.constant dense<0.000000e+00> : vector<16xf32>
    %4 = vector.multi_reduction <add>, %1, %cst [1] : vector<16x64xf32> to vector<16xf32>
    %5 = vector.shape_cast %4 : vector<16xf32> to vector<16x1xf32>
    %cst_6 = arith.constant 6.400000e+01 : f32
    %6 = vector.broadcast %cst_6 : f32 to vector<16x1xf32>
    %7 = arith.divf %5, %6 : vector<16x1xf32>
    %8 = vector.broadcast %7 : vector<16x1xf32> to vector<16x64xf32>
    %9 = arith.subf %1, %8 : vector<16x64xf32>
    %10 = arith.mulf %9, %9 : vector<16x64xf32>
    %cst_7 = arith.constant dense<0.000000e+00> : vector<16xf32>
    %11 = vector.multi_reduction <add>, %10, %cst_7 [1] : vector<16x64xf32> to vector<16xf32>
    %12 = vector.shape_cast %11 : vector<16xf32> to vector<16x1xf32>
    %cst_8 = arith.constant 6.400000e+01 : f32
    %13 = vector.broadcast %cst_8 : f32 to vector<16x1xf32>
    %14 = arith.divf %12, %13 : vector<16x1xf32>
    %15 = vector.broadcast %7 : vector<16x1xf32> to vector<16x64xf32>
    %16 = arith.subf %1, %15 : vector<16x64xf32>
    %cst_9 = arith.constant 9.99999974E-6 : f32
    %17 = vector.broadcast %cst_9 : f32 to vector<16x1xf32>
    %18 = arith.addf %14, %17 : vector<16x1xf32>
    %19 = math.rsqrt %18 : vector<16x1xf32>
    %20 = vector.broadcast %19 : vector<16x1xf32> to vector<16x64xf32>
    %21 = arith.mulf %16, %20 : vector<16x64xf32>
    %22 = vector.broadcast %2 : vector<1x64xf32> to vector<16x64xf32>
    %23 = arith.mulf %21, %22 : vector<16x64xf32>
    %24 = vector.broadcast %3 : vector<1x64xf32> to vector<16x64xf32>
    %25 = arith.addf %23, %24 : vector<16x64xf32>
    %c0_10 = arith.constant 0 : index
    %c0_11 = arith.constant 0 : index
    %26 = vector.load %arg2[%c0_10, %c0_11] : memref<16x64xf32, #tpu.memory_space<vmem>>, vector<16x64xf32>
    %27 = arith.addf %25, %26 : vector<16x64xf32>
    %28 = arith.truncf %27 : vector<16x64xf32> to vector<16x64xbf16>
    %c0_12 = arith.constant 0 : index
    %c0_13 = arith.constant 0 : index
    %29 = vector.load %arg5[%c0_12, %c0_13] : memref<64x128xbf16, #tpu.memory_space<vmem>>, vector<64x128xbf16>
    %cst_14 = arith.constant dense<0.000000e+00> : vector<16x128xf32>
    %30 = tpu.matmul %28, %29, %cst_14 {dimension_numbers = #tpu.dot_dimension_numbers<[1], [0], [0], [1], [0, 0, 1, 1], [], []>} : vector<16x64xbf16>, vector<64x128xbf16>, vector<16x128xf32> -> vector<16x128xf32>
    %c0_15 = arith.constant 0 : index
    %c0_16 = arith.constant 0 : index
    %31 = vector.load %arg6[%c0_15, %c0_16] : memref<1x128xf32, #tpu.memory_space<vmem>>, vector<1x128xf32>
    %32 = vector.broadcast %31 : vector<1x128xf32> to vector<16x128xf32>
    %33 = arith.addf %30, %32 : vector<16x128xf32>
    %34 = arith.truncf %25 : vector<16x64xf32> to vector<16x64xbf16>
    %c0_17 = arith.constant 0 : index
    %c0_18 = arith.constant 0 : index
    %35 = vector.load %arg7[%c0_17, %c0_18] : memref<64x64xbf16, #tpu.memory_space<vmem>>, vector<64x64xbf16>
    %cst_19 = arith.constant dense<0.000000e+00> : vector<16x64xf32>
    %36 = tpu.matmul %34, %35, %cst_19 {dimension_numbers = #tpu.dot_dimension_numbers<[1], [0], [0], [1], [0, 0, 1, 1], [], []>} : vector<16x64xbf16>, vector<64x64xbf16>, vector<16x64xf32> -> vector<16x64xf32>
    %c0_20 = arith.constant 0 : index
    %c0_21 = arith.constant 0 : index
    %37 = vector.load %arg8[%c0_20, %c0_21] : memref<1x64xf32, #tpu.memory_space<vmem>>, vector<1x64xf32>
    %38 = vector.broadcast %37 : vector<1x64xf32> to vector<16x64xf32>
    %39 = arith.addf %36, %38 : vector<16x64xf32>
    %40 = vector.extract_strided_slice %33 {offsets = [0, 0], sizes = [16, 64], strides = [1, 1]} : vector<16x128xf32> to vector<16x64xf32>
    %41 = vector.extract_strided_slice %33 {offsets = [0, 64], sizes = [16, 64], strides = [1, 1]} : vector<16x128xf32> to vector<16x64xf32>
    %c0_22 = arith.constant 0 : index
    %c0_23 = arith.constant 0 : index
    %42 = vector.load %arg9[%c0_22, %c0_23] : memref<64x64xbf16, #tpu.memory_space<vmem>>, vector<64x64xbf16>
    %c0_24 = arith.constant 0 : index
    %c0_25 = arith.constant 0 : index
    %43 = vector.load %arg10[%c0_24, %c0_25] : memref<1x64xf32, #tpu.memory_space<vmem>>, vector<1x64xf32>
    %44 = vector.extract_strided_slice %40 {offsets = [0, 0], sizes = [16, 16], strides = [1, 1]} : vector<16x64xf32> to vector<16x16xf32>
    %45 = arith.truncf %44 : vector<16x16xf32> to vector<16x16xbf16>
    %46 = vector.extract_strided_slice %41 {offsets = [0, 0], sizes = [16, 16], strides = [1, 1]} : vector<16x64xf32> to vector<16x16xf32>
    %47 = arith.truncf %46 : vector<16x16xf32> to vector<16x16xbf16>
    %48 = vector.extract_strided_slice %39 {offsets = [0, 0], sizes = [16, 16], strides = [1, 1]} : vector<16x64xf32> to vector<16x16xf32>
    %49 = arith.truncf %48 : vector<16x16xf32> to vector<16x16xbf16>
    %cst_26 = arith.constant dense<0.000000e+00> : vector<16x16xf32>
    %50 = tpu.matmul %45, %47, %cst_26 {dimension_numbers = #tpu.dot_dimension_numbers<[1], [1], [0], [0], [0, 0, 1, 0], [], []>} : vector<16x16xbf16>, vector<16x16xbf16>, vector<16x16xf32> -> vector<16x16xf32>
    %cst_27 = arith.constant 2.500000e-01 : f32
    %51 = vector.broadcast %cst_27 : f32 to vector<16x16xf32>
    %52 = arith.mulf %50, %51 : vector<16x16xf32>
    %cst_28 = arith.constant dense<0xFF800000> : vector<16xf32>
    %53 = vector.multi_reduction <maximumf>, %52, %cst_28 [1] : vector<16x16xf32> to vector<16xf32>
    %54 = vector.shape_cast %53 : vector<16xf32> to vector<16x1xf32>
    %55 = vector.broadcast %54 : vector<16x1xf32> to vector<16x16xf32>
    %56 = arith.subf %52, %55 : vector<16x16xf32>
    %57 = math.exp %56 : vector<16x16xf32>
    %cst_29 = arith.constant dense<0.000000e+00> : vector<16xf32>
    %58 = vector.multi_reduction <add>, %57, %cst_29 [1] : vector<16x16xf32> to vector<16xf32>
    %59 = vector.shape_cast %58 : vector<16xf32> to vector<16x1xf32>
    %60 = tpu.reciprocal %59 {approx = true} : vector<16x1xf32> -> vector<16x1xf32>
    %61 = vector.broadcast %60 : vector<16x1xf32> to vector<16x16xf32>
    %62 = arith.mulf %57, %61 : vector<16x16xf32>
    %63 = arith.truncf %62 : vector<16x16xf32> to vector<16x16xbf16>
    %cst_30 = arith.constant dense<0.000000e+00> : vector<16x16xf32>
    %64 = tpu.matmul %63, %49, %cst_30 {dimension_numbers = #tpu.dot_dimension_numbers<[1], [0], [0], [1], [0, 0, 1, 1], [], []>} : vector<16x16xbf16>, vector<16x16xbf16>, vector<16x16xf32> -> vector<16x16xf32>
    %65 = arith.truncf %64 : vector<16x16xf32> to vector<16x16xbf16>
    %66 = vector.extract_strided_slice %42 {offsets = [0, 0], sizes = [16, 64], strides = [1, 1]} : vector<64x64xbf16> to vector<16x64xbf16>
    %cst_31 = arith.constant dense<0.000000e+00> : vector<16x64xf32>
    %67 = tpu.matmul %65, %66, %cst_31 {dimension_numbers = #tpu.dot_dimension_numbers<[1], [0], [0], [1], [0, 0, 1, 1], [], []>} : vector<16x16xbf16>, vector<16x64xbf16>, vector<16x64xf32> -> vector<16x64xf32>
    %68 = vector.extract_strided_slice %40 {offsets = [0, 16], sizes = [16, 16], strides = [1, 1]} : vector<16x64xf32> to vector<16x16xf32>
    %69 = arith.truncf %68 : vector<16x16xf32> to vector<16x16xbf16>
    %70 = vector.extract_strided_slice %41 {offsets = [0, 16], sizes = [16, 16], strides = [1, 1]} : vector<16x64xf32> to vector<16x16xf32>
    %71 = arith.truncf %70 : vector<16x16xf32> to vector<16x16xbf16>
    %72 = vector.extract_strided_slice %39 {offsets = [0, 16], sizes = [16, 16], strides = [1, 1]} : vector<16x64xf32> to vector<16x16xf32>
    %73 = arith.truncf %72 : vector<16x16xf32> to vector<16x16xbf16>
    %cst_32 = arith.constant dense<0.000000e+00> : vector<16x16xf32>
    %74 = tpu.matmul %69, %71, %cst_32 {dimension_numbers = #tpu.dot_dimension_numbers<[1], [1], [0], [0], [0, 0, 1, 0], [], []>} : vector<16x16xbf16>, vector<16x16xbf16>, vector<16x16xf32> -> vector<16x16xf32>
    %cst_33 = arith.constant 2.500000e-01 : f32
    %75 = vector.broadcast %cst_33 : f32 to vector<16x16xf32>
    %76 = arith.mulf %74, %75 : vector<16x16xf32>
    %cst_34 = arith.constant dense<0xFF800000> : vector<16xf32>
    %77 = vector.multi_reduction <maximumf>, %76, %cst_34 [1] : vector<16x16xf32> to vector<16xf32>
    %78 = vector.shape_cast %77 : vector<16xf32> to vector<16x1xf32>
    %79 = vector.broadcast %78 : vector<16x1xf32> to vector<16x16xf32>
    %80 = arith.subf %76, %79 : vector<16x16xf32>
    %81 = math.exp %80 : vector<16x16xf32>
    %cst_35 = arith.constant dense<0.000000e+00> : vector<16xf32>
    %82 = vector.multi_reduction <add>, %81, %cst_35 [1] : vector<16x16xf32> to vector<16xf32>
    %83 = vector.shape_cast %82 : vector<16xf32> to vector<16x1xf32>
    %84 = tpu.reciprocal %83 {approx = true} : vector<16x1xf32> -> vector<16x1xf32>
    %85 = vector.broadcast %84 : vector<16x1xf32> to vector<16x16xf32>
    %86 = arith.mulf %81, %85 : vector<16x16xf32>
    %87 = arith.truncf %86 : vector<16x16xf32> to vector<16x16xbf16>
    %cst_36 = arith.constant dense<0.000000e+00> : vector<16x16xf32>
    %88 = tpu.matmul %87, %73, %cst_36 {dimension_numbers = #tpu.dot_dimension_numbers<[1], [0], [0], [1], [0, 0, 1, 1], [], []>} : vector<16x16xbf16>, vector<16x16xbf16>, vector<16x16xf32> -> vector<16x16xf32>
    %89 = arith.truncf %88 : vector<16x16xf32> to vector<16x16xbf16>
    %90 = vector.extract_strided_slice %42 {offsets = [16, 0], sizes = [16, 64], strides = [1, 1]} : vector<64x64xbf16> to vector<16x64xbf16>
    %cst_37 = arith.constant dense<0.000000e+00> : vector<16x64xf32>
    %91 = tpu.matmul %89, %90, %cst_37 {dimension_numbers = #tpu.dot_dimension_numbers<[1], [0], [0], [1], [0, 0, 1, 1], [], []>} : vector<16x16xbf16>, vector<16x64xbf16>, vector<16x64xf32> -> vector<16x64xf32>
    %92 = arith.addf %67, %91 : vector<16x64xf32>
    %93 = vector.extract_strided_slice %40 {offsets = [0, 32], sizes = [16, 16], strides = [1, 1]} : vector<16x64xf32> to vector<16x16xf32>
    %94 = arith.truncf %93 : vector<16x16xf32> to vector<16x16xbf16>
    %95 = vector.extract_strided_slice %41 {offsets = [0, 32], sizes = [16, 16], strides = [1, 1]} : vector<16x64xf32> to vector<16x16xf32>
    %96 = arith.truncf %95 : vector<16x16xf32> to vector<16x16xbf16>
    %97 = vector.extract_strided_slice %39 {offsets = [0, 32], sizes = [16, 16], strides = [1, 1]} : vector<16x64xf32> to vector<16x16xf32>
    %98 = arith.truncf %97 : vector<16x16xf32> to vector<16x16xbf16>
    %cst_38 = arith.constant dense<0.000000e+00> : vector<16x16xf32>
    %99 = tpu.matmul %94, %96, %cst_38 {dimension_numbers = #tpu.dot_dimension_numbers<[1], [1], [0], [0], [0, 0, 1, 0], [], []>} : vector<16x16xbf16>, vector<16x16xbf16>, vector<16x16xf32> -> vector<16x16xf32>
    %cst_39 = arith.constant 2.500000e-01 : f32
    %100 = vector.broadcast %cst_39 : f32 to vector<16x16xf32>
    %101 = arith.mulf %99, %100 : vector<16x16xf32>
    %cst_40 = arith.constant dense<0xFF800000> : vector<16xf32>
    %102 = vector.multi_reduction <maximumf>, %101, %cst_40 [1] : vector<16x16xf32> to vector<16xf32>
    %103 = vector.shape_cast %102 : vector<16xf32> to vector<16x1xf32>
    %104 = vector.broadcast %103 : vector<16x1xf32> to vector<16x16xf32>
    %105 = arith.subf %101, %104 : vector<16x16xf32>
    %106 = math.exp %105 : vector<16x16xf32>
    %cst_41 = arith.constant dense<0.000000e+00> : vector<16xf32>
    %107 = vector.multi_reduction <add>, %106, %cst_41 [1] : vector<16x16xf32> to vector<16xf32>
    %108 = vector.shape_cast %107 : vector<16xf32> to vector<16x1xf32>
    %109 = tpu.reciprocal %108 {approx = true} : vector<16x1xf32> -> vector<16x1xf32>
    %110 = vector.broadcast %109 : vector<16x1xf32> to vector<16x16xf32>
    %111 = arith.mulf %106, %110 : vector<16x16xf32>
    %112 = arith.truncf %111 : vector<16x16xf32> to vector<16x16xbf16>
    %cst_42 = arith.constant dense<0.000000e+00> : vector<16x16xf32>
    %113 = tpu.matmul %112, %98, %cst_42 {dimension_numbers = #tpu.dot_dimension_numbers<[1], [0], [0], [1], [0, 0, 1, 1], [], []>} : vector<16x16xbf16>, vector<16x16xbf16>, vector<16x16xf32> -> vector<16x16xf32>
    %114 = arith.truncf %113 : vector<16x16xf32> to vector<16x16xbf16>
    %115 = vector.extract_strided_slice %42 {offsets = [32, 0], sizes = [16, 64], strides = [1, 1]} : vector<64x64xbf16> to vector<16x64xbf16>
    %cst_43 = arith.constant dense<0.000000e+00> : vector<16x64xf32>
    %116 = tpu.matmul %114, %115, %cst_43 {dimension_numbers = #tpu.dot_dimension_numbers<[1], [0], [0], [1], [0, 0, 1, 1], [], []>} : vector<16x16xbf16>, vector<16x64xbf16>, vector<16x64xf32> -> vector<16x64xf32>
    %117 = arith.addf %92, %116 : vector<16x64xf32>
    %118 = vector.extract_strided_slice %40 {offsets = [0, 48], sizes = [16, 16], strides = [1, 1]} : vector<16x64xf32> to vector<16x16xf32>
    %119 = arith.truncf %118 : vector<16x16xf32> to vector<16x16xbf16>
    %120 = vector.extract_strided_slice %41 {offsets = [0, 48], sizes = [16, 16], strides = [1, 1]} : vector<16x64xf32> to vector<16x16xf32>
    %121 = arith.truncf %120 : vector<16x16xf32> to vector<16x16xbf16>
    %122 = vector.extract_strided_slice %39 {offsets = [0, 48], sizes = [16, 16], strides = [1, 1]} : vector<16x64xf32> to vector<16x16xf32>
    %123 = arith.truncf %122 : vector<16x16xf32> to vector<16x16xbf16>
    %cst_44 = arith.constant dense<0.000000e+00> : vector<16x16xf32>
    %124 = tpu.matmul %119, %121, %cst_44 {dimension_numbers = #tpu.dot_dimension_numbers<[1], [1], [0], [0], [0, 0, 1, 0], [], []>} : vector<16x16xbf16>, vector<16x16xbf16>, vector<16x16xf32> -> vector<16x16xf32>
    %cst_45 = arith.constant 2.500000e-01 : f32
    %125 = vector.broadcast %cst_45 : f32 to vector<16x16xf32>
    %126 = arith.mulf %124, %125 : vector<16x16xf32>
    %cst_46 = arith.constant dense<0xFF800000> : vector<16xf32>
    %127 = vector.multi_reduction <maximumf>, %126, %cst_46 [1] : vector<16x16xf32> to vector<16xf32>
    %128 = vector.shape_cast %127 : vector<16xf32> to vector<16x1xf32>
    %129 = vector.broadcast %128 : vector<16x1xf32> to vector<16x16xf32>
    %130 = arith.subf %126, %129 : vector<16x16xf32>
    %131 = math.exp %130 : vector<16x16xf32>
    %cst_47 = arith.constant dense<0.000000e+00> : vector<16xf32>
    %132 = vector.multi_reduction <add>, %131, %cst_47 [1] : vector<16x16xf32> to vector<16xf32>
    %133 = vector.shape_cast %132 : vector<16xf32> to vector<16x1xf32>
    %134 = tpu.reciprocal %133 {approx = true} : vector<16x1xf32> -> vector<16x1xf32>
    %135 = vector.broadcast %134 : vector<16x1xf32> to vector<16x16xf32>
    %136 = arith.mulf %131, %135 : vector<16x16xf32>
    %137 = arith.truncf %136 : vector<16x16xf32> to vector<16x16xbf16>
    %cst_48 = arith.constant dense<0.000000e+00> : vector<16x16xf32>
    %138 = tpu.matmul %137, %123, %cst_48 {dimension_numbers = #tpu.dot_dimension_numbers<[1], [0], [0], [1], [0, 0, 1, 1], [], []>} : vector<16x16xbf16>, vector<16x16xbf16>, vector<16x16xf32> -> vector<16x16xf32>
    %139 = arith.truncf %138 : vector<16x16xf32> to vector<16x16xbf16>
    %140 = vector.extract_strided_slice %42 {offsets = [48, 0], sizes = [16, 64], strides = [1, 1]} : vector<64x64xbf16> to vector<16x64xbf16>
    %cst_49 = arith.constant dense<0.000000e+00> : vector<16x64xf32>
    %141 = tpu.matmul %139, %140, %cst_49 {dimension_numbers = #tpu.dot_dimension_numbers<[1], [0], [0], [1], [0, 0, 1, 1], [], []>} : vector<16x16xbf16>, vector<16x64xbf16>, vector<16x64xf32> -> vector<16x64xf32>
    %142 = arith.addf %117, %141 : vector<16x64xf32>
    %143 = vector.broadcast %43 : vector<1x64xf32> to vector<16x64xf32>
    %144 = arith.addf %142, %143 : vector<16x64xf32>
    %c0_50 = arith.constant 0 : index
    %c0_51 = arith.constant 0 : index
    %145 = vector.load %arg11[%c0_50, %c0_51] : memref<1x64xf32, #tpu.memory_space<vmem>>, vector<1x64xf32>
    %c0_52 = arith.constant 0 : index
    %c0_53 = arith.constant 0 : index
    %146 = vector.load %arg12[%c0_52, %c0_53] : memref<1x64xf32, #tpu.memory_space<vmem>>, vector<1x64xf32>
    %cst_54 = arith.constant dense<0.000000e+00> : vector<16xf32>
    %147 = vector.multi_reduction <add>, %144, %cst_54 [1] : vector<16x64xf32> to vector<16xf32>
    %148 = vector.shape_cast %147 : vector<16xf32> to vector<16x1xf32>
    %cst_55 = arith.constant 6.400000e+01 : f32
    %149 = vector.broadcast %cst_55 : f32 to vector<16x1xf32>
    %150 = arith.divf %148, %149 : vector<16x1xf32>
    %151 = vector.broadcast %150 : vector<16x1xf32> to vector<16x64xf32>
    %152 = arith.subf %144, %151 : vector<16x64xf32>
    %153 = arith.mulf %152, %152 : vector<16x64xf32>
    %cst_56 = arith.constant dense<0.000000e+00> : vector<16xf32>
    %154 = vector.multi_reduction <add>, %153, %cst_56 [1] : vector<16x64xf32> to vector<16xf32>
    %155 = vector.shape_cast %154 : vector<16xf32> to vector<16x1xf32>
    %cst_57 = arith.constant 6.400000e+01 : f32
    %156 = vector.broadcast %cst_57 : f32 to vector<16x1xf32>
    %157 = arith.divf %155, %156 : vector<16x1xf32>
    %158 = vector.broadcast %150 : vector<16x1xf32> to vector<16x64xf32>
    %159 = arith.subf %144, %158 : vector<16x64xf32>
    %cst_58 = arith.constant 9.99999974E-6 : f32
    %160 = vector.broadcast %cst_58 : f32 to vector<16x1xf32>
    %161 = arith.addf %157, %160 : vector<16x1xf32>
    %162 = math.rsqrt %161 : vector<16x1xf32>
    %163 = vector.broadcast %162 : vector<16x1xf32> to vector<16x64xf32>
    %164 = arith.mulf %159, %163 : vector<16x64xf32>
    %165 = vector.broadcast %145 : vector<1x64xf32> to vector<16x64xf32>
    %166 = arith.mulf %164, %165 : vector<16x64xf32>
    %167 = vector.broadcast %146 : vector<1x64xf32> to vector<16x64xf32>
    %168 = arith.addf %166, %167 : vector<16x64xf32>
    %169 = arith.addf %1, %168 : vector<16x64xf32>
    %c0_59 = arith.constant 0 : index
    %c0_60 = arith.constant 0 : index
    %c0_61 = arith.constant 0 : index
    %170 = vector.load %arg13[%c0_59, %c0_60, %c0_61] : memref<1x16x64xf32, #tpu.memory_space<vmem>>, vector<1x16x64xf32>
    %171 = vector.shape_cast %170 : vector<1x16x64xf32> to vector<16x64xf32>
    %172 = vector.shape_cast %169 : vector<16x64xf32> to vector<1x16x64xf32>
    tpu.vector_store %arg13[%c0_59, %c0_60, %c0_61], %172 {strides = array<i32>} : memref<1x16x64xf32, #tpu.memory_space<vmem>>, vector<1x16x64xf32>,
    return
  }
  func.func @transform_0(%arg0: i32) -> (i32, i32, i32) {
    %c0_i32 = arith.constant 0 : i32
    %c0_i32_0 = arith.constant 0 : i32
    %c0_i32_1 = arith.constant 0 : i32
    return %arg0, %c0_i32, %c0_i32_0 : i32, i32, i32
  }
  func.func @transform_1(%arg0: i32) -> (i32, i32) {
    %c0_i32 = arith.constant 0 : i32
    %c0_i32_0 = arith.constant 0 : i32
    %c0_i32_1 = arith.constant 0 : i32
    return %c0_i32, %c0_i32_0 : i32, i32
  }
  func.func @transform_2(%arg0: i32) -> (i32, i32) {
    %c0_i32 = arith.constant 0 : i32
    %c0_i32_0 = arith.constant 0 : i32
    %c0_i32_1 = arith.constant 0 : i32
    return %c0_i32, %c0_i32_0 : i32, i32
  }
  func.func @transform_3(%arg0: i32) -> (i32, i32) {
    %c0_i32 = arith.constant 0 : i32
    %c0_i32_0 = arith.constant 0 : i32
    %c0_i32_1 = arith.constant 0 : i32
    return %c0_i32, %c0_i32_0 : i32, i32
  }
  func.func @transform_4(%arg0: i32) -> (i32, i32) {
    %c0_i32 = arith.constant 0 : i32
    %c0_i32_0 = arith.constant 0 : i32
    %c0_i32_1 = arith.constant 0 : i32
    return %c0_i32, %c0_i32_0 : i32, i32
  }
  func.func @transform_5(%arg0: i32) -> (i32, i32) {
    %c0_i32 = arith.constant 0 : i32
    %c0_i32_0 = arith.constant 0 : i32
    %c0_i32_1 = arith.constant 0 : i32
    return %c0_i32, %c0_i32_0 : i32, i32
  }
  func.func @transform_6(%arg0: i32) -> (i32, i32) {
    %c0_i32 = arith.constant 0 : i32
    %c0_i32_0 = arith.constant 0 : i32
    %c0_i32_1 = arith.constant 0 : i32
    return %c0_i32, %c0_i32_0 : i32, i32
  }
  func.func @transform_7(%arg0: i32) -> (i32, i32) {
    %c0_i32 = arith.constant 0 : i32
    %c0_i32_0 = arith.constant 0 : i32
    %c0_i32_1 = arith.constant 0 : i32
    return %c0_i32, %c0_i32_0 : i32, i32
  }
  func.func @transform_8(%arg0: i32) -> (i32, i32) {
    %c0_i32 = arith.constant 0 : i32
    %c0_i32_0 = arith.constant 0 : i32
    %c0_i32_1 = arith.constant 0 : i32
    return %c0_i32, %c0_i32_0 : i32, i32
  }
  func.func @transform_9(%arg0: i32) -> (i32, i32) {
    %c0_i32 = arith.constant 0 : i32
    %c0_i32_0 = arith.constant 0 : i32
    %c0_i32_1 = arith.constant 0 : i32
    return %c0_i32, %c0_i32_0 : i32, i32
  }
  func.func @transform_10(%arg0: i32) -> (i32, i32) {
    %c0_i32 = arith.constant 0 : i32
    %c0_i32_0 = arith.constant 0 : i32
    %c0_i32_1 = arith.constant 0 : i32
    return %c0_i32, %c0_i32_0 : i32, i32
  }
  func.func @transform_11(%arg0: i32) -> (i32, i32) {
    %c0_i32 = arith.constant 0 : i32
    %c0_i32_0 = arith.constant 0 : i32
    %c0_i32_1 = arith.constant 0 : i32
    return %c0_i32, %c0_i32_0 : i32, i32
  }
  func.func @transform_12(%arg0: i32) -> (i32, i32, i32) {
    %c0_i32 = arith.constant 0 : i32
    %c0_i32_0 = arith.constant 0 : i32
    %c0_i32_1 = arith.constant 0 : i32
    return %arg0, %c0_i32, %c0_i32_0 : i32, i32, i32
  }
}

module attributes {stable_mosaic.version = 11 : i64} {
  func.func @_final_norm_kernel(%arg0: i32, %arg1: memref<1x16x64xf32, #tpu.memory_space<vmem>>, %arg2: memref<1x64xf32, #tpu.memory_space<vmem>>, %arg3: memref<1x64xf32, #tpu.memory_space<vmem>>, %arg4: memref<1x16x64xf32, #tpu.memory_space<vmem>>) attributes {dimension_semantics = [#tpu.dimension_semantics<parallel>], iteration_bounds = array<i64: 2>, scalar_prefetch = 0 : i64, scratch_operands = 0 : i64, tpu.core_type = #tpu.core_type<tc>, window_params = [{transform_indices = @transform_0, window_bounds = array<i64: 1, 16, 64>}, {pipeline_mode = #tpu.pipeline_mode<synchronous>, transform_indices = @transform_1, window_bounds = array<i64: 1, 64>}, {pipeline_mode = #tpu.pipeline_mode<synchronous>, transform_indices = @transform_2, window_bounds = array<i64: 1, 64>}, {transform_indices = @transform_3, window_bounds = array<i64: 1, 16, 64>}]} {
    %c0 = arith.constant 0 : index
    %c0_0 = arith.constant 0 : index
    %c0_1 = arith.constant 0 : index
    %0 = vector.load %arg1[%c0, %c0_0, %c0_1] : memref<1x16x64xf32, #tpu.memory_space<vmem>>, vector<1x16x64xf32>
    %1 = vector.shape_cast %0 : vector<1x16x64xf32> to vector<16x64xf32>
    %c0_2 = arith.constant 0 : index
    %c0_3 = arith.constant 0 : index
    %2 = vector.load %arg2[%c0_2, %c0_3] : memref<1x64xf32, #tpu.memory_space<vmem>>, vector<1x64xf32>
    %c0_4 = arith.constant 0 : index
    %c0_5 = arith.constant 0 : index
    %3 = vector.load %arg3[%c0_4, %c0_5] : memref<1x64xf32, #tpu.memory_space<vmem>>, vector<1x64xf32>
    %cst = arith.constant dense<0.000000e+00> : vector<16xf32>
    %4 = vector.multi_reduction <add>, %1, %cst [1] : vector<16x64xf32> to vector<16xf32>
    %5 = vector.shape_cast %4 : vector<16xf32> to vector<16x1xf32>
    %cst_6 = arith.constant 6.400000e+01 : f32
    %6 = vector.broadcast %cst_6 : f32 to vector<16x1xf32>
    %7 = arith.divf %5, %6 : vector<16x1xf32>
    %8 = vector.broadcast %7 : vector<16x1xf32> to vector<16x64xf32>
    %9 = arith.subf %1, %8 : vector<16x64xf32>
    %10 = arith.mulf %9, %9 : vector<16x64xf32>
    %cst_7 = arith.constant dense<0.000000e+00> : vector<16xf32>
    %11 = vector.multi_reduction <add>, %10, %cst_7 [1] : vector<16x64xf32> to vector<16xf32>
    %12 = vector.shape_cast %11 : vector<16xf32> to vector<16x1xf32>
    %cst_8 = arith.constant 6.400000e+01 : f32
    %13 = vector.broadcast %cst_8 : f32 to vector<16x1xf32>
    %14 = arith.divf %12, %13 : vector<16x1xf32>
    %15 = vector.broadcast %7 : vector<16x1xf32> to vector<16x64xf32>
    %16 = arith.subf %1, %15 : vector<16x64xf32>
    %cst_9 = arith.constant 9.99999974E-6 : f32
    %17 = vector.broadcast %cst_9 : f32 to vector<16x1xf32>
    %18 = arith.addf %14, %17 : vector<16x1xf32>
    %19 = math.rsqrt %18 : vector<16x1xf32>
    %20 = vector.broadcast %19 : vector<16x1xf32> to vector<16x64xf32>
    %21 = arith.mulf %16, %20 : vector<16x64xf32>
    %22 = vector.broadcast %2 : vector<1x64xf32> to vector<16x64xf32>
    %23 = arith.mulf %21, %22 : vector<16x64xf32>
    %24 = vector.broadcast %3 : vector<1x64xf32> to vector<16x64xf32>
    %25 = arith.addf %23, %24 : vector<16x64xf32>
    %c0_10 = arith.constant 0 : index
    %c0_11 = arith.constant 0 : index
    %c0_12 = arith.constant 0 : index
    %26 = vector.load %arg4[%c0_10, %c0_11, %c0_12] : memref<1x16x64xf32, #tpu.memory_space<vmem>>, vector<1x16x64xf32>
    %27 = vector.shape_cast %26 : vector<1x16x64xf32> to vector<16x64xf32>
    %28 = vector.shape_cast %25 : vector<16x64xf32> to vector<1x16x64xf32>
    tpu.vector_store %arg4[%c0_10, %c0_11, %c0_12], %28 {strides = array<i32>} : memref<1x16x64xf32, #tpu.memory_space<vmem>>, vector<1x16x64xf32>,
    return
  }
  func.func @transform_0(%arg0: i32) -> (i32, i32, i32) {
    %c0_i32 = arith.constant 0 : i32
    %c0_i32_0 = arith.constant 0 : i32
    %c0_i32_1 = arith.constant 0 : i32
    return %arg0, %c0_i32, %c0_i32_0 : i32, i32, i32
  }
  func.func @transform_1(%arg0: i32) -> (i32, i32) {
    %c0_i32 = arith.constant 0 : i32
    %c0_i32_0 = arith.constant 0 : i32
    %c0_i32_1 = arith.constant 0 : i32
    return %c0_i32, %c0_i32_0 : i32, i32
  }
  func.func @transform_2(%arg0: i32) -> (i32, i32) {
    %c0_i32 = arith.constant 0 : i32
    %c0_i32_0 = arith.constant 0 : i32
    %c0_i32_1 = arith.constant 0 : i32
    return %c0_i32, %c0_i32_0 : i32, i32
  }
  func.func @transform_3(%arg0: i32) -> (i32, i32, i32) {
    %c0_i32 = arith.constant 0 : i32
    %c0_i32_0 = arith.constant 0 : i32
    %c0_i32_1 = arith.constant 0 : i32
    return %arg0, %c0_i32, %c0_i32_0 : i32, i32, i32
  }
}

module attributes {stable_mosaic.version = 11 : i64} {
  func.func @_ffn_block_kernel(%arg0: i32, %arg1: memref<1x16x64xf32, #tpu.memory_space<vmem>>, %arg2: memref<1x64xf32, #tpu.memory_space<vmem>>, %arg3: memref<1x64xf32, #tpu.memory_space<vmem>>, %arg4: memref<64x128xbf16, #tpu.memory_space<vmem>>, %arg5: memref<1x128xf32, #tpu.memory_space<vmem>>, %arg6: memref<1x128xf32, #tpu.memory_space<vmem>>, %arg7: memref<1x128xf32, #tpu.memory_space<vmem>>, %arg8: memref<128x64xbf16, #tpu.memory_space<vmem>>, %arg9: memref<1x64xf32, #tpu.memory_space<vmem>>, %arg10: memref<1x16x64xf32, #tpu.memory_space<vmem>>) attributes {dimension_semantics = [#tpu.dimension_semantics<parallel>], iteration_bounds = array<i64: 2>, scalar_prefetch = 0 : i64, scratch_operands = 0 : i64, tpu.core_type = #tpu.core_type<tc>, window_params = [{transform_indices = @transform_0, window_bounds = array<i64: 1, 16, 64>}, {pipeline_mode = #tpu.pipeline_mode<synchronous>, transform_indices = @transform_1, window_bounds = array<i64: 1, 64>}, {pipeline_mode = #tpu.pipeline_mode<synchronous>, transform_indices = @transform_2, window_bounds = array<i64: 1, 64>}, {pipeline_mode = #tpu.pipeline_mode<synchronous>, transform_indices = @transform_3, window_bounds = array<i64: 64, 128>}, {pipeline_mode = #tpu.pipeline_mode<synchronous>, transform_indices = @transform_4, window_bounds = array<i64: 1, 128>}, {pipeline_mode = #tpu.pipeline_mode<synchronous>, transform_indices = @transform_5, window_bounds = array<i64: 1, 128>}, {pipeline_mode = #tpu.pipeline_mode<synchronous>, transform_indices = @transform_6, window_bounds = array<i64: 1, 128>}, {pipeline_mode = #tpu.pipeline_mode<synchronous>, transform_indices = @transform_7, window_bounds = array<i64: 128, 64>}, {pipeline_mode = #tpu.pipeline_mode<synchronous>, transform_indices = @transform_8, window_bounds = array<i64: 1, 64>}, {transform_indices = @transform_9, window_bounds = array<i64: 1, 16, 64>}]} {
    %c0 = arith.constant 0 : index
    %c0_0 = arith.constant 0 : index
    %c0_1 = arith.constant 0 : index
    %0 = vector.load %arg1[%c0, %c0_0, %c0_1] : memref<1x16x64xf32, #tpu.memory_space<vmem>>, vector<1x16x64xf32>
    %1 = vector.shape_cast %0 : vector<1x16x64xf32> to vector<16x64xf32>
    %c0_2 = arith.constant 0 : index
    %c0_3 = arith.constant 0 : index
    %2 = vector.load %arg2[%c0_2, %c0_3] : memref<1x64xf32, #tpu.memory_space<vmem>>, vector<1x64xf32>
    %c0_4 = arith.constant 0 : index
    %c0_5 = arith.constant 0 : index
    %3 = vector.load %arg3[%c0_4, %c0_5] : memref<1x64xf32, #tpu.memory_space<vmem>>, vector<1x64xf32>
    %cst = arith.constant dense<0.000000e+00> : vector<16xf32>
    %4 = vector.multi_reduction <add>, %1, %cst [1] : vector<16x64xf32> to vector<16xf32>
    %5 = vector.shape_cast %4 : vector<16xf32> to vector<16x1xf32>
    %cst_6 = arith.constant 6.400000e+01 : f32
    %6 = vector.broadcast %cst_6 : f32 to vector<16x1xf32>
    %7 = arith.divf %5, %6 : vector<16x1xf32>
    %8 = vector.broadcast %7 : vector<16x1xf32> to vector<16x64xf32>
    %9 = arith.subf %1, %8 : vector<16x64xf32>
    %10 = arith.mulf %9, %9 : vector<16x64xf32>
    %cst_7 = arith.constant dense<0.000000e+00> : vector<16xf32>
    %11 = vector.multi_reduction <add>, %10, %cst_7 [1] : vector<16x64xf32> to vector<16xf32>
    %12 = vector.shape_cast %11 : vector<16xf32> to vector<16x1xf32>
    %cst_8 = arith.constant 6.400000e+01 : f32
    %13 = vector.broadcast %cst_8 : f32 to vector<16x1xf32>
    %14 = arith.divf %12, %13 : vector<16x1xf32>
    %15 = vector.broadcast %7 : vector<16x1xf32> to vector<16x64xf32>
    %16 = arith.subf %1, %15 : vector<16x64xf32>
    %cst_9 = arith.constant 9.99999974E-6 : f32
    %17 = vector.broadcast %cst_9 : f32 to vector<16x1xf32>
    %18 = arith.addf %14, %17 : vector<16x1xf32>
    %19 = math.rsqrt %18 : vector<16x1xf32>
    %20 = vector.broadcast %19 : vector<16x1xf32> to vector<16x64xf32>
    %21 = arith.mulf %16, %20 : vector<16x64xf32>
    %22 = vector.broadcast %2 : vector<1x64xf32> to vector<16x64xf32>
    %23 = arith.mulf %21, %22 : vector<16x64xf32>
    %24 = vector.broadcast %3 : vector<1x64xf32> to vector<16x64xf32>
    %25 = arith.addf %23, %24 : vector<16x64xf32>
    %26 = arith.truncf %25 : vector<16x64xf32> to vector<16x64xbf16>
    %c0_10 = arith.constant 0 : index
    %c0_11 = arith.constant 0 : index
    %27 = vector.load %arg4[%c0_10, %c0_11] : memref<64x128xbf16, #tpu.memory_space<vmem>>, vector<64x128xbf16>
    %cst_12 = arith.constant dense<0.000000e+00> : vector<16x128xf32>
    %28 = tpu.matmul %26, %27, %cst_12 {dimension_numbers = #tpu.dot_dimension_numbers<[1], [0], [0], [1], [0, 0, 1, 1], [], []>} : vector<16x64xbf16>, vector<64x128xbf16>, vector<16x128xf32> -> vector<16x128xf32>
    %c0_13 = arith.constant 0 : index
    %c0_14 = arith.constant 0 : index
    %29 = vector.load %arg5[%c0_13, %c0_14] : memref<1x128xf32, #tpu.memory_space<vmem>>, vector<1x128xf32>
    %30 = vector.broadcast %29 : vector<1x128xf32> to vector<16x128xf32>
    %31 = arith.addf %28, %30 : vector<16x128xf32>
    %cst_15 = arith.constant 0.000000e+00 : f32
    %32 = vector.broadcast %cst_15 : f32 to vector<16x128xf32>
    %33 = arith.maximumf %31, %32 : vector<16x128xf32>
    %c0_16 = arith.constant 0 : index
    %c0_17 = arith.constant 0 : index
    %34 = vector.load %arg6[%c0_16, %c0_17] : memref<1x128xf32, #tpu.memory_space<vmem>>, vector<1x128xf32>
    %c0_18 = arith.constant 0 : index
    %c0_19 = arith.constant 0 : index
    %35 = vector.load %arg7[%c0_18, %c0_19] : memref<1x128xf32, #tpu.memory_space<vmem>>, vector<1x128xf32>
    %cst_20 = arith.constant dense<0.000000e+00> : vector<16xf32>
    %36 = vector.multi_reduction <add>, %33, %cst_20 [1] : vector<16x128xf32> to vector<16xf32>
    %37 = vector.shape_cast %36 : vector<16xf32> to vector<16x1xf32>
    %cst_21 = arith.constant 1.280000e+02 : f32
    %38 = vector.broadcast %cst_21 : f32 to vector<16x1xf32>
    %39 = arith.divf %37, %38 : vector<16x1xf32>
    %40 = vector.broadcast %39 : vector<16x1xf32> to vector<16x128xf32>
    %41 = arith.subf %33, %40 : vector<16x128xf32>
    %42 = arith.mulf %41, %41 : vector<16x128xf32>
    %cst_22 = arith.constant dense<0.000000e+00> : vector<16xf32>
    %43 = vector.multi_reduction <add>, %42, %cst_22 [1] : vector<16x128xf32> to vector<16xf32>
    %44 = vector.shape_cast %43 : vector<16xf32> to vector<16x1xf32>
    %cst_23 = arith.constant 1.280000e+02 : f32
    %45 = vector.broadcast %cst_23 : f32 to vector<16x1xf32>
    %46 = arith.divf %44, %45 : vector<16x1xf32>
    %47 = vector.broadcast %39 : vector<16x1xf32> to vector<16x128xf32>
    %48 = arith.subf %33, %47 : vector<16x128xf32>
    %cst_24 = arith.constant 9.99999974E-6 : f32
    %49 = vector.broadcast %cst_24 : f32 to vector<16x1xf32>
    %50 = arith.addf %46, %49 : vector<16x1xf32>
    %51 = math.rsqrt %50 : vector<16x1xf32>
    %52 = vector.broadcast %51 : vector<16x1xf32> to vector<16x128xf32>
    %53 = arith.mulf %48, %52 : vector<16x128xf32>
    %54 = vector.broadcast %34 : vector<1x128xf32> to vector<16x128xf32>
    %55 = arith.mulf %53, %54 : vector<16x128xf32>
    %56 = vector.broadcast %35 : vector<1x128xf32> to vector<16x128xf32>
    %57 = arith.addf %55, %56 : vector<16x128xf32>
    %58 = arith.truncf %57 : vector<16x128xf32> to vector<16x128xbf16>
    %c0_25 = arith.constant 0 : index
    %c0_26 = arith.constant 0 : index
    %59 = vector.load %arg8[%c0_25, %c0_26] : memref<128x64xbf16, #tpu.memory_space<vmem>>, vector<128x64xbf16>
    %cst_27 = arith.constant dense<0.000000e+00> : vector<16x64xf32>
    %60 = tpu.matmul %58, %59, %cst_27 {dimension_numbers = #tpu.dot_dimension_numbers<[1], [0], [0], [1], [0, 0, 1, 1], [], []>} : vector<16x128xbf16>, vector<128x64xbf16>, vector<16x64xf32> -> vector<16x64xf32>
    %c0_28 = arith.constant 0 : index
    %c0_29 = arith.constant 0 : index
    %61 = vector.load %arg9[%c0_28, %c0_29] : memref<1x64xf32, #tpu.memory_space<vmem>>, vector<1x64xf32>
    %62 = vector.broadcast %61 : vector<1x64xf32> to vector<16x64xf32>
    %63 = arith.addf %60, %62 : vector<16x64xf32>
    %64 = arith.addf %1, %63 : vector<16x64xf32>
    %c0_30 = arith.constant 0 : index
    %c0_31 = arith.constant 0 : index
    %c0_32 = arith.constant 0 : index
    %65 = vector.load %arg10[%c0_30, %c0_31, %c0_32] : memref<1x16x64xf32, #tpu.memory_space<vmem>>, vector<1x16x64xf32>
    %66 = vector.shape_cast %65 : vector<1x16x64xf32> to vector<16x64xf32>
    %67 = vector.shape_cast %64 : vector<16x64xf32> to vector<1x16x64xf32>
    tpu.vector_store %arg10[%c0_30, %c0_31, %c0_32], %67 {strides = array<i32>} : memref<1x16x64xf32, #tpu.memory_space<vmem>>, vector<1x16x64xf32>,
    return
  }
  func.func @transform_0(%arg0: i32) -> (i32, i32, i32) {
    %c0_i32 = arith.constant 0 : i32
    %c0_i32_0 = arith.constant 0 : i32
    %c0_i32_1 = arith.constant 0 : i32
    return %arg0, %c0_i32, %c0_i32_0 : i32, i32, i32
  }
  func.func @transform_1(%arg0: i32) -> (i32, i32) {
    %c0_i32 = arith.constant 0 : i32
    %c0_i32_0 = arith.constant 0 : i32
    %c0_i32_1 = arith.constant 0 : i32
    return %c0_i32, %c0_i32_0 : i32, i32
  }
  func.func @transform_2(%arg0: i32) -> (i32, i32) {
    %c0_i32 = arith.constant 0 : i32
    %c0_i32_0 = arith.constant 0 : i32
    %c0_i32_1 = arith.constant 0 : i32
    return %c0_i32, %c0_i32_0 : i32, i32
  }
  func.func @transform_3(%arg0: i32) -> (i32, i32) {
    %c0_i32 = arith.constant 0 : i32
    %c0_i32_0 = arith.constant 0 : i32
    %c0_i32_1 = arith.constant 0 : i32
    return %c0_i32, %c0_i32_0 : i32, i32
  }
  func.func @transform_4(%arg0: i32) -> (i32, i32) {
    %c0_i32 = arith.constant 0 : i32
    %c0_i32_0 = arith.constant 0 : i32
    %c0_i32_1 = arith.constant 0 : i32
    return %c0_i32, %c0_i32_0 : i32, i32
  }
  func.func @transform_5(%arg0: i32) -> (i32, i32) {
    %c0_i32 = arith.constant 0 : i32
    %c0_i32_0 = arith.constant 0 : i32
    %c0_i32_1 = arith.constant 0 : i32
    return %c0_i32, %c0_i32_0 : i32, i32
  }
  func.func @transform_6(%arg0: i32) -> (i32, i32) {
    %c0_i32 = arith.constant 0 : i32
    %c0_i32_0 = arith.constant 0 : i32
    %c0_i32_1 = arith.constant 0 : i32
    return %c0_i32, %c0_i32_0 : i32, i32
  }
  func.func @transform_7(%arg0: i32) -> (i32, i32) {
    %c0_i32 = arith.constant 0 : i32
    %c0_i32_0 = arith.constant 0 : i32
    %c0_i32_1 = arith.constant 0 : i32
    return %c0_i32, %c0_i32_0 : i32, i32
  }
  func.func @transform_8(%arg0: i32) -> (i32, i32) {
    %c0_i32 = arith.constant 0 : i32
    %c0_i32_0 = arith.constant 0 : i32
    %c0_i32_1 = arith.constant 0 : i32
    return %c0_i32, %c0_i32_0 : i32, i32
  }
  func.func @transform_9(%arg0: i32) -> (i32, i32, i32) {
    %c0_i32 = arith.constant 0 : i32
    %c0_i32_0 = arith.constant 0 : i32
    %c0_i32_1 = arith.constant 0 : i32
    return %arg0, %c0_i32, %c0_i32_0 : i32, i32, i32
  }
}

</mosaic_0001>

<bundles_post_ra>
// kernel: decoder_forward.13
= control target key start
LH: loop header
LB: loop body
LE: loop exit
PB: predicated region body
PF: predicated region fallthrough
CT: control target
= control target key end

     0   :  { %8 = vsyncpa [#allocation3], 0  ;;  %s895_s0 = inlined_call_operand.hbm [shape: f32[2,16,64], index: 0, kind: input, shape index: {}]   ;;  %s896_s1 = inlined_call_operand.hbm [shape: f32[1,64], index: 1, kind: input, shape index: {}]   ;;  %s897_s2 = inlined_call_operand.hbm [shape: f32[1,64], index: 2, kind: input, shape index: {}]   ;;  %s898_s3 = inlined_call_operand.hbm [shape: f32[2,16,64], index: 3, kind: output, shape index: {}]  }
   0x1   :  { %10 = vsyncpa [#allocation3 + $0x1], 0 }
   0x2   :  { %11 = vsyncpa [#allocation6], 0 }
   0x3   :  { %12 = vsyncpa [#allocation4], 0 }
   0x4   :  { %14 = vsyncpa [#allocation4 + $0x1], 0  ;;  %s653_s12 = smov 0   ;;  %s655_s13 = smov 0  }
   0x5   :  { %s657_s14 = smov 0   ;;  %s659_s15 = smov 0  }
   0x6 LB: > { %s674_s16 = sadd.s32 4294967295, %s623_s15   ;;  %s370_s17 = sadd.s32 4294967294, %s623_s15   ;;  %s623_s15 = sphi %s659_s15, %s923_s15   ;;  %s619_s14 = sphi %s657_s14, %s922_s14   ;;  %s615_s13 = sphi %s655_s13, %s921_s13   ;;  %s611_s12 = sphi %s653_s12, %s920_s12  }
   0x7   : > { %s678_s18 = sadd.s32 1, %s623_s15   ;;  %s27_s19 = sadd.s32 1, %s619_s14 }
   0x8   : > { %s24_s20 = ssub.s32 %s623_s15, %s678_s18  ;;  %p34_p0 = scmp.ne.s32.totalorder %s619_s14, %s615_s13 }
   0x9   : > { %p25_p1 = scmp.eq.s32.totalorder %s24_s20, 0  ;;  %p35_p2 = scmp.eq.s32.totalorder %s623_s15, 0 }
   0xa   : > { %p40_p3 = scmp.ne.s32.totalorder %s615_s13, %s611_s12  ;;  %p899_p4 = scmp.eq.s32.totalorder %s674_s16, 0 }
   0xb   : > { %s690_s21 = scalar_select %p25_p1, %s619_s14, %s27_s19  }
   0xc   : > { %p692_p5 = por %p35_p2, %p34_p0  ;;  %p698_p6 = por %p899_p4, %p40_p3 }
   0xd   : > { %p106_p7 = scmp.eq.s32.totalorder %s674_s16, 1  ;;  %p112_p8 = scmp.eq.s32.totalorder %s370_s17, 1 }
   0xe   : > { %s905_s23 = scalar_select %p698_p6, 1, 0 }
   0xf   : > { %p371_p9 = scmp.ge.s32.totalorder %s623_s15, 1  ;;  %p119_p10 = scmp.lt.s32.totalorder %s623_s15, 3 }
  0x10   : > { %p705_p11 = por %p106_p7, %p34_p0  ;;  %p709_p12 = por %p112_p8, %p40_p3 }
  0x11   : > { %p713_p13 = pnand %p371_p9, %p119_p10  ;;  %s625_s27 = smov [#allocation5]  }
  0x12   : > { %s906_s24 = scalar_select %p705_p11, 1, 0 }
  0x13   : > { %s907_s25 = scalar_select %p709_p12, 1, 0 }
  0x14   : > { %s908_s26 = scalar_select %p713_p13, 1, 0 }
  0x15   : > { %p404_p2 = pneg %p713_p13  ;;  %s132_s28 = sshll.u32 %s625_s27, 4  ;;  %s133_s28 = int_to_ptr.vmem [resolvable:$true] %s132_s28 }
  0x16   : > { %p421_p4 = scmp.lt.s32.totalorder %s623_s15, 2  ;;  %p909_p0 = scmp.eq.s32.totalorder %s674_s16, 0 }
  0x17   : > { %s626_s4 = smov [#allocation7]   ;;  %s467_s8 = scalar_lea.hbm %s896_s1, 16 }
  0x18   : > { %p723_p7 = pnand %p404_p2, %p909_p0  ;;  %p729_p3 = pnand %p421_p4, %p692_p5 }
  0x19   : > { %s143_s5 = sshll.u32 %s626_s4, 4  ;;  %p468_p8 = scmp.ne.s32.totalorder %s896_s1, %s467_s8  ;;  %s733_s5 = int_to_ptr.vmem [resolvable:$true] %s143_s5 }
  0x1a   : > { %s911_s30 = scalar_select %p729_p3, 1, 0 }
  0x1b   : > { %p469_p9 = pneg %p723_p7  ;;  %p474_p10 = scmp.lt.u32.totalorder %s467_s8, %s896_s1 }
  0x1d   : > { %p470_p4 = pnand %p469_p9, %p468_p8 }
  0x1f   : > { %p471_p5 = pneg %p470_p4 }
  0x21   : > { %p476_p2 = pnand %p474_p10, %p471_p5 }
  0x23   : > { %479 = shalt.err (!%p476_p2)
}
  0x24   : > { %s480_s19 = scalar_lea.vmem %s133_s28, 16  ;;  %s487_s20 = scalar_lea.vmem %s133_s28, 32 }
  0x25   : > { %p481_p0 = scmp.ne.s32.totalorder %s133_s28, %s480_s19  ;;  %p488_p11 = scmp.lt.s32.totalorder %s133_s28, %s133_s28 }
  0x26   : > { %p489_p6 = scmp.lt.s32.totalorder %s487_s20, %s480_s19 }
  0x27   : > { %p483_p1 = pnand %p481_p0, %p469_p9 }
  0x28   : > { %p490_p13 = por %p489_p6, %p488_p11 }
  0x29   : > { %p484_p12 = pneg %p483_p1 }
  0x2b   : > { %p491_p3 = pnand %p490_p13, %p484_p12 }
  0x2d   : > { %494 = shalt.err (!%p491_p3)
}
  0x2e   : > { %407 = dma.hbm_to_vmem [thread:$0]  (!%p723_p7), %s896_s1, 16, %s133_s28, [#allocation6]  }
  0x2f   : > { %s154_s4 = sand.u32 1, %s619_s14   ;;  %s495_s8 = scalar_lea.hbm %s897_s2, 16 }
  0x30   : > { %p496_p1 = scmp.ne.s32.totalorder %s897_s2, %s495_s8  ;;  %p502_p12 = scmp.lt.u32.totalorder %s495_s8, %s897_s2 }
  0x32   : > { %p498_p6 = pnand %p496_p1, %p469_p9 }
  0x34   : > { %p499_p11 = pneg %p498_p6 }
  0x36   : > { %p504_p13 = pnand %p502_p12, %p499_p11 }
  0x38   : > { %507 = shalt.err (!%p504_p13)
}
  0x39   : > { %s508_s28 = scalar_lea.vmem %s733_s5, 16  ;;  %s515_s19 = scalar_lea.vmem %s733_s5, 32 }
  0x3a   : > { %p509_p3 = scmp.ne.s32.totalorder %s733_s5, %s508_s28  ;;  %p516_p5 = scmp.lt.s32.totalorder %s733_s5, %s733_s5 }
  0x3b   : > { %p517_p10 = scmp.lt.s32.totalorder %s515_s19, %s508_s28 }
  0x3c   : > { %p511_p8 = pnand %p509_p3, %p469_p9 }
  0x3d   : > { %p518_p2 = por %p517_p10, %p516_p5 }
  0x3e   : > { %p512_p4 = pneg %p511_p8 }
  0x40   : > { %p519_p0 = pnand %p518_p2, %p512_p4 }
  0x42   : > { %522 = shalt.err (!%p519_p0)
}
  0x43   : > { %410 = dma.hbm_to_vmem [thread:$0]  (!%p723_p7), %s897_s2, 16, %s733_s5, [#allocation6]  }
  0x44   : > { %s375_s27 = sshll.u32 %s154_s4, 4  ;;  %s390_s6 = sshll.u32 %s623_s15, 8 }
  0x45   : > { %s788_s9 = scalar_lea.hbm %s895_s0, %s390_s6  ;;  %s158_s29 = scalar_lea.vmem [#allocation2], %s375_s27 }
  0x46   : > { %s165_s10 = sshll.u32 %s158_s29, 4  ;;  %s792_s11 = scalar_lea.sflag [#allocation3], %s154_s4  ;;  %s790_s10 = int_to_ptr.vmem [resolvable:$true] %s165_s10 }
  0x47   : > { %s523_s17 = scalar_lea.hbm %s788_s9, 256  ;;  %p912_p7 = scmp.ne.s32.totalorder %s911_s30, 0 }
  0x48   : > { %p524_p9 = scmp.ne.s32.totalorder %s788_s9, %s523_s17  ;;  %s528_s19 = scalar_lea.hbm %s895_s0, 512 }
  0x49   : > { %p525_p1 = pneg %p912_p7  ;;  %p529_p12 = scmp.lt.u32.totalorder %s788_s9, %s895_s0 }
  0x4a   : > { %p530_p13 = scmp.lt.u32.totalorder %s528_s19, %s523_s17  ;;  %p532_p8 = scmp.lt.u32.totalorder %s523_s17, %s788_s9 }
  0x4b   : > { %p526_p6 = pnand %p525_p1, %p524_p9 }
  0x4c   : > { %p531_p3 = por %p530_p13, %p529_p12 }
  0x4d   : > { %p527_p11 = pneg %p526_p6 }
  0x4e   : > { %p533_p4 = por %p532_p8, %p531_p3 }
  0x50   : > { %p534_p5 = pnand %p533_p4, %p527_p11 }
  0x52   : > { %537 = shalt.err (!%p534_p5)
}
  0x53   : > { %s538_s4 = scalar_lea.vmem %s790_s10, 256  ;;  %s627_s27 = smov [#allocation2]  }
  0x54   : > { %p539_p10 = scmp.ne.s32.totalorder %s790_s10, %s538_s4  ;;  %s543_s6 = sshll.u32 %s627_s27, 4  ;;  %s544_s6 = int_to_ptr.vmem [resolvable:$false] %s543_s6 }
  0x55   : > { %s545_s7 = scalar_lea.vmem %s544_s6, 512  ;;  %p546_p9 = scmp.lt.s32.totalorder %s790_s10, %s544_s6 }
  0x56   : > { %p541_p2 = pnand %p539_p10, %p525_p1  ;;  %p547_p6 = scmp.lt.s32.totalorder %s545_s7, %s538_s4 }
  0x58   : > { %p542_p0 = pneg %p541_p2  ;;  %p548_p12 = por %p547_p6, %p546_p9 }
  0x5a   : > { %p549_p13 = pnand %p548_p12, %p542_p0 }
  0x5c   : > { %552 = shalt.err (!%p549_p13)
}
  0x5d   : > { %s628_s8 = smov 128   ;;  %s629_s29 = smov 8  }
  0x5e   : > { %414 = dma.hbm_to_vmem [thread:$0]  (!%p912_p7), %s788_s9, 256, %s790_s10, %s792_s11, %s628_s8, %s628_s8, %s629_s29  }
  0x5f   : > { %p913_p1 = scmp.ne.s32.totalorder %s908_s26, 0 }
  0x60   : > { %s823_s17 = sand.u32 (!%p913_p1), 1, %s615_s13   ;;  %p914_p11 = scmp.ne.s32.totalorder (!%p913_p1), %s905_s23, 0 }
  0x61   : > { %177 = sbr.rel (%p913_p1) target bundleno = 441 (0x1b9), region = 32  ;;  %s379_s5 = sshll.u32 (!%p913_p1), %s823_s17, 4 }
  0x62   : > { %s180_s28 = scalar_lea.sflag (!%p913_p1), [#allocation3], %s823_s17  ;;  %s183_s19 = scalar_lea.vmem (!%p913_p1), [#allocation2], %s379_s5 }
  0x68   : > { %598 = dma.done.wait (%p914_p11), %s180_s28, 256  }
  0x69   : > { %600 = vsyncadd (%p914_p11), %s180_s28, 4294967040  ;;  %p915_p7 = scmp.eq.s32.totalorder %s674_s16, 0 }
  0x6b   : > { %602 = dma.done.wait (%p915_p7), [#allocation6], 32   ;;  %p916_p3 = pmov %p915_p7 }
  0x6c   : > { %vm218_vm0 = vcmask 523264   ;;  %v214_v0 = vld [vmem:[%s183_s19] sm:$0xff]  ;;  %v215_v1 = vld [vmem:[%s183_s19 + $0x8] sm:$0xff]  ;;  %s391_s23 = sshll.u32 %s674_s16, 8  ;;  %s213_s26 = scalar_lea.vmem [#allocation8], %s379_s5 }
  0x6d   : > { %604 = vsyncadd (%p916_p3), [#allocation6], 4294967264  ;;  %v219_v2 = vsel %vm218_vm0, %v214_v0, 0.0  ;;  %v222_v3 = vsel %vm218_vm0, %v215_v1, 0.0  ;;  %v383_v21 = vld [vmem:[#allocation5] ss:$0 sm:$0xff]  ;;  %s848_s11 = scalar_lea.hbm %s898_s3, %s391_s23 }
  0x6e   : > { %220 = vadd.xlane.f32.xlu0 %v219_v2  ;;  %v384_v23 = vld [vmem:[#allocation7] ss:$0 sm:$0xff]  ;;  %s278_s30 = sshll.u32 %s213_s26, 4  ;;  %s265_s16 = scalar_lea.sflag [#allocation4], %s823_s17  ;;  %s850_s30 = int_to_ptr.vmem [resolvable:$true] %s278_s30 }
  0x6f   : > { %s553_s20 = scalar_lea.vmem %s850_s30, 256  ;;  %p917_p4 = scmp.ne.s32.totalorder %s906_s24, 0 }
  0x70   : > { %p554_p8 = scmp.ne.s32.totalorder %s850_s30, %s553_s20  ;;  %s630_s22 = smov [#allocation8]  }
  0x71   : > { %s557_s4 = sshll.u32 %s630_s22, 4  ;;  %s558_s4 = int_to_ptr.vmem [resolvable:$false] %s557_s4 }
  0x72   : > { %223 = vadd.xlane.f32.xlu0 %v222_v3  ;;  %p555_p5 = pnand %p554_p8, %p917_p4  ;;  %s559_s27 = scalar_lea.vmem %s558_s4, 512 }
  0x73   : > { %p560_p2 = scmp.lt.s32.totalorder %s850_s30, %s558_s4  ;;  %p561_p0 = scmp.lt.s32.totalorder %s559_s27, %s553_s20 }
  0x74   : > { %p556_p10 = pneg %p555_p5 }
  0x75   : > { %p562_p9 = por %p561_p0, %p560_p2 }
  0x77   : > { %p563_p6 = pnand %p562_p9, %p556_p10 }
  0xfb   : > { %v221_v4 = vpop.xlane.xlu0 %220 }
  0xfc   : > { %v226_v5 = vmul.f32 0.015625, %v221_v4 }
  0xfe   : > { %v228_v6 = vsub.f32 %v214_v0, %v226_v5 }
  0xff   : > { %v224_v7 = vpop.xlane.xlu0 %223 }
 0x100   : > { %v227_v8 = vmul.f32 0.015625, %v224_v7  ;;  %v230_v9 = vmul.f32 %v228_v6, %v228_v6 }
 0x102   : > { %v229_v10 = vsub.f32 %v215_v1, %v227_v8  ;;  %v232_v11 = vsel %vm218_vm0, %v230_v9, 0.0 }
 0x103   : > { %233 = vadd.xlane.f32.xlu1 %v232_v11 }
 0x104   : > { %v231_v12 = vmul.f32 %v229_v10, %v229_v10 }
 0x106   : > { %v235_v13 = vsel %vm218_vm0, %v231_v12, 0.0 }
 0x107   : > { %236 = vadd.xlane.f32.xlu1 %v235_v13 }
 0x190   : > { %v234_v14 = vpop.xlane.xlu1 %233 }
 0x191   : > { %v238_v15 = vmul.f32 0.015625, %v234_v14 }
 0x193   : > { %v240_v16 = vadd.f32 1e-05, %v238_v15 }
 0x194   : > { %v237_v17 = vpop.xlane.xlu1 %236 }
 0x195   : > { %463 = vrsqrt.f32 %v240_v16  ;;  %v239_v18 = vmul.f32 0.015625, %v237_v17 }
 0x197   : > { %v241_v19 = vadd.f32 1e-05, %v239_v18 }
 0x199   : > { %465 = vrsqrt.f32 %v241_v19 }
 0x19f   : > { %v464_v20 = vpop.eup %463 }
 0x1a0   : > { %v244_v22 = vmul.f32 %v464_v20, %v228_v6 }
 0x1a2   : > { %v252_v24 = vmul.f32 %v383_v21, %v244_v22 }
 0x1a3   : > { %v466_v25 = vpop.eup %465 }
 0x1a4   : > { %v260_v26 = vadd.f32 %v384_v23, %v252_v24  ;;  %v245_v27 = vmul.f32 %v466_v25, %v229_v10 }
 0x1a6   : > { %v253_v28 = vmul.f32 %v383_v21, %v245_v27  ;;  %262 = vst.msk [vmem:[%s213_s26] sm:$0xff] %vm218_vm0, %v260_v26 }
 0x1a8   : > { %v261_v29 = vadd.f32 %v384_v23, %v253_v28 }
 0x1aa   : > { %263 = vst.msk [vmem:[%s213_s26 + $0x8] sm:$0xff] %vm218_vm0, %v261_v29 }
 0x1ab   : > { %566 = shalt.err (!%p563_p6)
}
 0x1ac   : > { %s567_s6 = scalar_lea.hbm %s848_s11, 256  ;;  %s571_s29 = scalar_lea.hbm %s898_s3, 512 }
 0x1ad   : > { %p568_p12 = scmp.ne.s32.totalorder %s848_s11, %s567_s6  ;;  %p572_p11 = scmp.lt.u32.totalorder %s848_s11, %s898_s3 }
 0x1ae   : > { %p573_p7 = scmp.lt.u32.totalorder %s571_s29, %s567_s6  ;;  %p575_p8 = scmp.lt.u32.totalorder %s567_s6, %s848_s11 }
 0x1af   : > { %p569_p13 = pnand %p568_p12, %p917_p4 }
 0x1b0   : > { %p574_p3 = por %p573_p7, %p572_p11 }
 0x1b1   : > { %p570_p1 = pneg %p569_p13 }
 0x1b2   : > { %p576_p5 = por %p575_p8, %p574_p3 }
 0x1b4   : > { %p577_p10 = pnand %p576_p5, %p570_p1 }
 0x1b6   : > { %580 = shalt.err (!%p577_p10)
}
 0x1b7   : > { %s631_s19 = smov 128   ;;  %s632_s23 = smov 8  }
 0x1b8   : > { %402 = dma.vmem_to_hbm [thread:$0]  (%p917_p4), %s850_s30, 256, %s848_s11, %s265_s16, %s631_s19, %s631_s19, %s632_s23  }
 0x1b9 PF: > { %s293_s26 = sand.u32 1, %s611_s12   ;;  %p918_p2 = scmp.ne.s32.totalorder %s907_s25, 0 }
 0x1ba   : > { %p919_p0 = scmp.ge.s32.totalorder %s623_s15, 2  ;;  %s294_s9 = scalar_lea.sflag [#allocation4], %s293_s26 }
 0x1bc   : > { %p416_p9 = pnand %p919_p0, %p918_p2 }
 0x1be   : > { %606 = dma.done.wait (!%p416_p9), %s294_s9, 256  }
 0x1bf   : > { %608 = vsyncadd (!%p416_p9), %s294_s9, 4294967040  ;;  %p17_p6 = scmp.ge.s32.totalorder %s678_s18, 4   ;;  %s920_s12 = smov %s615_s13 }
 0x1c0   : > { %s921_s13 = smov %s619_s14  ;;  %s922_s14 = smov %s690_s21 }
 0x1c1   : > { %s923_s15 = smov %s678_s18  ;;  %19 = sbr.rel (!%p17_p6) target bundleno = 6 (0x6), region = 85 }
 0x1c8   :  { %299 = vsyncpa [#allocation3], 1 }
 0x1c9   :  { %301 = vsyncpa [#allocation3 + $0x1], 1 }
 0x1ca   :  { %302 = vsyncpa [#allocation6], 1 }
 0x1cb   :  { %303 = vsyncpa [#allocation4], 1 }
 0x1cc   :  { %305 = vsyncpa [#allocation4 + $0x1], 1 }

// kernel: decoder_forward.8
= control target key start
LH: loop header
LB: loop body
LE: loop exit
PB: predicated region body
PF: predicated region fallthrough
CT: control target
= control target key end

     0   :  { %s4153_s0 = inlined_call_operand.hbm [shape: f32[2,16,64], index: 0, kind: input, shape index: {}]   ;;  %s4154_s1 = inlined_call_operand.hbm [shape: f32[2,8,64], index: 1, kind: input, shape index: {}]   ;;  %s4155_s2 = inlined_call_operand.hbm [shape: f32[16,64], index: 2, kind: input, shape index: {}]   ;;  %s4156_s3 = inlined_call_operand.hbm [shape: f32[8,64], index: 3, kind: input, shape index: {}]   ;;  %s4157_s4 = inlined_call_operand.hbm [shape: f32[2,1,8], index: 4, kind: input, shape index: {}]   ;;  %s4158_s5 = inlined_call_operand.hbm [shape: f32[1,64], index: 5, kind: input, shape index: {}]   ;;  %s4159_s6 = inlined_call_operand.hbm [shape: f32[1,64], index: 6, kind: input, shape index: {}]   ;;  %s4160_s7 = inlined_call_operand.hbm [shape: bf16[64,64], index: 7, kind: input, shape index: {}]   ;;  %s4161_s8 = inlined_call_operand.hbm [shape: f32[1,64], index: 8, kind: input, shape index: {}]   ;;  %s4162_s9 = inlined_call_operand.hbm [shape: bf16[64,64], index: 9, kind: input, shape index: {}]   ;;  %s4163_s10 = inlined_call_operand.hbm [shape: f32[1,64], index: 10, kind: input, shape index: {}]   ;;  %s4164_s11 = inlined_call_operand.hbm [shape: bf16[64,64], index: 11, kind: input, shape index: {}]   ;;  %s4165_s12 = inlined_call_operand.hbm [shape: f32[1,64], index: 12, kind: input, shape index: {}]   ;;  %s4166_s13 = inlined_call_operand.hbm [shape: bf16[64,64], index: 13, kind: input, shape index: {}]   ;;  %s4167_s14 = inlined_call_operand.hbm [shape: f32[1,64], index: 14, kind: input, shape index: {}]   ;;  %s4168_s15 = inlined_call_operand.hbm [shape: f32[1,64], index: 15, kind: input, shape index: {}]   ;;  %s4169_s16 = inlined_call_operand.hbm [shape: f32[1,64], index: 16, kind: input, shape index: {}]   ;;  %s4170_s17 = inlined_call_operand.hbm [shape: f32[2,16,64], index: 17, kind: output, shape index: {}]  }
   0x1   :  { %4199 = sst [smem:[#allocation43_spill]] %s4153_s0 }
   0x2   :  { %4200 = sst [smem:[#allocation44_spill]] %s4154_s1 }
   0x3   :  { %4201 = sst [smem:[#allocation45_spill]] %s4155_s2 }
   0x4   :  { %4202 = sst [smem:[#allocation46_spill]] %s4156_s3 }
   0x5   :  { %4203 = sst [smem:[#allocation47_spill]] %s4157_s4 }
   0x6   :  { %4204 = sst [smem:[#allocation48_spill]] %s4158_s5 }
   0x7   :  { %4205 = sst [smem:[#allocation49_spill]] %s4159_s6 }
   0x8   :  { %4206 = sst [smem:[#allocation50_spill]] %s4160_s7 }
   0x9   :  { %4207 = sst [smem:[#allocation51_spill]] %s4161_s8 }
   0xa   :  { %4208 = sst [smem:[#allocation52_spill]] %s4162_s9 }
   0xb   :  { %4209 = sst [smem:[#allocation53_spill]] %s4163_s10 }
   0xc   :  { %4210 = sst [smem:[#allocation54_spill]] %s4164_s11 }
   0xd   :  { %4211 = sst [smem:[#allocation55_spill]] %s4165_s12 }
   0xe   :  { %4212 = sst [smem:[#allocation56_spill]] %s4166_s13 }
   0xf   :  { %4213 = sst [smem:[#allocation57_spill]] %s4167_s14 }
  0x10   :  { %4214 = sst [smem:[#allocation58_spill]] %s4168_s15 }
  0x11   :  { %4215 = sst [smem:[#allocation59_spill]] %s4169_s16 }
  0x12   :  { %4216 = sst [smem:[#allocation60_spill]] %s4170_s17 }
  0x13   :  { %22 = vsyncpa [#allocation3], 0 }
  0x14   :  { %24 = vsyncpa [#allocation3 + $0x1], 0 }
  0x15   :  { %25 = vsyncpa [#allocation6], 0 }
  0x16   :  { %27 = vsyncpa [#allocation6 + $0x1], 0 }
  0x17   :  { %28 = vsyncpa [#allocation9], 0 }
  0x18   :  { %29 = vsyncpa [#allocation14], 0 }
  0x19   :  { %30 = vsyncpa [#allocation17], 0 }
  0x1a   :  { %31 = vsyncpa [#allocation20], 0 }
  0x1b   :  { %32 = vsyncpa [#allocation23], 0 }
  0x1c   :  { %33 = vsyncpa [#allocation26], 0 }
  0x1d   :  { %34 = vsyncpa [#allocation4], 0 }
  0x1e   :  { %36 = vsyncpa [#allocation4 + $0x1], 0  ;;  %s3387_s24 = smov 0   ;;  %s3389_s25 = smov 0  }
  0x1f   :  { %s3391_s26 = smov 0   ;;  %s3393_s27 = smov 0  }
  0x20 LB: > { %s3268_s28 = smov [#allocation7]   ;;  %s3408_s0 = sadd.s32 4294967295, %s3266_s27   ;;  %s3266_s27 = sphi %s3393_s27, %s4281_s27   ;;  %s3262_s26 = sphi %s3391_s26, %s4280_s26   ;;  %s3258_s25 = sphi %s3389_s25, %s4279_s25   ;;  %s3254_s24 = sphi %s3387_s24, %s4278_s24  }
  0x21   : > { %s457_s29 = sshll.u32 %s3268_s28, 4  ;;  %p2176_p0 = scmp.ge.s32.totalorder %s3266_s27, 1  ;;  %s3413_s29 = int_to_ptr.vmem [resolvable:$true] %s457_s29 }
  0x22   : > { %p4180_p1 = scmp.eq.s32.totalorder %s3408_s0, 0  ;;  %p445_p2 = scmp.lt.s32.totalorder %s3266_s27, 3 }
  0x23   : > { %s3269_s18 = smov [#allocation8]   ;;  %s3270_s20 = smov [#allocation11]  }
  0x24   : > { %p3415_p3 = pnand %p2176_p0, %p445_p2  ;;  %s471_s19 = sshll.u32 %s3269_s18, 4  ;;  %s3428_s19 = int_to_ptr.vmem [resolvable:$true] %s471_s19 }
  0x25   : > { %s482_s21 = sshll.u32 %s3270_s20, 4  ;;  %s4220_s2 = sld [smem:[#allocation45_spill]]  ;;  %s3430_s21 = int_to_ptr.vmem [resolvable:$true] %s482_s21 }
  0x26   : > { %s4217_s30 = scalar_select %p3415_p3, 1, 0 }
  0x27   : > { %p2474_p5 = pneg %p3415_p3 }
  0x28   : > { %4218 = sst [smem:[#allocation42_spill]] %s4217_s30 }
  0x29   : > { %p3424_p6 = pnand %p2474_p5, %p4180_p1 }
  0x2b   : > { %s4219_s1 = scalar_select %p3424_p6, 1, 0 }
  0x2c   : > { %s2674_s28 = scalar_lea.hbm %s4220_s2, 256  ;;  %p3440_p8 = pneg %p3424_p6 }
  0x2d   : > { %p2675_p7 = scmp.ne.s32.totalorder %s4220_s2, %s2674_s28  ;;  %p2681_p11 = scmp.lt.u32.totalorder %s2674_s28, %s4220_s2 }
  0x2e   : > { %s4221_s18 = scalar_select %p3440_p8, 1, 0 }
  0x2f   : > { %p2677_p9 = pnand %p3440_p8, %p2675_p7 }
  0x31   : > { %p2678_p10 = pneg %p2677_p9 }
  0x33   : > { %p2683_p12 = pnand %p2681_p11, %p2678_p10 }
  0x35   : > { %2686 = shalt.err (!%p2683_p12)
}
  0x36   : > { %s2687_s17 = scalar_lea.vmem %s3413_s29, 256  ;;  %p2695_p5 = scmp.lt.s32.totalorder %s3413_s29, %s3413_s29 }
  0x37   : > { %p2688_p13 = scmp.ne.s32.totalorder %s3413_s29, %s2687_s17  ;;  %p2696_p4 = scmp.lt.s32.totalorder %s2687_s17, %s2687_s17 }
  0x39   : > { %p2690_p0 = pnand %p2688_p13, %p3440_p8  ;;  %p2697_p7 = por %p2696_p4, %p2695_p5 }
  0x3b   : > { %p2691_p2 = pneg %p2690_p0 }
  0x3d   : > { %p2698_p9 = pnand %p2697_p7, %p2691_p2 }
  0x3f   : > { %2701 = shalt.err (!%p2698_p9)
}
  0x40   : > { %s4182_s30 = smov 128   ;;  %s4183_s4 = smov 8  }
  0x41   : > { %2477 = dma.hbm_to_vmem [thread:$0]  (!%p3424_p6), %s4220_s2, 256, %s3413_s29, [#allocation6], %s4182_s30, %s4182_s30, %s4183_s4  }
  0x42   : > { %s4222_s3 = sld [smem:[#allocation46_spill]] }
  0x48   : > { %s2702_s17 = scalar_lea.hbm %s4222_s3, 128 }
  0x49   : > { %p2703_p4 = scmp.ne.s32.totalorder %s4222_s3, %s2702_s17  ;;  %p2709_p12 = scmp.lt.u32.totalorder %s2702_s17, %s4222_s3 }
  0x4b   : > { %p2705_p10 = pnand %p2703_p4, %p3440_p8 }
  0x4d   : > { %p2706_p11 = pneg %p2705_p10 }
  0x4f   : > { %p2711_p13 = pnand %p2709_p12, %p2706_p11 }
  0x51   : > { %2714 = shalt.err (!%p2711_p13)
}
  0x52   : > { %s2715_s29 = scalar_lea.vmem %s3428_s19, 128  ;;  %p2723_p7 = scmp.lt.s32.totalorder %s3428_s19, %s3428_s19 }
  0x53   : > { %p2716_p0 = scmp.ne.s32.totalorder %s3428_s19, %s2715_s29  ;;  %p2724_p9 = scmp.lt.s32.totalorder %s2715_s29, %s2715_s29 }
  0x55   : > { %p2718_p2 = pnand %p2716_p0, %p3440_p8  ;;  %p2725_p4 = por %p2724_p9, %p2723_p7 }
  0x57   : > { %p2719_p5 = pneg %p2718_p2 }
  0x59   : > { %p2726_p10 = pnand %p2725_p4, %p2719_p5 }
  0x5b   : > { %2729 = shalt.err (!%p2726_p10)
}
  0x5c   : > { %2480 = dma.hbm_to_vmem [thread:$0]  (!%p3424_p6), %s4222_s3, 128, %s3428_s19, [#allocation9]  }
  0x5d   : > { %s4223_s5 = sld [smem:[#allocation48_spill]] }
  0x63   : > { %s2730_s22 = scalar_lea.hbm %s4223_s5, 16 }
  0x64   : > { %p2731_p11 = scmp.ne.s32.totalorder %s4223_s5, %s2730_s22  ;;  %p2737_p0 = scmp.lt.u32.totalorder %s2730_s22, %s4223_s5 }
  0x66   : > { %p2733_p12 = pnand %p2731_p11, %p3440_p8 }
  0x68   : > { %p2734_p13 = pneg %p2733_p12 }
  0x6a   : > { %p2739_p2 = pnand %p2737_p0, %p2734_p13 }
  0x6c   : > { %2742 = shalt.err (!%p2739_p2)
}
  0x6d   : > { %s2743_s19 = scalar_lea.vmem %s3430_s21, 16  ;;  %s2750_s29 = scalar_lea.vmem %s3430_s21, 32 }
  0x6e   : > { %p2744_p5 = scmp.ne.s32.totalorder %s3430_s21, %s2743_s19  ;;  %p2751_p4 = scmp.lt.s32.totalorder %s3430_s21, %s3430_s21 }
  0x6f   : > { %p2752_p10 = scmp.lt.s32.totalorder %s2750_s29, %s2743_s19 }
  0x70   : > { %p2746_p7 = pnand %p2744_p5, %p3440_p8 }
  0x71   : > { %p2753_p11 = por %p2752_p10, %p2751_p4 }
  0x72   : > { %p2747_p9 = pneg %p2746_p7 }
  0x74   : > { %p2754_p12 = pnand %p2753_p11, %p2747_p9 }
  0x76   : > { %2757 = shalt.err (!%p2754_p12)
}
  0x77   : > { %2483 = dma.hbm_to_vmem [thread:$0]  (!%p3424_p6), %s4223_s5, 16, %s3430_s21, [#allocation6]  }
  0x78   : > { %s3273_s14 = smov [#allocation13]   ;;  %s4224_s7 = sld [smem:[#allocation50_spill]] }
  0x79   : > { %s503_s16 = sshll.u32 %s3273_s14, 4  ;;  %s504_s16 = int_to_ptr.vmem [resolvable:$true] %s503_s16 }
  0x7e   : > { %s2758_s28 = scalar_lea.hbm %s4224_s7, 512 }
  0x7f   : > { %p2759_p13 = scmp.ne.s32.totalorder %s4224_s7, %s2758_s28  ;;  %p2765_p5 = scmp.lt.u32.totalorder %s2758_s28, %s4224_s7 }
  0x81   : > { %p2761_p0 = pnand %p2759_p13, %p3440_p8 }
  0x83   : > { %p2762_p2 = pneg %p2761_p0 }
  0x85   : > { %p2767_p7 = pnand %p2765_p5, %p2762_p2 }
  0x87   : > { %2770 = shalt.err (!%p2767_p7)
}
  0x88   : > { %s2771_s21 = scalar_lea.vmem %s504_s16, 512  ;;  %p2779_p11 = scmp.lt.s32.totalorder %s504_s16, %s504_s16 }
  0x89   : > { %p2772_p9 = scmp.ne.s32.totalorder %s504_s16, %s2771_s21  ;;  %p2780_p12 = scmp.lt.s32.totalorder %s2771_s21, %s2771_s21 }
  0x8b   : > { %p2774_p4 = pnand %p2772_p9, %p3440_p8  ;;  %p2781_p1 = por %p2780_p12, %p2779_p11 }
  0x8d   : > { %p2775_p10 = pneg %p2774_p4 }
  0x8f   : > { %p2782_p3 = pnand %p2781_p1, %p2775_p10 }
  0x91   : > { %2785 = shalt.err (!%p2782_p3)
}
  0x92   : > { %s3274_s10 = smov 64   ;;  %s3275_s12 = smov 4  }
  0x93   : > { %2489 = dma.hbm_to_vmem [thread:$0]  (!%p3424_p6), %s4224_s7, 512, %s504_s16, [#allocation14], %s3274_s10, %s3274_s10, %s3275_s12  }
  0x94   : > { %s3276_s23 = smov [#allocation16]   ;;  %s3277_s20 = smov [#allocation19]  }
  0x95   : > { %s527_s28 = sshll.u32 %s3276_s23, 4  ;;  %s551_s17 = sshll.u32 %s3277_s20, 4  ;;  %s528_s28 = int_to_ptr.vmem [resolvable:$true] %s527_s28  ;;  %s3532_s17 = int_to_ptr.vmem [resolvable:$true] %s551_s17 }
  0x96   : > { %s4225_s9 = sld [smem:[#allocation52_spill]] }
  0x9c   : > { %s2786_s21 = scalar_lea.hbm %s4225_s9, 512 }
  0x9d   : > { %p2787_p1 = scmp.ne.s32.totalorder %s4225_s9, %s2786_s21  ;;  %p2793_p0 = scmp.lt.u32.totalorder %s2786_s21, %s4225_s9 }
  0x9f   : > { %p2789_p3 = pnand %p2787_p1, %p3440_p8 }
  0xa1   : > { %p2790_p13 = pneg %p2789_p3 }
  0xa3   : > { %p2795_p2 = pnand %p2793_p0, %p2790_p13 }
  0xa5   : > { %2798 = shalt.err (!%p2795_p2)
}
  0xa6   : > { %s2799_s22 = scalar_lea.vmem %s528_s28, 512  ;;  %p2807_p4 = scmp.lt.s32.totalorder %s528_s28, %s528_s28 }
  0xa7   : > { %p2800_p5 = scmp.ne.s32.totalorder %s528_s28, %s2799_s22  ;;  %p2808_p10 = scmp.lt.s32.totalorder %s2799_s22, %s2799_s22 }
  0xa9   : > { %p2802_p7 = pnand %p2800_p5, %p3440_p8  ;;  %p2809_p11 = por %p2808_p10, %p2807_p4 }
  0xab   : > { %p2803_p9 = pneg %p2802_p7 }
  0xad   : > { %p2810_p12 = pnand %p2809_p11, %p2803_p9 }
  0xaf   : > { %2813 = shalt.err (!%p2810_p12)
}
  0xb0   : > { %2495 = dma.hbm_to_vmem [thread:$0]  (!%p3424_p6), %s4225_s9, 512, %s528_s28, [#allocation17], %s3274_s10, %s3274_s10, %s3275_s12  }
  0xb1   : > { %s4226_s11 = sld [smem:[#allocation54_spill]] }
  0xb7   : > { %s2814_s19 = scalar_lea.hbm %s4226_s11, 512 }
  0xb8   : > { %p2815_p1 = scmp.ne.s32.totalorder %s4226_s11, %s2814_s19  ;;  %p2821_p0 = scmp.lt.u32.totalorder %s2814_s19, %s4226_s11 }
  0xba   : > { %p2817_p3 = pnand %p2815_p1, %p3440_p8 }
  0xbc   : > { %p2818_p13 = pneg %p2817_p3 }
  0xbe   : > { %p2823_p2 = pnand %p2821_p0, %p2818_p13 }
  0xc0   : > { %2826 = shalt.err (!%p2823_p2)
}
  0xc1   : > { %s2827_s28 = scalar_lea.vmem %s3532_s17, 512  ;;  %p2835_p4 = scmp.lt.s32.totalorder %s3532_s17, %s3532_s17 }
  0xc2   : > { %p2828_p5 = scmp.ne.s32.totalorder %s3532_s17, %s2827_s28  ;;  %p2836_p10 = scmp.lt.s32.totalorder %s2827_s28, %s2827_s28 }
  0xc4   : > { %p2830_p7 = pnand %p2828_p5, %p3440_p8  ;;  %p2837_p11 = por %p2836_p10, %p2835_p4 }
  0xc6   : > { %p2831_p9 = pneg %p2830_p7 }
  0xc8   : > { %p2838_p12 = pnand %p2837_p11, %p2831_p9 }
  0xca   : > { %2841 = shalt.err (!%p2838_p12)
}
  0xcb   : > { %2501 = dma.hbm_to_vmem [thread:$0]  (!%p3424_p6), %s4226_s11, 512, %s3532_s17, [#allocation20], %s3274_s10, %s3274_s10, %s3275_s12  }
  0xcc   : > { %s3278_s4 = smov [#allocation22]   ;;  %s3279_s20 = smov [#allocation25]  }
  0xcd   : > { %s575_s23 = sshll.u32 %s3278_s4, 4  ;;  %s600_s19 = sshll.u32 %s3279_s20, 4  ;;  %s576_s23 = int_to_ptr.vmem [resolvable:$true] %s575_s23  ;;  %s3581_s19 = int_to_ptr.vmem [resolvable:$true] %s600_s19 }
  0xce   : > { %s4227_s13 = sld [smem:[#allocation56_spill]] }
  0xd4   : > { %s2842_s14 = scalar_lea.hbm %s4227_s13, 512 }
  0xd5   : > { %p2843_p1 = scmp.ne.s32.totalorder %s4227_s13, %s2842_s14  ;;  %p2849_p0 = scmp.lt.u32.totalorder %s2842_s14, %s4227_s13 }
  0xd7   : > { %p2845_p3 = pnand %p2843_p1, %p3440_p8 }
  0xd9   : > { %p2846_p13 = pneg %p2845_p3 }
  0xdb   : > { %p2851_p2 = pnand %p2849_p0, %p2846_p13 }
  0xdd   : > { %2854 = shalt.err (!%p2851_p2)
}
  0xde   : > { %s2855_s30 = scalar_lea.vmem %s576_s23, 512  ;;  %p2863_p4 = scmp.lt.s32.totalorder %s576_s23, %s576_s23 }
  0xdf   : > { %p2856_p5 = scmp.ne.s32.totalorder %s576_s23, %s2855_s30  ;;  %p2864_p10 = scmp.lt.s32.totalorder %s2855_s30, %s2855_s30 }
  0xe1   : > { %p2858_p7 = pnand %p2856_p5, %p3440_p8  ;;  %p2865_p11 = por %p2864_p10, %p2863_p4 }
  0xe3   : > { %p2859_p9 = pneg %p2858_p7 }
  0xe5   : > { %p2866_p12 = pnand %p2865_p11, %p2859_p9 }
  0xe7   : > { %2869 = shalt.err (!%p2866_p12)
}
  0xe8   : > { %2507 = dma.hbm_to_vmem [thread:$0]  (!%p3424_p6), %s4227_s13, 512, %s576_s23, [#allocation23], %s3274_s10, %s3274_s10, %s3275_s12  }
  0xe9   : > { %s4228_s15 = sld [smem:[#allocation58_spill]] }
  0xef   : > { %s2870_s14 = scalar_lea.hbm %s4228_s15, 16 }
  0xf0   : > { %p2871_p1 = scmp.ne.s32.totalorder %s4228_s15, %s2870_s14  ;;  %p2877_p0 = scmp.lt.u32.totalorder %s2870_s14, %s4228_s15 }
  0xf2   : > { %p2873_p3 = pnand %p2871_p1, %p3440_p8 }
  0xf4   : > { %p2874_p13 = pneg %p2873_p3 }
  0xf6   : > { %p2879_p2 = pnand %p2877_p0, %p2874_p13 }
  0xf8   : > { %2882 = shalt.err (!%p2879_p2)
}
  0xf9   : > { %s2883_s10 = scalar_lea.vmem %s3581_s19, 16  ;;  %s2890_s12 = scalar_lea.vmem %s3581_s19, 32 }
  0xfa   : > { %p2884_p5 = scmp.ne.s32.totalorder %s3581_s19, %s2883_s10  ;;  %p2891_p4 = scmp.lt.s32.totalorder %s3581_s19, %s3581_s19 }
  0xfb   : > { %p2892_p10 = scmp.lt.s32.totalorder %s2890_s12, %s2883_s10 }
  0xfc   : > { %p2886_p7 = pnand %p2884_p5, %p3440_p8 }
  0xfd   : > { %p2893_p11 = por %p2892_p10, %p2891_p4 }
  0xfe   : > { %p2887_p9 = pneg %p2886_p7 }
 0x100   : > { %p2894_p12 = pnand %p2893_p11, %p2887_p9 }
 0x102   : > { %2897 = shalt.err (!%p2894_p12)
}
 0x103   : > { %2513 = dma.hbm_to_vmem [thread:$0]  (!%p3424_p6), %s4228_s15, 16, %s3581_s19, [#allocation26]  }
 0x104   : > { %s2175_s4 = sadd.s32 4294967294, %s3266_s27   ;;  %s3630_s20 = sadd.s32 1, %s3266_s27  }
 0x105   : > { %s46_s29 = ssub.s32 %s3266_s27, %s3630_s20  ;;  %s49_s21 = sadd.s32 1, %s3262_s26 }
 0x106   : > { %p47_p1 = scmp.eq.s32.totalorder %s46_s29, 0  ;;  %p56_p3 = scmp.ne.s32.totalorder %s3262_s26, %s3258_s25 }
 0x107   : > { %p57_p13 = scmp.eq.s32.totalorder %s3266_s27, 0  ;;  %p62_p0 = scmp.ne.s32.totalorder %s3258_s25, %s3254_s24 }
 0x108   : > { %s3641_s14 = scalar_select %p47_p1, %s3262_s26, %s49_s21  }
 0x109   : > { %p3643_p2 = por %p57_p13, %p56_p3  ;;  %p4230_p5 = scmp.eq.s32.totalorder %s3408_s0, 0 }
 0x10a   : > { %p432_p9 = scmp.eq.s32.totalorder %s3408_s0, 1  ;;  %p438_p4 = scmp.eq.s32.totalorder %s2175_s4, 1 }
 0x10b   : > { %p3649_p7 = por %p4230_p5, %p62_p0  ;;  %p2545_p10 = scmp.lt.s32.totalorder %s3266_s27, 2 }
 0x10c   : > { %p3656_p11 = por %p432_p9, %p56_p3  ;;  %p3660_p12 = por %p438_p4, %p62_p0 }
 0x10d   : > { %s4231_s19 = scalar_select %p3649_p7, 1, 0 }
 0x10e   : > { %s4232_s22 = scalar_select %p3656_p11, 1, 0 }
 0x10f   : > { %s4233_s17 = scalar_select %p3660_p12, 1, 0 }
 0x110   : > { %s3665_s10 = sand.u32 1, %s3262_s26   ;;  %s2261_s23 = sshll.u32 %s3266_s27, 8 }
 0x111   : > { %s2192_s12 = sshll.u32 %s3665_s10, 4  ;;  %s4234_s21 = sld [smem:[#allocation43_spill]] }
 0x112   : > { %s626_s4 = scalar_lea.vmem [#allocation2], %s2192_s12  ;;  %p3676_p1 = pnand %p2545_p10, %p3643_p2 }
 0x113   : > { %s633_s28 = sshll.u32 %s626_s4, 4  ;;  %s3280_s5 = smov [#allocation12]   ;;  %s3680_s28 = int_to_ptr.vmem [resolvable:$true] %s633_s28 }
 0x114   : > { %s4235_s3 = scalar_select %p3676_p1, 1, 0 }
 0x115   : > { %s3682_s7 = sshll.u32 %s3280_s5, 4  ;;  %s4236_s30 = sand.u32 1, %s3266_s27   ;;  %s494_s7 = int_to_ptr.vmem [resolvable:$true] %s3682_s7 }
 0x116   : > { %p3692_p13 = pneg %p3676_p1 }
 0x117   : > { %s3672_s2 = scalar_lea.hbm %s4234_s21, %s2261_s23  ;;  %s3686_s23 = scalar_lea.sflag [#allocation3], %s4236_s30 }
 0x118   : > { %s2898_s29 = scalar_lea.hbm %s3672_s2, 256  ;;  %s2903_s9 = scalar_lea.hbm %s4234_s21, 512 }
 0x119   : > { %p2899_p3 = scmp.ne.s32.totalorder %s3672_s2, %s2898_s29  ;;  %p2904_p5 = scmp.lt.u32.totalorder %s3672_s2, %s4234_s21 }
 0x11a   : > { %s4237_s12 = scalar_select %p3692_p13, 1, 0 }
 0x11b   : > { %p2901_p0 = pnand %p3692_p13, %p2899_p3  ;;  %p2905_p9 = scmp.lt.u32.totalorder %s2903_s9, %s2898_s29 }
 0x11c   : > { %p2907_p10 = scmp.lt.u32.totalorder %s2898_s29, %s3672_s2 }
 0x11d   : > { %p2902_p2 = pneg %p2901_p0  ;;  %p2906_p4 = por %p2905_p9, %p2904_p5 }
 0x11f   : > { %p2908_p12 = por %p2907_p10, %p2906_p4 }
 0x121   : > { %p2909_p11 = pnand %p2908_p12, %p2902_p2 }
 0x123   : > { %2912 = shalt.err (!%p2909_p11)
}
 0x124   : > { %s2913_s30 = scalar_lea.vmem %s3680_s28, 256  ;;  %s3281_s16 = smov [#allocation2]  }
 0x125   : > { %p2914_p3 = scmp.ne.s32.totalorder %s3680_s28, %s2913_s30  ;;  %s2918_s4 = sshll.u32 %s3281_s16, 4  ;;  %s2919_s4 = int_to_ptr.vmem [resolvable:$false] %s2918_s4 }
 0x126   : > { %s2920_s11 = scalar_lea.vmem %s2919_s4, 512  ;;  %p2921_p6 = scmp.lt.s32.totalorder %s3680_s28, %s2919_s4 }
 0x127   : > { %p2916_p0 = pnand %p2914_p3, %p3692_p13  ;;  %p2922_p8 = scmp.lt.s32.totalorder %s2920_s11, %s2913_s30 }
 0x129   : > { %p2917_p7 = pneg %p2916_p0  ;;  %p2923_p5 = por %p2922_p8, %p2921_p6 }
 0x12b   : > { %p2924_p9 = pnand %p2923_p5, %p2917_p7 }
 0x12d   : > { %2927 = shalt.err (!%p2924_p9)
}
 0x12e   : > { %s4238_s9 = smov 8   ;;  %s4239_s29 = smov 128  }
 0x12f   : > { %2520 = dma.hbm_to_vmem [thread:$0]  (!%p3676_p1), %s3672_s2, 256, %s3680_s28, %s3686_s23, %s4239_s29, %s4239_s29, %s4238_s9  }
 0x130   : > { %s4240_s6 = sld [smem:[#allocation49_spill]]  ;;  %p4241_p8 = scmp.ne.s32.totalorder %s4221_s18, 0 }
 0x136   : > { %s2928_s4 = scalar_lea.hbm %s4240_s6, 16 }
 0x137   : > { %p2929_p6 = scmp.ne.s32.totalorder %s4240_s6, %s2928_s4  ;;  %p2935_p12 = scmp.lt.u32.totalorder %s2928_s4, %s4240_s6 }
 0x139   : > { %p2931_p7 = pnand %p2929_p6, %p4241_p8 }
 0x13b   : > { %p2932_p11 = pneg %p2931_p7 }
 0x13d   : > { %p2937_p2 = pnand %p2935_p12, %p2932_p11 }
 0x13f   : > { %2940 = shalt.err (!%p2937_p2)
}
 0x140   : > { %s2941_s21 = scalar_lea.vmem %s494_s7, 16  ;;  %s2948_s2 = scalar_lea.vmem %s494_s7, 32 }
 0x141   : > { %p2942_p4 = scmp.ne.s32.totalorder %s494_s7, %s2941_s21  ;;  %p2949_p0 = scmp.lt.s32.totalorder %s494_s7, %s494_s7 }
 0x142   : > { %p2950_p5 = scmp.lt.s32.totalorder %s2948_s2, %s2941_s21 }
 0x143   : > { %p2944_p10 = pnand %p2942_p4, %p4241_p8 }
 0x144   : > { %p2951_p9 = por %p2950_p5, %p2949_p0 }
 0x145   : > { %p2945_p3 = pneg %p2944_p10 }
 0x147   : > { %p2952_p1 = pnand %p2951_p9, %p2945_p3 }
 0x149   : > { %2955 = shalt.err (!%p2952_p1)
}
 0x14a   : > { %p4242_p6 = scmp.ne.s32.totalorder %s4219_s1, 0  ;;  %s3282_s13 = smov [#allocation15]  }
 0x14b   : > { %s517_s15 = sshll.u32 %s3282_s13, 4  ;;  %s3283_s29 = smov [#allocation18]   ;;  %s518_s15 = int_to_ptr.vmem [resolvable:$true] %s517_s15 }
 0x14c   : > { %2486 = dma.hbm_to_vmem [thread:$0]  (!%p4242_p6), %s4240_s6, 16, %s494_s7, [#allocation9]  }
 0x14d   : > { %s541_s5 = sshll.u32 %s3283_s29, 4  ;;  %s4243_s8 = sld [smem:[#allocation51_spill]]  ;;  %s542_s5 = int_to_ptr.vmem [resolvable:$true] %s541_s5 }
 0x153   : > { %s2956_s30 = scalar_lea.hbm %s4243_s8, 16 }
 0x154   : > { %p2957_p1 = scmp.ne.s32.totalorder %s4243_s8, %s2956_s30  ;;  %p2963_p12 = scmp.lt.u32.totalorder %s2956_s30, %s4243_s8 }
 0x156   : > { %p2959_p7 = pnand %p2957_p1, %p4241_p8 }
 0x158   : > { %p2960_p11 = pneg %p2959_p7 }
 0x15a   : > { %p2965_p2 = pnand %p2963_p12, %p2960_p11 }
 0x15c   : > { %2968 = shalt.err (!%p2965_p2)
}
 0x15d   : > { %s2969_s7 = scalar_lea.vmem %s518_s15, 16  ;;  %s2976_s9 = scalar_lea.vmem %s518_s15, 32 }
 0x15e   : > { %p2970_p4 = scmp.ne.s32.totalorder %s518_s15, %s2969_s7  ;;  %p2977_p0 = scmp.lt.s32.totalorder %s518_s15, %s518_s15 }
 0x15f   : > { %p2978_p5 = scmp.lt.s32.totalorder %s2976_s9, %s2969_s7 }
 0x160   : > { %p2972_p10 = pnand %p2970_p4, %p4241_p8 }
 0x161   : > { %p2979_p9 = por %p2978_p5, %p2977_p0 }
 0x162   : > { %p2973_p3 = pneg %p2972_p10 }
 0x164   : > { %p2980_p13 = pnand %p2979_p9, %p2973_p3 }
 0x166   : > { %2983 = shalt.err (!%p2980_p13)
}
 0x167   : > { %2492 = dma.hbm_to_vmem [thread:$0]  (!%p4242_p6), %s4243_s8, 16, %s518_s15, [#allocation14]  }
 0x168   : > { %s4244_s30 = sld [smem:[#allocation53_spill]] }
 0x16e   : > { %s2984_s21 = scalar_lea.hbm %s4244_s30, 16 }
 0x16f   : > { %p2985_p1 = scmp.ne.s32.totalorder %s4244_s30, %s2984_s21  ;;  %p2991_p13 = scmp.lt.u32.totalorder %s2984_s21, %s4244_s30 }
 0x171   : > { %p2987_p7 = pnand %p2985_p1, %p4241_p8 }
 0x173   : > { %p2988_p11 = pneg %p2987_p7 }
 0x175   : > { %p2993_p12 = pnand %p2991_p13, %p2988_p11 }
 0x177   : > { %2996 = shalt.err (!%p2993_p12)
}
 0x178   : > { %s2997_s9 = scalar_lea.vmem %s542_s5, 16  ;;  %s3004_s15 = scalar_lea.vmem %s542_s5, 32 }
 0x179   : > { %p2998_p2 = scmp.ne.s32.totalorder %s542_s5, %s2997_s9  ;;  %p3005_p3 = scmp.lt.s32.totalorder %s542_s5, %s542_s5 }
 0x17a   : > { %p3006_p0 = scmp.lt.s32.totalorder %s3004_s15, %s2997_s9 }
 0x17b   : > { %p3000_p4 = pnand %p2998_p2, %p4241_p8 }
 0x17c   : > { %p3007_p5 = por %p3006_p0, %p3005_p3 }
 0x17d   : > { %p3001_p10 = pneg %p3000_p4 }
 0x17f   : > { %p3008_p9 = pnand %p3007_p5, %p3001_p10 }
 0x181   : > { %3011 = shalt.err (!%p3008_p9)
}
 0x182   : > { %2498 = dma.hbm_to_vmem [thread:$0]  (!%p4242_p6), %s4244_s30, 16, %s542_s5, [#allocation17]  }
 0x183   : > { %s3284_s16 = smov [#allocation21]   ;;  %s3285_s21 = smov [#allocation24]  }
 0x184   : > { %s565_s4 = sshll.u32 %s3284_s16, 4  ;;  %s589_s11 = sshll.u32 %s3285_s21, 4  ;;  %s566_s4 = int_to_ptr.vmem [resolvable:$true] %s565_s4  ;;  %s590_s11 = int_to_ptr.vmem [resolvable:$true] %s589_s11 }
 0x185   : > { %s4245_s7 = sld [smem:[#allocation55_spill]] }
 0x18b   : > { %s3012_s6 = scalar_lea.hbm %s4245_s7, 16 }
 0x18c   : > { %p3013_p1 = scmp.ne.s32.totalorder %s4245_s7, %s3012_s6  ;;  %p3019_p13 = scmp.lt.u32.totalorder %s3012_s6, %s4245_s7 }
 0x18e   : > { %p3015_p7 = pnand %p3013_p1, %p4241_p8 }
 0x190   : > { %p3016_p11 = pneg %p3015_p7 }
 0x192   : > { %p3021_p12 = pnand %p3019_p13, %p3016_p11 }
 0x194   : > { %3024 = shalt.err (!%p3021_p12)
}
 0x195   : > { %s3025_s5 = scalar_lea.vmem %s566_s4, 16  ;;  %s3032_s29 = scalar_lea.vmem %s566_s4, 32 }
 0x196   : > { %p3026_p2 = scmp.ne.s32.totalorder %s566_s4, %s3025_s5  ;;  %p3033_p3 = scmp.lt.s32.totalorder %s566_s4, %s566_s4 }
 0x197   : > { %p3034_p0 = scmp.lt.s32.totalorder %s3032_s29, %s3025_s5 }
 0x198   : > { %p3028_p4 = pnand %p3026_p2, %p4241_p8 }
 0x199   : > { %p3035_p5 = por %p3034_p0, %p3033_p3 }
 0x19a   : > { %p3029_p10 = pneg %p3028_p4 }
 0x19c   : > { %p3036_p9 = pnand %p3035_p5, %p3029_p10 }
 0x19e   : > { %3039 = shalt.err (!%p3036_p9)
}
 0x19f   : > { %2504 = dma.hbm_to_vmem [thread:$0]  (!%p4242_p6), %s4245_s7, 16, %s566_s4, [#allocation20]  }
 0x1a0   : > { %s4246_s2 = sld [smem:[#allocation57_spill]] }
 0x1a6   : > { %s3040_s28 = scalar_lea.hbm %s4246_s2, 16 }
 0x1a7   : > { %p3041_p1 = scmp.ne.s32.totalorder %s4246_s2, %s3040_s28  ;;  %p3047_p13 = scmp.lt.u32.totalorder %s3040_s28, %s4246_s2 }
 0x1a9   : > { %p3043_p7 = pnand %p3041_p1, %p4241_p8 }
 0x1ab   : > { %p3044_p11 = pneg %p3043_p7 }
 0x1ad   : > { %p3049_p12 = pnand %p3047_p13, %p3044_p11 }
 0x1af   : > { %3052 = shalt.err (!%p3049_p12)
}
 0x1b0   : > { %s3053_s29 = scalar_lea.vmem %s590_s11, 16  ;;  %s3060_s4 = scalar_lea.vmem %s590_s11, 32 }
 0x1b1   : > { %p3054_p2 = scmp.ne.s32.totalorder %s590_s11, %s3053_s29  ;;  %p3061_p3 = scmp.lt.s32.totalorder %s590_s11, %s590_s11 }
 0x1b2   : > { %p3062_p0 = scmp.lt.s32.totalorder %s3060_s4, %s3053_s29 }
 0x1b3   : > { %p3056_p4 = pnand %p3054_p2, %p4241_p8 }
 0x1b4   : > { %p3063_p5 = por %p3062_p0, %p3061_p3 }
 0x1b5   : > { %p3057_p10 = pneg %p3056_p4 }
 0x1b7   : > { %p3064_p9 = pnand %p3063_p5, %p3057_p10 }
 0x1b9   : > { %3067 = shalt.err (!%p3064_p9)
}
 0x1ba   : > { %2510 = dma.hbm_to_vmem [thread:$0]  (!%p4242_p6), %s4246_s2, 16, %s590_s11, [#allocation23]  }
 0x1bb   : > { %s3286_s6 = smov [#allocation27]   ;;  %s2195_s28 = sshll.u32 %s3665_s10, 3 }
 0x1bc   : > { %s611_s8 = sshll.u32 %s3286_s6, 4  ;;  %s4247_s13 = sld [smem:[#allocation59_spill]]  ;;  %s612_s8 = int_to_ptr.vmem [resolvable:$true] %s611_s8 }
 0x1c2   : > { %s3068_s5 = scalar_lea.hbm %s4247_s13, 16 }
 0x1c3   : > { %p3069_p1 = scmp.ne.s32.totalorder %s4247_s13, %s3068_s5  ;;  %p3075_p13 = scmp.lt.u32.totalorder %s3068_s5, %s4247_s13 }
 0x1c5   : > { %p3071_p7 = pnand %p3069_p1, %p4241_p8 }
 0x1c7   : > { %p3072_p11 = pneg %p3071_p7 }
 0x1c9   : > { %p3077_p12 = pnand %p3075_p13, %p3072_p11 }
 0x1cb   : > { %3080 = shalt.err (!%p3077_p12)
}
 0x1cc   : > { %s3081_s11 = scalar_lea.vmem %s612_s8, 16  ;;  %s3088_s21 = scalar_lea.vmem %s612_s8, 32 }
 0x1cd   : > { %p3082_p2 = scmp.ne.s32.totalorder %s612_s8, %s3081_s11  ;;  %p3089_p3 = scmp.lt.s32.totalorder %s612_s8, %s612_s8 }
 0x1ce   : > { %p3090_p0 = scmp.lt.s32.totalorder %s3088_s21, %s3081_s11 }
 0x1cf   : > { %p3084_p4 = pnand %p3082_p2, %p4241_p8 }
 0x1d0   : > { %p3091_p5 = por %p3090_p0, %p3089_p3 }
 0x1d1   : > { %p3085_p10 = pneg %p3084_p4 }
 0x1d3   : > { %p3092_p9 = pnand %p3091_p5, %p3085_p10 }
 0x1d5   : > { %3095 = shalt.err (!%p3092_p9)
}
 0x1d6   : > { %2516 = dma.hbm_to_vmem [thread:$0]  (!%p4242_p6), %s4247_s13, 16, %s612_s8, [#allocation26]  }
 0x1d7   : > { %s2196_s7 = sshll.u32 %s3266_s27, 7  ;;  %s4248_s5 = sld [smem:[#allocation44_spill]] }
 0x1d8   : > { %s647_s4 = scalar_lea.vmem [#allocation5], %s2195_s28  ;;  %s4249_s1 = sand.u32 1, %s3266_s27  }
 0x1d9   : > { %s654_s16 = sshll.u32 %s647_s4, 4  ;;  %s644_s11 = scalar_lea.sflag [#allocation6], %s4249_s1  ;;  %s655_s16 = int_to_ptr.vmem [resolvable:$true] %s654_s16 }
 0x1da   : > { %p4250_p1 = scmp.ne.s32.totalorder %s4237_s12, 0 }
 0x1dd   : > { %s3833_s29 = scalar_lea.hbm %s4248_s5, %s2196_s7  ;;  %s3101_s9 = scalar_lea.hbm %s4248_s5, 256 }
 0x1de   : > { %s3096_s21 = scalar_lea.hbm %s3833_s29, 128  ;;  %p3102_p11 = scmp.lt.u32.totalorder %s3833_s29, %s4248_s5 }
 0x1df   : > { %p3097_p8 = scmp.ne.s32.totalorder %s3833_s29, %s3096_s21  ;;  %p3103_p13 = scmp.lt.u32.totalorder %s3101_s9, %s3096_s21 }
 0x1e0   : > { %p3105_p2 = scmp.lt.u32.totalorder %s3096_s21, %s3833_s29 }
 0x1e1   : > { %p3099_p7 = pnand %p3097_p8, %p4250_p1  ;;  %p3104_p12 = por %p3103_p13, %p3102_p11 }
 0x1e3   : > { %p3100_p6 = pneg %p3099_p7  ;;  %p3106_p4 = por %p3105_p2, %p3104_p12 }
 0x1e5   : > { %p3107_p10 = pnand %p3106_p4, %p3100_p6 }
 0x1e7   : > { %3110 = shalt.err (!%p3107_p10)
}
 0x1e8   : > { %s3111_s28 = scalar_lea.vmem %s655_s16, 128  ;;  %s3287_s18 = smov [#allocation5]  }
 0x1e9   : > { %p3112_p3 = scmp.ne.s32.totalorder %s655_s16, %s3111_s28  ;;  %s3116_s4 = sshll.u32 %s3287_s18, 4  ;;  %s3117_s4 = int_to_ptr.vmem [resolvable:$false] %s3116_s4 }
 0x1ea   : > { %s3118_s1 = scalar_lea.vmem %s3117_s4, 256  ;;  %p3119_p9 = scmp.lt.s32.totalorder %s655_s16, %s3117_s4 }
 0x1eb   : > { %p3114_p0 = pnand %p3112_p3, %p4250_p1  ;;  %p3120_p8 = scmp.lt.s32.totalorder %s3118_s1, %s3111_s28 }
 0x1ed   : > { %p3115_p5 = pneg %p3114_p0  ;;  %p3121_p7 = por %p3120_p8, %p3119_p9 }
 0x1ef   : > { %p3122_p11 = pnand %p3121_p7, %p3115_p5 }
 0x1f1   : > { %3125 = shalt.err (!%p3122_p11)
}
 0x1f2   : > { %p4251_p13 = scmp.ne.s32.totalorder %s4235_s3, 0  ;;  %s2197_s21 = sshll.u32 %s3266_s27, 4 }
 0x1f3   : > { %s664_s8 = scalar_lea.vmem [#allocation10], %s3665_s10  ;;  %s4252_s15 = sld [smem:[#allocation47_spill]] }
 0x1f4   : > { %2523 = dma.hbm_to_vmem [thread:$0]  (!%p4251_p13), %s3833_s29, 128, %s655_s16, %s644_s11  }
 0x1f5   : > { %s671_s6 = sshll.u32 %s664_s8, 4  ;;  %s672_s6 = int_to_ptr.vmem [resolvable:$true] %s671_s6 }
 0x1f9   : > { %s669_s18 = scalar_lea.hbm %s4252_s15, %s2197_s21  ;;  %s3131_s2 = scalar_lea.hbm %s4252_s15, 32 }
 0x1fa   : > { %s3126_s4 = scalar_lea.hbm %s669_s18, 16  ;;  %p3132_p4 = scmp.lt.u32.totalorder %s669_s18, %s4252_s15 }
 0x1fb   : > { %p3127_p6 = scmp.ne.s32.totalorder %s669_s18, %s3126_s4  ;;  %p3133_p10 = scmp.lt.u32.totalorder %s3131_s2, %s3126_s4 }
 0x1fc   : > { %p3135_p0 = scmp.lt.u32.totalorder %s3126_s4, %s669_s18 }
 0x1fd   : > { %p3129_p12 = pnand %p3127_p6, %p4250_p1  ;;  %p3134_p3 = por %p3133_p10, %p3132_p4 }
 0x1ff   : > { %p3130_p2 = pneg %p3129_p12  ;;  %p3136_p5 = por %p3135_p0, %p3134_p3 }
 0x201   : > { %p3137_p9 = pnand %p3136_p5, %p3130_p2 }
 0x203   : > { %3140 = shalt.err (!%p3137_p9)
}
 0x204   : > { %s3141_s10 = scalar_lea.vmem %s672_s6, 16  ;;  %s3288_s29 = smov [#allocation10]  }
 0x205   : > { %p3142_p8 = scmp.ne.s32.totalorder %s672_s6, %s3141_s10  ;;  %s3146_s16 = sshll.u32 %s3288_s29, 4  ;;  %s3147_s16 = int_to_ptr.vmem [resolvable:$false] %s3146_s16 }
 0x206   : > { %s3148_s11 = scalar_lea.vmem %s3147_s16, 32  ;;  %p3149_p6 = scmp.lt.s32.totalorder %s672_s6, %s3147_s16 }
 0x207   : > { %p3144_p7 = pnand %p3142_p8, %p4250_p1  ;;  %p3150_p12 = scmp.lt.s32.totalorder %s3148_s11, %s3141_s10 }
 0x209   : > { %p3145_p11 = pneg %p3144_p7  ;;  %p3151_p13 = por %p3150_p12, %p3149_p6 }
 0x20b   : > { %p3152_p4 = pnand %p3151_p13, %p3145_p11 }
 0x20d   : > { %3155 = shalt.err (!%p3152_p4)
}
 0x20e   : > { %p4253_p10 = scmp.ne.s32.totalorder %s4235_s3, 0  ;;  %s4254_s2 = sld [smem:[#allocation42_spill]] }
 0x210   : > { %2526 = dma.hbm_to_vmem [thread:$0]  (!%p4253_p10), %s669_s18, 16, %s672_s6, %s3686_s23  }
 0x214   : > { %p4255_p2 = scmp.ne.s32.totalorder %s4254_s2, 0 }
 0x215   : > { %s682_s12 = sand.u32 (!%p4255_p2), 1, %s3408_s0   ;;  %s3876_s13 = sand.u32 (!%p4255_p2), 1, %s3258_s25  }
 0x216   : > { %680 = sbr.rel (%p4255_p2) target bundleno = 3832 (0xef8), region = 88  ;;  %s2199_s5 = sshll.u32 (!%p4255_p2), %s3876_s13, 4 }
 0x217   : > { %s683_s21 = scalar_lea.sflag (!%p4255_p2), [#allocation3], %s682_s12  ;;  %s3881_s8 = scalar_lea.vmem (!%p4255_p2), [#allocation2], %s2199_s5 }
 0x218   : > { %p4256_p1 = scmp.ne.s32.totalorder (!%p4255_p2), %s4231_s19, 0 }
 0x21d   : > { %3201 = dma.done.wait (%p4256_p1), %s683_s21, 256  }
 0x21e   : > { %3203 = vsyncadd (%p4256_p1), %s683_s21, 4294967040  ;;  %s2200_s3 = sshll.u32 %s3876_s13, 3  ;;  %s692_s23 = scalar_lea.sflag [#allocation6], %s682_s12 }
 0x21f   : > { %s3888_s6 = scalar_lea.vmem [#allocation5], %s2200_s3 }
 0x220   : > { %3205 = dma.done.wait (%p4256_p1), %s692_s23, 128  }
 0x221   : > { %3207 = vsyncadd (%p4256_p1), %s692_s23, 4294967168  ;;  %p4257_p13 = scmp.eq.s32.totalorder %s3408_s0, 0 }
 0x223   : > { %3209 = dma.done.wait (%p4257_p13), [#allocation6], 256   ;;  %p4258_p3 = pmov %p4257_p13 }
 0x225   : > { %3211 = vsyncadd (%p4258_p3), [#allocation6], 4294967040  ;;  %p4259_p0 = pmov %p4258_p3 }
 0x227   : > { %3213 = dma.done.wait (%p4259_p0), [#allocation9], 128   ;;  %p4260_p5 = pmov %p4259_p0 }
 0x228   : > { %s711_s9 = scalar_lea.vmem [#allocation10], %s3876_s13 }
 0x229   : > { %3215 = vsyncadd (%p4260_p5), [#allocation9], 4294967168 }
 0x22a   : > { %3217 = dma.done.wait (%p4256_p1), %s683_s21, 16  }
 0x22b   : > { %3219 = vsyncadd (%p4256_p1), %s683_s21, 4294967280  ;;  %p4261_p9 = pmov %p4259_p0 }
 0x22c   : > { %p4262_p8 = pmov %p4259_p0 }
 0x22d   : > { %3221 = dma.done.wait (%p4261_p9), [#allocation6], 16  }
 0x22e   : > { %3223 = vsyncadd (%p4262_p8), [#allocation6], 4294967280  ;;  %p4263_p7 = pmov %p4259_p0 }
 0x22f   : > { %p4264_p11 = pmov %p4259_p0 }
 0x230   : > { %3225 = dma.done.wait (%p4263_p7), [#allocation9], 16  }
 0x231   : > { %3227 = vsyncadd (%p4264_p11), [#allocation9], 4294967280  ;;  %p4265_p6 = pmov %p4259_p0 }
 0x232   : > { %p4266_p12 = pmov %p4259_p0 }
 0x233   : > { %3229 = dma.done.wait (%p4265_p6), [#allocation14], 528  }
 0x234   : > { %3231 = vsyncadd (%p4266_p12), [#allocation14], 4294966768  ;;  %p4267_p4 = pmov %p4259_p0 }
 0x235   : > { %p4268_p10 = pmov %p4259_p0 }
 0x236   : > { %3233 = dma.done.wait (%p4267_p4), [#allocation17], 528  }
 0x237   : > { %3235 = vsyncadd (%p4268_p10), [#allocation17], 4294966768  ;;  %p4269_p2 = pmov %p4259_p0 }
 0x238   : > { %p4270_p1 = pmov %p4259_p0 }
 0x239   : > { %3237 = dma.done.wait (%p4269_p2), [#allocation20], 528  }
 0x23a   : > { %3239 = vsyncadd (%p4270_p1), [#allocation20], 4294966768  ;;  %p4271_p13 = pmov %p4259_p0 }
 0x23b   : > { %p4272_p3 = pmov %p4259_p0 }
 0x23c   : > { %3241 = dma.done.wait (%p4271_p13), [#allocation23], 528  }
 0x23d   : > { %3243 = vsyncadd (%p4272_p3), [#allocation23], 4294966768 }
 0x23e   : > { %3245 = dma.done.wait (%p4259_p0), [#allocation26], 32   ;;  %p4273_p5 = pmov %p4259_p0 }
 0x23f   : > { %vm825_vm0 = vcmask 523264   ;;  %v3936_v0 = vld [vmem:[%s3881_s8] sm:$0xff]  ;;  %v3939_v1 = vld [vmem:[%s3881_s8 + $0x8] sm:$0xff]  ;;  %v3289_v15 = vmov 0.0   ;;  %vm3290_vm1 = vmmov 0   ;;  %vm1138_vm2 = vcmask 130048  }
 0x240   : > { %3247 = vsyncadd (%p4273_p5), [#allocation26], 4294967264  ;;  %v826_v2 = vsel %vm825_vm0, %v3936_v0, 0.0  ;;  %v829_v3 = vsel %vm825_vm0, %v3939_v1, 0.0  ;;  %v2618_v14 = vld [vmem:[#allocation16] sm:$0xff]   ;;  %2314 = vmatprep.subr.bf16.mxu1 %v3289_v15  ;;  %2302 = vmatprep.subr.bf16.mxu0 %v3289_v15  ;;  %v2619_v16 = vld [vmem:[#allocation16 + $0x8] sm:$0xff]  }
 0x241   : > { %827 = vadd.xlane.f32.xlu0 %v826_v2  ;;  %2315 = vmatpush3.bf16.msra.mxu1 %v2618_v14  ;;  %v2620_v17 = vld [vmem:[#allocation16 + $0x10] sm:$0xff]   ;;  %v2621_v18 = vld [vmem:[#allocation13] sm:$0xff]   ;;  %v2623_v22 = vld [vmem:[#allocation13 + $0x8] sm:$0xff]   ;;  %s3291_s19 = smov 112   ;;  %vm1223_vm3 = vcmask 1043456   ;;  %vm1196_vm4 = vcmask 64512  }
 0x242   : > { %2316 = vmatprep.subr.bf16.mxu1 %v3289_v15  ;;  %2303 = vmatpush3.bf16.msra.mxu0 %v2621_v18  ;;  %v2622_v19 = vld [vmem:[#allocation16 + $0x18] sm:$0xff]   ;;  %v874_v21 = vld [vmem:[#allocation8] sm:$0xff]  ;;  %v869_v42 = vld [vmem:[#allocation7] sm:$0xff]  ;;  %s3292_s7 = smov 96   ;;  %s3293_s18 = smov 80  }
 0x243   : > { %2304 = vmatprep.subr.bf16.mxu0 %v3289_v15  ;;  %v3956_v20 = vld [vmem:[%s3888_s6] sm:$0xff]  ;;  %2322 = vmatprep.mubr.msk.bf16.mxu1 %vm3290_vm1, %v3289_v15  ;;  %v870_v43 = vld [vmem:[#allocation7 + $0x8] sm:$0xff]  ;;  %v2224_v48 = vld [vmem:[#allocation18] ss:$0 sm:$0xff]  ;;  %s2262_s4 = sshll.u32 %s3408_s0, 8  ;;  %s818_s28 = scalar_lea.vmem [#allocation28], %s2199_s5 }
 0x244   : > { %v875_v23 = vadd.f32 %v874_v21, %v3956_v20  ;;  %v2624_v25 = vld [vmem:[#allocation13 + $0x10] sm:$0xff]   ;;  %2310 = vmatprep.mubr.msk.bf16.mxu0 %vm3290_vm1, %v3289_v15  ;;  %v2625_v26 = vld [vmem:[#allocation13 + $0x18] sm:$0xff]   ;;  %v2626_v56 = vld [vmem:[#allocation19] sm:$0xff]   ;;  %v1042_v60 = vpack.c.bf16 %v3956_v20, %v3956_v20  ;;  %s1930_s1 = sshll.u32 %s818_s28, 4  ;;  %s4274_s16 = sld [smem:[#allocation60_spill]]  ;;  %s4107_s1 = int_to_ptr.vmem [resolvable:$true] %s1930_s1 }
 0x245   : > { %830 = vadd.xlane.f32.xlu0 %v829_v3  ;;  %2317 = vmatpush3.bf16.msra.mxu1 %v2619_v16  ;;  %v2216_v34 = vld [vmem:[#allocation11] ss:$0 sm:$0xff]  ;;  %v2217_v38 = vld [vmem:[#allocation12] ss:$0 sm:$0xff]  ;;  %v2627_v57 = vld [vmem:[#allocation19 + $0x8] sm:$0xff]   ;;  %s1917_s0 = scalar_lea.sflag [#allocation4], %s3876_s13 }
 0x246   : > { %2318 = vmatprep.subr.bf16.mxu1 %v3289_v15  ;;  %2305 = vmatpush3.bf16.msra.mxu0 %v2623_v22  ;;  %v876_v24 = vpack.c.bf16 %v875_v23, %v875_v23  ;;  %v2628_v58 = vld [vmem:[#allocation19 + $0x10] sm:$0xff]   ;;  %v2629_v59 = vld [vmem:[#allocation19 + $0x18] sm:$0xff]   ;;  %v4009_v20 = vld [vmem:[%s711_s9] ss:$0 sm:$0xff]  ;;  %s3156_s2 = scalar_lea.vmem %s4107_s1, 256  ;;  %p4275_p8 = scmp.ne.s32.totalorder %s4232_s22, 0 }
 0x247   : > { %2306 = vmatprep.subr.bf16.mxu0 %v3289_v15  ;;  %v2218_v63 = vld [vmem:[#allocation15] ss:$0 sm:$0xff]  ;;  %p3157_p9 = scmp.ne.s32.totalorder %s4107_s1, %s3156_s2  ;;  %s3294_s12 = smov [#allocation28]  }
 0x248   : > { %s3160_s5 = sshll.u32 %s3294_s12, 4  ;;  %s3161_s5 = int_to_ptr.vmem [resolvable:$false] %s3160_s5 }
 0x249   : > { %2319 = vmatpush3.bf16.msra.mxu1 %v2620_v17  ;;  %p3158_p7 = pnand %p3157_p9, %p4275_p8  ;;  %s3162_s21 = scalar_lea.vmem %s3161_s5, 512 }
 0x24a   : > { %2320 = vmatprep.subr.bf16.mxu1 %v3289_v15  ;;  %2307 = vmatpush3.bf16.msra.mxu0 %v2624_v25  ;;  %s4105_s11 = scalar_lea.hbm %s4274_s16, %s2262_s4  ;;  %p3163_p6 = scmp.lt.s32.totalorder %s4107_s1, %s3161_s5 }
 0x24b   : > { %2308 = vmatprep.subr.bf16.mxu0 %v3289_v15  ;;  %p3159_p11 = pneg %p3158_p7  ;;  %p3164_p12 = scmp.lt.s32.totalorder %s3162_s21, %s3156_s2 }
 0x24d   : > { %2321 = vmatpush3.bf16.msra.mxu1 %v2622_v19  ;;  %p3165_p4 = por %p3164_p12, %p3163_p6 }
 0x24e   : > { %2338 = vmatprep.subr.bf16.mxu1 %v3289_v15  ;;  %2309 = vmatpush3.bf16.msra.mxu0 %v2625_v26 }
 0x24f   : > { %2326 = vmatprep.subr.bf16.mxu0 %v3289_v15  ;;  %p3166_p10 = pnand %p3165_p4, %p3159_p11 }
 0x250   : > { %2323 = vmatmul.mubr.msk.bf16.vlgmr.msra.gmra.mrb[0].mxu1 %vm825_vm0, %v876_v24 }
 0x251   : > { %2340 = vmatprep.mubr.msk.bf16.mxu1 %vm3290_vm1, %v3289_v15 }
 0x2ce   : > { %v828_v4 = vpop.xlane.xlu0 %827 }
 0x2cf   : > { %v833_v5 = vmul.f32 0.015625, %v828_v4 }
 0x2d1   : > { %v835_v6 = vsub.f32 %v3936_v0, %v833_v5 }
 0x2d2   : > { %v831_v7 = vpop.xlane.xlu0 %830 }
 0x2d3   : > { %v834_v8 = vmul.f32 0.015625, %v831_v7  ;;  %v837_v9 = vmul.f32 %v835_v6, %v835_v6 }
 0x2d5   : > { %v836_v10 = vsub.f32 %v3939_v1, %v834_v8  ;;  %v839_v11 = vsel %vm825_vm0, %v837_v9, 0.0  ;;  %v2230_v9 = vld [vmem:[#allocation21] ss:$0 sm:$0xff] }
 0x2d6   : > { %840 = vadd.xlane.f32.xlu1 %v839_v11 }
 0x2d7   : > { %v838_v12 = vmul.f32 %v836_v10, %v836_v10 }
 0x2d9   : > { %v842_v13 = vsel %vm825_vm0, %v838_v12, 0.0 }
 0x2da   : > { %843 = vadd.xlane.f32.xlu1 %v842_v13 }
 0x323   : > { %v1036_v49 = vpop.f32.mrb[0].mxu1 }
 0x324   : > { %v1037_v50 = vadd.f32 %v2224_v48, %v1036_v49  ;;  %v2324_v51 = vpop.f32.mrb[1].mxu1 }
 0x325   : > { %v1039_v52 = vpop.f32.mrb[2].mxu1 }
 0x326   : > { %v3973_v53 = vpack.c.bf16 %v1037_v50, %v1037_v50  ;;  %v2325_v54 = vpop.f32.mrb[3].mxu1 }
 0x328   : > { %1273 = vrot.lane.b32.xlu0 %v3973_v53, %s3291_s19  ;;  %v1143_v55 = vsel %vm1138_vm2, %v3973_v53, 0 }
 0x329   : > { %2339 = vmatpush3.bf16.xpose.msra.mxu1 %v1143_v55 }
 0x32a   : > { %2344 = vmatprep.subr.bf16.mxu1 %v3289_v15 }
 0x363   : > { %v841_v27 = vpop.xlane.xlu1 %840 }
 0x364   : > { %v845_v28 = vmul.f32 0.015625, %v841_v27 }
 0x366   : > { %v847_v29 = vadd.f32 1e-05, %v845_v28 }
 0x367   : > { %v844_v30 = vpop.xlane.xlu1 %843 }
 0x368   : > { %2634 = vrsqrt.f32 %v847_v29  ;;  %v846_v31 = vmul.f32 0.015625, %v844_v30 }
 0x36a   : > { %v848_v32 = vadd.f32 1e-05, %v846_v31 }
 0x36c   : > { %2636 = vrsqrt.f32 %v848_v32 }
 0x372   : > { %v2635_v33 = vpop.eup %2634 }
 0x373   : > { %v851_v35 = vmul.f32 %v2635_v33, %v835_v6 }
 0x375   : > { %v859_v36 = vmul.f32 %v2216_v34, %v851_v35 }
 0x376   : > { %v2637_v37 = vpop.eup %2636 }
 0x377   : > { %v852_v39 = vmul.f32 %v2637_v37, %v836_v10  ;;  %v867_v41 = vadd.f32 %v2217_v38, %v859_v36 }
 0x379   : > { %v860_v40 = vmul.f32 %v2216_v34, %v852_v39  ;;  %v871_v45 = vadd.f32 %v869_v42, %v867_v41 }
 0x37b   : > { %v868_v44 = vadd.f32 %v2217_v38, %v860_v40 }
 0x37d   : > { %v872_v46 = vadd.f32 %v870_v43, %v868_v44 }
 0x37f   : > { %v873_v47 = vpack.c.bf16 %v872_v46, %v871_v45 }
 0x381   : > { %2311 = vmatmul.mubr.msk.bf16.vlgmr.msra.gmra.mrb[0].mxu0 %vm825_vm0, %v873_v47 }
 0x382   : > { %2334 = vmatprep.mubr.msk.bf16.mxu0 %vm3290_vm1, %v3289_v15  ;;  %2327 = vmatpush3.bf16.msra.mxu0 %v2626_v56 }
 0x383   : > { %2328 = vmatprep.subr.bf16.mxu0 %v3289_v15 }
 0x386   : > { %2329 = vmatpush3.bf16.msra.mxu0 %v2627_v57 }
 0x387   : > { %2330 = vmatprep.subr.bf16.mxu0 %v3289_v15 }
 0x38a   : > { %2331 = vmatpush3.bf16.msra.mxu0 %v2628_v58 }
 0x38b   : > { %2332 = vmatprep.subr.bf16.mxu0 %v3289_v15 }
 0x38e   : > { %2333 = vmatpush3.bf16.msra.mxu0 %v2629_v59 }
 0x38f   : > { %2350 = vmatprep.subr.bf16.mxu0 %v3289_v15 }
 0x391   : > { %2335 = vmatmul.mubr.msk.bf16.vlgmr.msra.gmra.mrb[4].mxu0 %vm825_vm0, %v1042_v60 }
 0x392   : > { %2352 = vmatprep.mubr.msk.bf16.mxu0 %vm3290_vm1, %v3289_v15 }
 0x39a   : > { %v1274_v61 = vpop.permute.xlu0 %1273 }
 0x39b   : > { %v1279_v62 = vsel %vm1138_vm2, %v1274_v61, 0 }
 0x39c   : > { %2351 = vmatpush3.bf16.xpose.msra.mxu0 %v1279_v62 }
 0x39d   : > { %2362 = vmatprep.subr.bf16.mxu0 %v3289_v15 }
 0x454   : > { %v953_v2 = vpop.f32.mrb[0].mxu0 }
 0x455   : > { %v2312_v3 = vpop.f32.mrb[1].mxu0  ;;  %v954_v5 = vadd.f32 %v2218_v63, %v953_v2 }
 0x456   : > { %v956_v4 = vpop.f32.mrb[2].mxu0 }
 0x457   : > { %v957_v6 = vadd.f32 %v2218_v63, %v956_v4  ;;  %v2313_v7 = vpop.f32.mrb[3].mxu0 }
 0x459   : > { %v3991_v8 = vpack.c.bf16 %v957_v6, %v954_v5  ;;  %v2631_v6 = vld [vmem:[#allocation22 + $0x8] sm:$0xff]  }
 0x45b   : > { %1270 = vrot.lane.b32.xlu1 %v3991_v8, %s3291_s19  ;;  %2341 = vmatmul.mubr.msk.bf16.vlgmr.msra.gmra.mrb[4].mxu1 %vm1138_vm2, %v3991_v8 }
 0x45c   : > { %2346 = vmatprep.mubr.msk.bf16.mxu1 %vm3290_vm1, %v3289_v15 }
 0x464   : > { %v1119_v10 = vpop.f32.mrb[4].mxu0 }
 0x465   : > { %v1120_v11 = vadd.f32 %v2230_v9, %v1119_v10  ;;  %v2336_v12 = vpop.f32.mrb[5].mxu0 }
 0x466   : > { %v1122_v13 = vpop.f32.mrb[6].mxu0 }
 0x467   : > { %v3999_v14 = vpack.c.bf16 %v1120_v11, %v1120_v11  ;;  %v2337_v16 = vpop.f32.mrb[7].mxu0 }
 0x469   : > { %v1225_v17 = vsel %vm1223_vm3, %v3999_v14, 0 }
 0x46a   : > { %2345 = vmatpush3.bf16.msra.mxu1 %v1225_v17 }
 0x46b   : > { %2356 = vmatprep.subr.bf16.mxu1 %v3289_v15 }
 0x4cd   : > { %v1271_v18 = vpop.permute.xlu1 %1270 }
 0x4ce   : > { %2353 = vmatmul.mubr.msk.bf16.vlgmr.msra.gmra.mrb[8].mxu0 %vm1138_vm2, %v1271_v18  ;;  %v2630_v18 = vld [vmem:[#allocation22] sm:$0xff]  }
 0x4cf   : > { %2364 = vmatprep.mubr.msk.bf16.mxu0 %vm3290_vm1, %v3289_v15  ;;  %2363 = vmatpush3.bf16.msra.mxu0 %v2631_v6 }
 0x4d0   : > { %2374 = vmatprep.subr.bf16.mxu0 %v3289_v15 }
 0x52e   : > { %v1179_v19 = vpop.f32.mrb[4].mxu1 }
 0x52f   : > { %v1186_v21 = vmul.f32 0.25, %v1179_v19  ;;  %v2342_v22 = vpop.f32.mrb[5].mxu1 }
 0x530   : > { %v1182_v23 = vpop.f32.mrb[6].mxu1 }
 0x531   : > { %v1187_v24 = vmul.f32 0.25, %v1182_v23  ;;  %v2343_v25 = vpop.f32.mrb[7].mxu1  ;;  %v1194_v26 = vadd.f32 %v4009_v20, %v1186_v21 }
 0x533   : > { %v1197_v27 = vsel %vm1196_vm4, %v1194_v26, -inf  ;;  %v1195_v28 = vadd.f32 %v4009_v20, %v1187_v24 }
 0x534   : > { %1198 = vmax.xlane.f32.xlu1 %v1197_v27 }
 0x535   : > { %v1200_v29 = vsel %vm1196_vm4, %v1195_v28, -inf }
 0x536   : > { %1201 = vmax.xlane.f32.xlu0 %v1200_v29 }
 0x5a1   : > { %v1315_v30 = vpop.f32.mrb[8].mxu0 }
 0x5a2   : > { %v1322_v31 = vmul.f32 0.25, %v1315_v30  ;;  %v2354_v32 = vpop.f32.mrb[9].mxu0 }
 0x5a3   : > { %v1318_v33 = vpop.f32.mrb[10].mxu0 }
 0x5a4   : > { %v1323_v34 = vmul.f32 0.25, %v1318_v33  ;;  %v2355_v35 = vpop.f32.mrb[11].mxu0  ;;  %v1324_v36 = vadd.f32 %v4009_v20, %v1322_v31 }
 0x5a6   : > { %v1326_v37 = vsel %vm1196_vm4, %v1324_v36, -inf  ;;  %v1325_v38 = vadd.f32 %v4009_v20, %v1323_v34 }
 0x5a7   : > { %1327 = vmax.xlane.f32.xlu0 %v1326_v37 }
 0x5a8   : > { %v1329_v39 = vsel %vm1196_vm4, %v1325_v38, -inf }
 0x5a9   : > { %1330 = vmax.xlane.f32.xlu1 %v1329_v39 }
 0x5c1   : > { %v1199_v40 = vpop.xlane.xlu1 %1198 }
 0x5c2   : > { %v1203_v41 = vsub.f32 %v1194_v26, %v1199_v40 }
 0x5c3   : > { %v1202_v42 = vpop.xlane.xlu0 %1201 }
 0x5c4   : > { %v1205_v43 = vmul.f32 1.442695, %v1203_v41  ;;  %v1204_v44 = vsub.f32 %v1195_v28, %v1202_v42 }
 0x5c6   : > { %2638 = vpow2.f32 %v1205_v43  ;;  %v1207_v45 = vmul.f32 1.442695, %v1204_v44 }
 0x5c8   : > { %2640 = vpow2.f32 %v1207_v45 }
 0x5d0   : > { %v2639_v46 = vpop.eup %2638 }
 0x5d1   : > { %v1209_v47 = vsel %vm1196_vm4, %v2639_v46, 0.0 }
 0x5d2   : > { %v2641_v48 = vpop.eup %2640  ;;  %1210 = vadd.xlane.f32.xlu0 %v1209_v47 }
 0x5d3   : > { %v1212_v49 = vsel %vm1196_vm4, %v2641_v48, 0.0 }
 0x5d4   : > { %1213 = vadd.xlane.f32.xlu1 %v1212_v49 }
 0x634   : > { %v1328_v50 = vpop.xlane.xlu0 %1327 }
 0x635   : > { %v1332_v51 = vsub.f32 %v1324_v36, %v1328_v50 }
 0x636   : > { %v1331_v52 = vpop.xlane.xlu1 %1330 }
 0x637   : > { %v1334_v54 = vmul.f32 1.442695, %v1332_v51  ;;  %v1333_v55 = vsub.f32 %v1325_v38, %v1331_v52 }
 0x639   : > { %2642 = vpow2.f32 %v1334_v54  ;;  %v1336_v56 = vmul.f32 1.442695, %v1333_v55 }
 0x63b   : > { %2644 = vpow2.f32 %v1336_v56 }
 0x643   : > { %v2643_v57 = vpop.eup %2642 }
 0x644   : > { %v1338_v58 = vsel %vm1196_vm4, %v2643_v57, 0.0 }
 0x645   : > { %v2645_v59 = vpop.eup %2644  ;;  %1339 = vadd.xlane.f32.xlu0 %v1338_v58 }
 0x646   : > { %v1341_v60 = vsel %vm1196_vm4, %v2645_v59, 0.0 }
 0x647   : > { %1342 = vadd.xlane.f32.xlu1 %v1341_v60 }
 0x658   : > { %1502 = vrot.lane.b32.xlu1 %v3973_v53, %s3292_s7 }
 0x65b   : > { %1350 = vrot.lane.b32.xlu0 %v3999_v14, %s3291_s19 }
 0x65c   : > { %1500 = vrot.lane.b32.xlu1 %v3991_v8, %s3292_s7 }
 0x65f   : > { %v1211_v61 = vpop.xlane.xlu0 %1210 }
 0x660   : > { %2646 = vrcp.f32 %v1211_v61 }
 0x661   : > { %v1214_v62 = vpop.xlane.xlu1 %1213 }
 0x662   : > { %2648 = vrcp.f32 %v1214_v62 }
 0x66a   : > { %v2647_v63 = vpop.eup %2646 }
 0x66b   : > { %v1217_v3 = vmul.f32 %v2647_v63, %v2639_v46 }
 0x66c   : > { %v2649_v2 = vpop.eup %2648 }
 0x66d   : > { %v1218_v4 = vmul.f32 %v2649_v2, %v2641_v48 }
 0x66f   : > { %v1219_v5 = vpack.c.bf16 %v1218_v4, %v1217_v3 }
 0x671   : > { %2347 = vmatmul.mubr.msk.bf16.vlgmr.msra.gmra.mrb[8].mxu1 %vm1196_vm4, %v1219_v5 }
 0x672   : > { %2358 = vmatprep.mubr.msk.bf16.mxu1 %vm3290_vm1, %v3289_v15 }
 0x6d2   : > { %v1340_v7 = vpop.xlane.xlu0 %1339 }
 0x6d3   : > { %2650 = vrcp.f32 %v1340_v7 }
 0x6d4   : > { %v1343_v9 = vpop.xlane.xlu1 %1342 }
 0x6d5   : > { %2652 = vrcp.f32 %v1343_v9 }
 0x6d6   : > { %v1351_v10 = vpop.permute.xlu0 %1350 }
 0x6d7   : > { %v1356_v11 = vsel %vm1223_vm3, %v1351_v10, 0 }
 0x6d8   : > { %2357 = vmatpush3.bf16.msra.mxu1 %v1356_v11  ;;  %v1503_v28 = vpop.permute.xlu1 %1502 }
 0x6d9   : > { %2368 = vmatprep.subr.bf16.mxu1 %v3289_v15  ;;  %v1508_v32 = vsel %vm1138_vm2, %v1503_v28, 0 }
 0x6dc   : > { %v1501_v33 = vpop.permute.xlu1 %1500 }
 0x6dd   : > { %v2651_v12 = vpop.eup %2650 }
 0x6de   : > { %v1346_v16 = vmul.f32 %v2651_v12, %v2643_v57 }
 0x6df   : > { %v2653_v13 = vpop.eup %2652 }
 0x6e0   : > { %v1347_v17 = vmul.f32 %v2653_v13, %v2645_v59 }
 0x6e2   : > { %v1348_v19 = vpack.c.bf16 %v1347_v17, %v1346_v16  ;;  %v2632_v16 = vld [vmem:[#allocation22 + $0x10] sm:$0xff]  }
 0x6e4   : > { %2359 = vmatmul.mubr.msk.bf16.vlgmr.msra.gmra.mrb[12].mxu1 %vm1196_vm4, %v1348_v19 }
 0x6e5   : > { %2369 = vmatpush3.bf16.msra.mxu1 %v2630_v18  ;;  %2370 = vmatprep.mubr.msk.bf16.mxu1 %vm3290_vm1, %v3289_v15 }
 0x6e6   : > { %2380 = vmatprep.subr.bf16.mxu1 %v3289_v15 }
 0x744   : > { %v1261_v21 = vpop.f32.mrb[8].mxu1 }
 0x745   : > { %v2348_v22 = vpop.f32.mrb[9].mxu1 }
 0x746   : > { %v1264_v23 = vpop.f32.mrb[10].mxu1 }
 0x747   : > { %v1268_v24 = vpack.c.bf16 %v1264_v23, %v1261_v21  ;;  %v2349_v25 = vpop.f32.mrb[11].mxu1 }
 0x749   : > { %2371 = vmatmul.mubr.msk.bf16.vlgmr.msra.gmra.mrb[16].mxu1 %vm1138_vm2, %v1268_v24 }
 0x74a   : > { %2382 = vmatprep.mubr.msk.bf16.mxu1 %vm3290_vm1, %v3289_v15 }
 0x7b7   : > { %v1392_v26 = vpop.f32.mrb[12].mxu1 }
 0x7b8   : > { %v2360_v27 = vpop.f32.mrb[13].mxu1 }
 0x7b9   : > { %v1395_v29 = vpop.f32.mrb[14].mxu1 }
 0x7ba   : > { %v1399_v30 = vpack.c.bf16 %v1395_v29, %v1392_v26  ;;  %v2361_v31 = vpop.f32.mrb[15].mxu1 }
 0x7bc   : > { %2365 = vmatmul.mubr.msk.bf16.vlgmr.msra.gmra.mrb[12].mxu0 %vm1138_vm2, %v1399_v30 }
 0x7bd   : > { %2375 = vmatpush3.bf16.xpose.msra.mxu0 %v1508_v32  ;;  %2376 = vmatprep.mubr.msk.bf16.mxu0 %vm3290_vm1, %v3289_v15 }
 0x7be   : > { %2386 = vmatprep.subr.bf16.mxu0 %v3289_v15 }
 0x7c4   : > { %2377 = vmatmul.mubr.msk.bf16.vlgmr.msra.gmra.mrb[16].mxu0 %vm1138_vm2, %v1501_v33 }
 0x7c5   : > { %2388 = vmatprep.mubr.msk.bf16.mxu0 %vm3290_vm1, %v3289_v15  ;;  %2387 = vmatpush3.bf16.msra.mxu0 %v2632_v16 }
 0x7c6   : > { %2398 = vmatprep.subr.bf16.mxu0 %v3289_v15 }
 0x81c   : > { %v1493_v34 = vpop.f32.mrb[16].mxu1 }
 0x81d   : > { %v2372_v35 = vpop.f32.mrb[17].mxu1 }
 0x81e   : > { %v1496_v36 = vpop.f32.mrb[18].mxu1 }
 0x81f   : > { %v2373_v37 = vpop.f32.mrb[19].mxu1 }
 0x88f   : > { %v1443_v38 = vpop.f32.mrb[12].mxu0 }
 0x890   : > { %v4050_v39 = vadd.f32 %v1493_v34, %v1443_v38  ;;  %v2366_v40 = vpop.f32.mrb[13].mxu0 }
 0x891   : > { %v1446_v41 = vpop.f32.mrb[14].mxu0 }
 0x892   : > { %v4052_v42 = vadd.f32 %v1496_v36, %v1446_v41  ;;  %v2367_v43 = vpop.f32.mrb[15].mxu0 }
 0x897   : > { %v1544_v44 = vpop.f32.mrb[16].mxu0 }
 0x898   : > { %v1551_v45 = vmul.f32 0.25, %v1544_v44  ;;  %v2378_v46 = vpop.f32.mrb[17].mxu0 }
 0x899   : > { %v1547_v47 = vpop.f32.mrb[18].mxu0 }
 0x89a   : > { %v1552_v48 = vmul.f32 0.25, %v1547_v47  ;;  %v2379_v49 = vpop.f32.mrb[19].mxu0  ;;  %v1553_v50 = vadd.f32 %v4009_v20, %v1551_v45 }
 0x89c   : > { %v1555_v51 = vsel %vm1196_vm4, %v1553_v50, -inf  ;;  %v1554_v52 = vadd.f32 %v4009_v20, %v1552_v48 }
 0x89d   : > { %1556 = vmax.xlane.f32.xlu1 %v1555_v51 }
 0x89e   : > { %v1558_v54 = vsel %vm1196_vm4, %v1554_v52, -inf }
 0x89f   : > { %1559 = vmax.xlane.f32.xlu0 %v1558_v54 }
 0x8ae   : > { %1578 = vrot.lane.b32.xlu1 %v3999_v14, %s3292_s7 }
 0x8b2   : > { %1680 = vrot.lane.b32.xlu1 %v3991_v8, %s3293_s18 }
 0x92a   : > { %v1557_v55 = vpop.xlane.xlu1 %1556 }
 0x92b   : > { %v1561_v56 = vsub.f32 %v1553_v50, %v1557_v55 }
 0x92c   : > { %v1560_v57 = vpop.xlane.xlu0 %1559 }
 0x92d   : > { %v1563_v58 = vmul.f32 1.442695, %v1561_v56  ;;  %v1562_v59 = vsub.f32 %v1554_v52, %v1560_v57 }
 0x92e   : > { %v1579_v60 = vpop.permute.xlu1 %1578 }
 0x92f   : > { %2654 = vpow2.f32 %v1563_v58  ;;  %v1565_v61 = vmul.f32 1.442695, %v1562_v59  ;;  %v1584_v62 = vsel %vm1223_vm3, %v1579_v60, 0 }
 0x930   : > { %2381 = vmatpush3.bf16.msra.mxu1 %v1584_v62 }
 0x931   : > { %2656 = vpow2.f32 %v1565_v61  ;;  %2392 = vmatprep.subr.bf16.mxu1 %v3289_v15 }
 0x939   : > { %v2655_v63 = vpop.eup %2654 }
 0x93a   : > { %v1567_v2 = vsel %vm1196_vm4, %v2655_v63, 0.0 }
 0x93b   : > { %v2657_v3 = vpop.eup %2656  ;;  %1568 = vadd.xlane.f32.xlu0 %v1567_v2 }
 0x93c   : > { %v1570_v8 = vsel %vm1196_vm4, %v2657_v3, 0.0 }
 0x93f   : > { %1571 = vadd.xlane.f32.xlu0 %v1570_v8 }
 0x955   : > { %1682 = vrot.lane.b32.xlu0 %v3973_v53, %s3293_s18  ;;  %v1681_v53 = vpop.permute.xlu1 %1680 }
 0x9c8   : > { %v1569_v4 = vpop.xlane.xlu0 %1568 }
 0x9c9   : > { %2658 = vrcp.f32 %v1569_v4 }
 0x9cc   : > { %v1572_v5 = vpop.xlane.xlu0 %1571 }
 0x9cd   : > { %2660 = vrcp.f32 %v1572_v5 }
 0x9d0   : > { %v1683_v11 = vpop.permute.xlu0 %1682 }
 0x9d1   : > { %v1688_v13 = vsel %vm1138_vm2, %v1683_v11, 0 }
 0x9d3   : > { %v2659_v6 = vpop.eup %2658 }
 0x9d4   : > { %v1575_v9 = vmul.f32 %v2659_v6, %v2655_v63  ;;  %v2253_v63 = vld [vmem:[#allocation24] ss:$0 sm:$0xff] }
 0x9d7   : > { %v2661_v7 = vpop.eup %2660 }
 0x9d8   : > { %v1576_v10 = vmul.f32 %v2661_v7, %v2657_v3 }
 0x9da   : > { %v1577_v12 = vpack.c.bf16 %v1576_v10, %v1575_v9 }
 0x9dc   : > { %2383 = vmatmul.mubr.msk.bf16.vlgmr.msra.gmra.mrb[20].mxu1 %vm1196_vm4, %v1577_v12 }
 0x9dd   : > { %2393 = vmatpush3.bf16.xpose.msra.mxu1 %v1688_v13  ;;  %2394 = vmatprep.mubr.msk.bf16.mxu1 %vm3290_vm1, %v3289_v15 }
 0x9de   : > { %2404 = vmatprep.subr.bf16.mxu1 %v3289_v15 }
 0x9e4   : > { %2395 = vmatmul.mubr.msk.bf16.vlgmr.msra.gmra.mrb[24].mxu1 %vm1138_vm2, %v1681_v53 }
 0x9e5   : > { %2406 = vmatprep.mubr.msk.bf16.mxu1 %vm3290_vm1, %v3289_v15 }
 0xaaf   : > { %v1620_v17 = vpop.f32.mrb[20].mxu1 }
 0xab0   : > { %v2384_v18 = vpop.f32.mrb[21].mxu1 }
 0xab1   : > { %v1623_v19 = vpop.f32.mrb[22].mxu1 }
 0xab2   : > { %v1627_v21 = vpack.c.bf16 %v1623_v19, %v1620_v17  ;;  %v2385_v22 = vpop.f32.mrb[23].mxu1 }
 0xab4   : > { %2389 = vmatmul.mubr.msk.bf16.vlgmr.msra.gmra.mrb[20].mxu0 %vm1138_vm2, %v1627_v21 }
 0xab5   : > { %2400 = vmatprep.mubr.msk.bf16.mxu0 %vm3290_vm1, %v3289_v15 }
 0xab7   : > { %v1724_v23 = vpop.f32.mrb[24].mxu1 }
 0xab8   : > { %v1731_v24 = vmul.f32 0.25, %v1724_v23  ;;  %v2396_v25 = vpop.f32.mrb[25].mxu1 }
 0xab9   : > { %v1727_v26 = vpop.f32.mrb[26].mxu1 }
 0xaba   : > { %v1732_v27 = vmul.f32 0.25, %v1727_v26  ;;  %v2397_v28 = vpop.f32.mrb[27].mxu1  ;;  %v1733_v29 = vadd.f32 %v4009_v20, %v1731_v24 }
 0xabc   : > { %v1735_v30 = vsel %vm1196_vm4, %v1733_v29, -inf  ;;  %v1734_v31 = vadd.f32 %v4009_v20, %v1732_v27  ;;  %v2633_v20 = vld [vmem:[#allocation22 + $0x18] sm:$0xff]  }
 0xabd   : > { %1736 = vmax.xlane.f32.xlu1 %v1735_v30  ;;  %2405 = vmatpush3.bf16.msra.mxu1 %v2633_v20  ;;  %v2254_v30 = vld [vmem:[#allocation25] ss:$0 sm:$0xff] }
 0xabe   : > { %v1738_v32 = vsel %vm1196_vm4, %v1734_v31, -inf }
 0xabf   : > { %1739 = vmax.xlane.f32.xlu0 %v1738_v32  ;;  %v2255_v32 = vld [vmem:[#allocation27] ss:$0 sm:$0xff] }
 0xb4a   : > { %v1737_v33 = vpop.xlane.xlu1 %1736 }
 0xb4b   : > { %v1741_v34 = vsub.f32 %v1733_v29, %v1737_v33 }
 0xb4c   : > { %v1740_v35 = vpop.xlane.xlu0 %1739 }
 0xb4d   : > { %v1743_v15 = vmul.f32 1.442695, %v1741_v34  ;;  %v1742_v36 = vsub.f32 %v1734_v31, %v1740_v35 }
 0xb4f   : > { %2662 = vpow2.f32 %v1743_v15  ;;  %v1745_v37 = vmul.f32 1.442695, %v1742_v36 }
 0xb51   : > { %2664 = vpow2.f32 %v1745_v37 }
 0xb59   : > { %v2663_v38 = vpop.eup %2662 }
 0xb5a   : > { %v1747_v40 = vsel %vm1196_vm4, %v2663_v38, 0.0 }
 0xb5b   : > { %v2665_v41 = vpop.eup %2664  ;;  %1748 = vadd.xlane.f32.xlu0 %v1747_v40 }
 0xb5c   : > { %v1750_v43 = vsel %vm1196_vm4, %v2665_v41, 0.0 }
 0xb5d   : > { %1751 = vadd.xlane.f32.xlu1 %v1750_v43 }
 0xb71   : > { %1758 = vrot.lane.b32.xlu0 %v3999_v14, %s3293_s18 }
 0xb87   : > { %v1671_v44 = vpop.f32.mrb[20].mxu0 }
 0xb88   : > { %v1678_v45 = vadd.f32 %v1671_v44, %v4050_v39  ;;  %v2390_v46 = vpop.f32.mrb[21].mxu0 }
 0xb89   : > { %v1674_v47 = vpop.f32.mrb[22].mxu0 }
 0xb8a   : > { %v1679_v48 = vadd.f32 %v1674_v47, %v4052_v42  ;;  %v2391_v49 = vpop.f32.mrb[23].mxu0 }
 0xbe8   : > { %v1749_v50 = vpop.xlane.xlu0 %1748 }
 0xbe9   : > { %2666 = vrcp.f32 %v1749_v50 }
 0xbea   : > { %v1752_v51 = vpop.xlane.xlu1 %1751 }
 0xbeb   : > { %2668 = vrcp.f32 %v1752_v51 }
 0xbec   : > { %v1759_v52 = vpop.permute.xlu0 %1758 }
 0xbed   : > { %v1764_v54 = vsel %vm1223_vm3, %v1759_v52, 0 }
 0xbee   : > { %2399 = vmatpush3.bf16.msra.mxu0 %v1764_v54 }
 0xbf3   : > { %v2667_v55 = vpop.eup %2666 }
 0xbf4   : > { %v1755_v56 = vmul.f32 %v2667_v55, %v2663_v38 }
 0xbf5   : > { %v2669_v14 = vpop.eup %2668 }
 0xbf6   : > { %v1756_v57 = vmul.f32 %v2669_v14, %v2665_v41 }
 0xbf8   : > { %v1757_v58 = vpack.c.bf16 %v1756_v57, %v1755_v56 }
 0xbfa   : > { %2401 = vmatmul.mubr.msk.bf16.vlgmr.msra.gmra.mrb[24].mxu0 %vm1196_vm4, %v1757_v58 }
 0xccd   : > { %v1800_v39 = vpop.f32.mrb[24].mxu0 }
 0xcce   : > { %v2402_v59 = vpop.f32.mrb[25].mxu0 }
 0xccf   : > { %v1803_v60 = vpop.f32.mrb[26].mxu0 }
 0xcd0   : > { %v1807_v42 = vpack.c.bf16 %v1803_v60, %v1800_v39  ;;  %v2403_v61 = vpop.f32.mrb[27].mxu0 }
 0xcd2   : > { %2407 = vmatmul.mubr.msk.bf16.vlgmr.msra.gmra.mrb[28].mxu1 %vm1138_vm2, %v1807_v42 }
 0xda5   : > { %v1851_v62 = vpop.f32.mrb[28].mxu1 }
 0xda6   : > { %v1858_v2 = vadd.f32 %v1851_v62, %v1678_v45  ;;  %v2408_v3 = vpop.f32.mrb[29].mxu1 }
 0xda7   : > { %v1854_v8 = vpop.f32.mrb[30].mxu1 }
 0xda8   : > { %v1859_v4 = vadd.f32 %v1854_v8, %v1679_v48  ;;  %v2409_v5 = vpop.f32.mrb[31].mxu1  ;;  %v1866_v6 = vadd.f32 %v2253_v63, %v1858_v2 }
 0xdaa   : > { %v1870_v7 = vsel %vm825_vm0, %v1866_v6, 0.0  ;;  %v1867_v9 = vadd.f32 %v2253_v63, %v1859_v4 }
 0xdab   : > { %1871 = vadd.xlane.f32.xlu1 %v1870_v7 }
 0xdac   : > { %v1873_v10 = vsel %vm825_vm0, %v1867_v9, 0.0 }
 0xdaf   : > { %1874 = vadd.xlane.f32.xlu1 %v1873_v10 }
 0xe38   : > { %v1872_v11 = vpop.xlane.xlu1 %1871 }
 0xe39   : > { %v1876_v12 = vmul.f32 0.015625, %v1872_v11 }
 0xe3b   : > { %v1878_v13 = vsub.f32 %v1866_v6, %v1876_v12 }
 0xe3c   : > { %v1875_v53 = vpop.xlane.xlu1 %1874 }
 0xe3d   : > { %v1877_v16 = vmul.f32 0.015625, %v1875_v53  ;;  %v1880_v17 = vmul.f32 %v1878_v13, %v1878_v13 }
 0xe3f   : > { %v1879_v18 = vsub.f32 %v1867_v9, %v1877_v16  ;;  %v1882_v19 = vsel %vm825_vm0, %v1880_v17, 0.0 }
 0xe40   : > { %1883 = vadd.xlane.f32.xlu1 %v1882_v19 }
 0xe41   : > { %v1881_v21 = vmul.f32 %v1879_v18, %v1879_v18 }
 0xe43   : > { %v1885_v22 = vsel %vm825_vm0, %v1881_v21, 0.0 }
 0xe44   : > { %1886 = vadd.xlane.f32.xlu1 %v1885_v22 }
 0xecd   : > { %v1884_v23 = vpop.xlane.xlu1 %1883 }
 0xece   : > { %v1888_v24 = vmul.f32 0.015625, %v1884_v23 }
 0xed0   : > { %v1890_v25 = vadd.f32 1e-05, %v1888_v24 }
 0xed1   : > { %v1887_v26 = vpop.xlane.xlu1 %1886 }
 0xed2   : > { %2670 = vrsqrt.f32 %v1890_v25  ;;  %v1889_v27 = vmul.f32 0.015625, %v1887_v26 }
 0xed4   : > { %v1891_v28 = vadd.f32 1e-05, %v1889_v27 }
 0xed6   : > { %2672 = vrsqrt.f32 %v1891_v28 }
 0xedc   : > { %v2671_v29 = vpop.eup %2670 }
 0xedd   : > { %v1894_v31 = vmul.f32 %v2671_v29, %v1878_v13 }
 0xedf   : > { %v1902_v33 = vmul.f32 %v2254_v30, %v1894_v31 }
 0xee0   : > { %v2673_v34 = vpop.eup %2672 }
 0xee1   : > { %v1910_v35 = vadd.f32 %v2255_v32, %v1902_v33  ;;  %v1895_v15 = vmul.f32 %v2673_v34, %v1879_v18 }
 0xee3   : > { %v1912_v36 = vadd.f32 %v1910_v35, %v3936_v0  ;;  %v1903_v37 = vmul.f32 %v2254_v30, %v1895_v15 }
 0xee5   : > { %v1911_v38 = vadd.f32 %v2255_v32, %v1903_v37  ;;  %1914 = vst.msk [vmem:[%s818_s28] sm:$0xff] %vm825_vm0, %v1912_v36 }
 0xee7   : > { %v1913_v0 = vadd.f32 %v1911_v38, %v3939_v1 }
 0xee9   : > { %1915 = vst.msk [vmem:[%s818_s28 + $0x8] sm:$0xff] %vm825_vm0, %v1913_v0 }
 0xeea   : > { %3169 = shalt.err (!%p3166_p10)
}
 0xeeb   : > { %s3170_s8 = scalar_lea.hbm %s4105_s11, 256  ;;  %s3174_s6 = scalar_lea.hbm %s4274_s16, 512 }
 0xeec   : > { %p3171_p2 = scmp.ne.s32.totalorder %s4105_s11, %s3170_s8  ;;  %p3175_p3 = scmp.lt.u32.totalorder %s4105_s11, %s4274_s16 }
 0xeed   : > { %p3176_p0 = scmp.lt.u32.totalorder %s3174_s6, %s3170_s8  ;;  %p3178_p9 = scmp.lt.u32.totalorder %s3170_s8, %s4105_s11 }
 0xeee   : > { %p3172_p1 = pnand %p3171_p2, %p4275_p8 }
 0xeef   : > { %p3177_p5 = por %p3176_p0, %p3175_p3 }
 0xef0   : > { %p3173_p13 = pneg %p3172_p1 }
 0xef1   : > { %p3179_p7 = por %p3178_p9, %p3177_p5 }
 0xef3   : > { %p3180_p11 = pnand %p3179_p7, %p3173_p13 }
 0xef5   : > { %3183 = shalt.err (!%p3180_p11)
}
 0xef6   : > { %s3295_s7 = smov 128   ;;  %s3296_s18 = smov 8  }
 0xef7   : > { %2472 = dma.vmem_to_hbm [thread:$0]  (%p4275_p8), %s4107_s1, 256, %s4105_s11, %s1917_s0, %s3295_s7, %s3295_s7, %s3296_s18  }
 0xef8 PF: > { %s1945_s4 = sand.u32 1, %s3254_s24   ;;  %p4276_p6 = scmp.ne.s32.totalorder %s4233_s17, 0 }
 0xef9   : > { %p4277_p12 = scmp.ge.s32.totalorder %s3266_s27, 2  ;;  %s1946_s28 = scalar_lea.sflag [#allocation4], %s1945_s4 }
 0xefb   : > { %p2528_p4 = pnand %p4277_p12, %p4276_p6 }
 0xefd   : > { %3249 = dma.done.wait (!%p2528_p4), %s1946_s28, 256  }
 0xefe   : > { %3251 = vsyncadd (!%p2528_p4), %s1946_s28, 4294967040  ;;  %p39_p10 = scmp.ge.s32.totalorder %s3630_s20, 4   ;;  %s4278_s24 = smov %s3258_s25 }
 0xeff   : > { %s4279_s25 = smov %s3262_s26  ;;  %s4280_s26 = smov %s3641_s14 }
 0xf00   : > { %s4281_s27 = smov %s3630_s20  ;;  %41 = sbr.rel (!%p39_p10) target bundleno = 32 (0x20), region = 213 }
 0xf07   :  { %1951 = vsyncpa [#allocation3], 1 }
 0xf08   :  { %1953 = vsyncpa [#allocation3 + $0x1], 1 }
 0xf09   :  { %1954 = vsyncpa [#allocation6], 1 }
 0xf0a   :  { %1956 = vsyncpa [#allocation6 + $0x1], 1 }
 0xf0b   :  { %1957 = vsyncpa [#allocation9], 1 }
 0xf0c   :  { %1958 = vsyncpa [#allocation14], 1 }
 0xf0d   :  { %1959 = vsyncpa [#allocation17], 1 }
 0xf0e   :  { %1960 = vsyncpa [#allocation20], 1 }
 0xf0f   :  { %1961 = vsyncpa [#allocation23], 1 }
 0xf10   :  { %1962 = vsyncpa [#allocation26], 1 }
 0xf11   :  { %1963 = vsyncpa [#allocation4], 1 }
 0xf12   :  { %1965 = vsyncpa [#allocation4 + $0x1], 1 }

// kernel: decoder_forward.7
= control target key start
LH: loop header
LB: loop body
LE: loop exit
PB: predicated region body
PF: predicated region fallthrough
CT: control target
= control target key end

     0   :  { %s3276_s0 = inlined_call_operand.hbm [shape: f32[2,16,64], index: 0, kind: input, shape index: {}]   ;;  %s3277_s1 = inlined_call_operand.hbm [shape: f32[16,64], index: 1, kind: input, shape index: {}]   ;;  %s3278_s2 = inlined_call_operand.hbm [shape: f32[1,64], index: 2, kind: input, shape index: {}]   ;;  %s3279_s3 = inlined_call_operand.hbm [shape: f32[1,64], index: 3, kind: input, shape index: {}]   ;;  %s3280_s4 = inlined_call_operand.hbm [shape: bf16[64,128], index: 4, kind: input, shape index: {}]   ;;  %s3281_s5 = inlined_call_operand.hbm [shape: f32[1,128], index: 5, kind: input, shape index: {}]   ;;  %s3282_s6 = inlined_call_operand.hbm [shape: bf16[64,64], index: 6, kind: input, shape index: {}]   ;;  %s3283_s7 = inlined_call_operand.hbm [shape: f32[1,64], index: 7, kind: input, shape index: {}]   ;;  %s3284_s8 = inlined_call_operand.hbm [shape: bf16[64,64], index: 8, kind: input, shape index: {}]   ;;  %s3285_s9 = inlined_call_operand.hbm [shape: f32[1,64], index: 9, kind: input, shape index: {}]   ;;  %s3286_s10 = inlined_call_operand.hbm [shape: f32[1,64], index: 10, kind: input, shape index: {}]   ;;  %s3287_s11 = inlined_call_operand.hbm [shape: f32[1,64], index: 11, kind: input, shape index: {}]   ;;  %s3288_s12 = inlined_call_operand.hbm [shape: f32[2,16,64], index: 12, kind: output, shape index: {}]  }
   0x1   :  { %3300 = sst [smem:[#allocation33_spill]] %s3276_s0 }
   0x2   :  { %3301 = sst [smem:[#allocation34_spill]] %s3277_s1 }
   0x3   :  { %3302 = sst [smem:[#allocation35_spill]] %s3278_s2 }
   0x4   :  { %3303 = sst [smem:[#allocation36_spill]] %s3288_s12 }
   0x5   :  { %17 = vsyncpa [#allocation3], 0 }
   0x6   :  { %19 = vsyncpa [#allocation3 + $0x1], 0 }
   0x7   :  { %20 = vsyncpa [#allocation6], 0 }
   0x8   :  { %21 = vsyncpa [#allocation9], 0 }
   0x9   :  { %22 = vsyncpa [#allocation12], 0 }
   0xa   :  { %23 = vsyncpa [#allocation15], 0 }
   0xb   :  { %24 = vsyncpa [#allocation18], 0 }
   0xc   :  { %25 = vsyncpa [#allocation21], 0 }
   0xd   :  { %26 = vsyncpa [#allocation4], 0 }
   0xe   :  { %28 = vsyncpa [#allocation4 + $0x1], 0  ;;  %s2704_s21 = smov 0   ;;  %s2706_s22 = smov 0  }
   0xf   :  { %s2708_s23 = smov 0   ;;  %s2710_s24 = smov 0  }
  0x10 LB: > { %s2611_s25 = smov [#allocation5]   ;;  %s2725_s27 = sadd.s32 4294967295, %s2609_s24   ;;  %s2609_s24 = sphi %s2710_s24, %s3342_s24   ;;  %s2605_s23 = sphi %s2708_s23, %s3341_s23   ;;  %s2601_s22 = sphi %s2706_s22, %s3340_s22   ;;  %s2597_s21 = sphi %s2704_s21, %s3339_s21  }
  0x11   : > { %s334_s26 = sshll.u32 %s2611_s25, 4  ;;  %3304 = sst [smem:[#allocation31_spill]] %s2725_s27  ;;  %s2730_s26 = int_to_ptr.vmem [resolvable:$true] %s334_s26 }
  0x12   : > { %p1757_p0 = scmp.ge.s32.totalorder %s2609_s24, 1  ;;  %p3296_p1 = scmp.eq.s32.totalorder %s2725_s27, 0 }
  0x13   : > { %p322_p2 = scmp.lt.s32.totalorder %s2609_s24, 3  ;;  %s2612_s29 = smov [#allocation8]  }
  0x14   : > { %s359_s30 = sshll.u32 %s2612_s29, 4  ;;  %s2613_s14 = smov [#allocation11]   ;;  %s2745_s30 = int_to_ptr.vmem [resolvable:$true] %s359_s30 }
  0x15   : > { %p2732_p3 = pnand %p1757_p0, %p322_p2  ;;  %s383_s15 = sshll.u32 %s2613_s14, 4  ;;  %s2747_s15 = int_to_ptr.vmem [resolvable:$true] %s383_s15 }
  0x16   : > { %s3308_s1 = sld [smem:[#allocation34_spill]] }
  0x17   : > { %s3305_s28 = scalar_select %p2732_p3, 1, 0 }
  0x18   : > { %p2005_p5 = pneg %p2732_p3 }
  0x19   : > { %3306 = sst [smem:[#allocation32_spill]] %s3305_s28 }
  0x1a   : > { %p2741_p6 = pnand %p2005_p5, %p3296_p1 }
  0x1c   : > { %s2181_s18 = scalar_lea.hbm %s3308_s1, 256  ;;  %p2757_p8 = pneg %p2741_p6 }
  0x1d   : > { %p2182_p7 = scmp.ne.s32.totalorder %s3308_s1, %s2181_s18  ;;  %p2188_p11 = scmp.lt.u32.totalorder %s2181_s18, %s3308_s1 }
  0x1f   : > { %p2184_p9 = pnand %p2757_p8, %p2182_p7 }
  0x21   : > { %p2185_p10 = pneg %p2184_p9 }
  0x23   : > { %p2190_p12 = pnand %p2188_p11, %p2185_p10 }
  0x25   : > { %2193 = shalt.err (!%p2190_p12)
}
  0x26   : > { %s2194_s16 = scalar_lea.vmem %s2730_s26, 256  ;;  %p2202_p5 = scmp.lt.s32.totalorder %s2730_s26, %s2730_s26 }
  0x27   : > { %p2195_p13 = scmp.ne.s32.totalorder %s2730_s26, %s2194_s16  ;;  %p2203_p4 = scmp.lt.s32.totalorder %s2194_s16, %s2194_s16 }
  0x29   : > { %p2197_p0 = pnand %p2195_p13, %p2757_p8  ;;  %p2204_p7 = por %p2203_p4, %p2202_p5 }
  0x2b   : > { %p2198_p2 = pneg %p2197_p0 }
  0x2d   : > { %p2205_p9 = pnand %p2204_p7, %p2198_p2 }
  0x2f   : > { %2208 = shalt.err (!%p2205_p9)
}
  0x30   : > { %s3295_s17 = smov 128   ;;  %s3298_s18 = smov 8  }
  0x31   : > { %2008 = dma.hbm_to_vmem [thread:$0]  (!%p2741_p6), %s3308_s1, 256, %s2730_s26, [#allocation6], %s3295_s17, %s3295_s17, %s3298_s18  }
  0x32   : > { %s2209_s16 = scalar_lea.hbm %s3279_s3, 16 }
  0x33   : > { %p2210_p4 = scmp.ne.s32.totalorder %s3279_s3, %s2209_s16  ;;  %p2216_p12 = scmp.lt.u32.totalorder %s2209_s16, %s3279_s3 }
  0x35   : > { %p2212_p10 = pnand %p2210_p4, %p2757_p8 }
  0x37   : > { %p2213_p11 = pneg %p2212_p10 }
  0x39   : > { %p2218_p13 = pnand %p2216_p12, %p2213_p11 }
  0x3b   : > { %2221 = shalt.err (!%p2218_p13)
}
  0x3c   : > { %s2222_s26 = scalar_lea.vmem %s2745_s30, 16  ;;  %s2229_s12 = scalar_lea.vmem %s2745_s30, 32 }
  0x3d   : > { %p2223_p0 = scmp.ne.s32.totalorder %s2745_s30, %s2222_s26  ;;  %p2230_p7 = scmp.lt.s32.totalorder %s2745_s30, %s2745_s30 }
  0x3e   : > { %p2231_p9 = scmp.lt.s32.totalorder %s2229_s12, %s2222_s26 }
  0x3f   : > { %p2225_p2 = pnand %p2223_p0, %p2757_p8 }
  0x40   : > { %p2232_p4 = por %p2231_p9, %p2230_p7 }
  0x41   : > { %p2226_p5 = pneg %p2225_p2 }
  0x43   : > { %p2233_p10 = pnand %p2232_p4, %p2226_p5 }
  0x45   : > { %2236 = shalt.err (!%p2233_p10)
}
  0x46   : > { %2014 = dma.hbm_to_vmem [thread:$0]  (!%p2741_p6), %s3279_s3, 16, %s2745_s30, [#allocation9]  }
  0x47   : > { %s2237_s20 = scalar_lea.hbm %s3281_s5, 16 }
  0x48   : > { %p2238_p11 = scmp.ne.s32.totalorder %s3281_s5, %s2237_s20  ;;  %p2244_p0 = scmp.lt.u32.totalorder %s2237_s20, %s3281_s5 }
  0x4a   : > { %p2240_p12 = pnand %p2238_p11, %p2757_p8 }
  0x4c   : > { %p2241_p13 = pneg %p2240_p12 }
  0x4e   : > { %p2246_p2 = pnand %p2244_p0, %p2241_p13 }
  0x50   : > { %2249 = shalt.err (!%p2246_p2)
}
  0x51   : > { %s2250_s30 = scalar_lea.vmem %s2747_s15, 16  ;;  %s2257_s12 = scalar_lea.vmem %s2747_s15, 32 }
  0x52   : > { %p2251_p5 = scmp.ne.s32.totalorder %s2747_s15, %s2250_s30  ;;  %p2258_p4 = scmp.lt.s32.totalorder %s2747_s15, %s2747_s15 }
  0x53   : > { %p2259_p10 = scmp.lt.s32.totalorder %s2257_s12, %s2250_s30 }
  0x54   : > { %p2253_p7 = pnand %p2251_p5, %p2757_p8 }
  0x55   : > { %p2260_p11 = por %p2259_p10, %p2258_p4 }
  0x56   : > { %p2254_p9 = pneg %p2253_p7 }
  0x58   : > { %p2261_p12 = pnand %p2260_p11, %p2254_p9 }
  0x5a   : > { %2264 = shalt.err (!%p2261_p12)
}
  0x5b   : > { %2020 = dma.hbm_to_vmem [thread:$0]  (!%p2741_p6), %s3281_s5, 16, %s2747_s15, [#allocation12]  }
  0x5c   : > { %s2616_s28 = smov [#allocation14]   ;;  %s2617_s20 = smov [#allocation17]  }
  0x5d   : > { %s407_s19 = sshll.u32 %s2616_s28, 4  ;;  %s431_s29 = sshll.u32 %s2617_s20, 4  ;;  %s408_s19 = int_to_ptr.vmem [resolvable:$true] %s407_s19  ;;  %s432_s29 = int_to_ptr.vmem [resolvable:$true] %s431_s29 }
  0x5e   : > { %s2265_s26 = scalar_lea.hbm %s3283_s7, 16 }
  0x5f   : > { %p2266_p13 = scmp.ne.s32.totalorder %s3283_s7, %s2265_s26  ;;  %p2272_p5 = scmp.lt.u32.totalorder %s2265_s26, %s3283_s7 }
  0x61   : > { %p2268_p0 = pnand %p2266_p13, %p2757_p8 }
  0x63   : > { %p2269_p2 = pneg %p2268_p0 }
  0x65   : > { %p2274_p7 = pnand %p2272_p5, %p2269_p2 }
  0x67   : > { %2277 = shalt.err (!%p2274_p7)
}
  0x68   : > { %s2278_s15 = scalar_lea.vmem %s408_s19, 16  ;;  %s2285_s27 = scalar_lea.vmem %s408_s19, 32 }
  0x69   : > { %p2279_p9 = scmp.ne.s32.totalorder %s408_s19, %s2278_s15  ;;  %p2286_p11 = scmp.lt.s32.totalorder %s408_s19, %s408_s19 }
  0x6a   : > { %p2287_p12 = scmp.lt.s32.totalorder %s2285_s27, %s2278_s15 }
  0x6b   : > { %p2281_p4 = pnand %p2279_p9, %p2757_p8 }
  0x6c   : > { %p2288_p1 = por %p2287_p12, %p2286_p11 }
  0x6d   : > { %p2282_p10 = pneg %p2281_p4 }
  0x6f   : > { %p2289_p3 = pnand %p2288_p1, %p2282_p10 }
  0x71   : > { %2292 = shalt.err (!%p2289_p3)
}
  0x72   : > { %2026 = dma.hbm_to_vmem [thread:$0]  (!%p2741_p6), %s3283_s7, 16, %s408_s19, [#allocation15]  }
  0x73   : > { %s2293_s16 = scalar_lea.hbm %s3285_s9, 16 }
  0x74   : > { %p2294_p13 = scmp.ne.s32.totalorder %s3285_s9, %s2293_s16  ;;  %p2300_p3 = scmp.lt.u32.totalorder %s2293_s16, %s3285_s9 }
  0x76   : > { %p2296_p0 = pnand %p2294_p13, %p2757_p8 }
  0x78   : > { %p2297_p1 = pneg %p2296_p0 }
  0x7a   : > { %p2302_p2 = pnand %p2300_p3, %p2297_p1 }
  0x7c   : > { %2305 = shalt.err (!%p2302_p2)
}
  0x7d   : > { %s2306_s15 = scalar_lea.vmem %s432_s29, 16  ;;  %s2313_s19 = scalar_lea.vmem %s432_s29, 32 }
  0x7e   : > { %p2307_p5 = scmp.ne.s32.totalorder %s432_s29, %s2306_s15  ;;  %p2314_p4 = scmp.lt.s32.totalorder %s432_s29, %s432_s29 }
  0x7f   : > { %p2315_p10 = scmp.lt.s32.totalorder %s2313_s19, %s2306_s15 }
  0x80   : > { %p2309_p7 = pnand %p2307_p5, %p2757_p8 }
  0x81   : > { %p2316_p11 = por %p2315_p10, %p2314_p4 }
  0x82   : > { %p2310_p9 = pneg %p2309_p7 }
  0x84   : > { %p2317_p12 = pnand %p2316_p11, %p2310_p9 }
  0x86   : > { %2320 = shalt.err (!%p2317_p12)
}
  0x87   : > { %2032 = dma.hbm_to_vmem [thread:$0]  (!%p2741_p6), %s3285_s9, 16, %s432_s29, [#allocation18]  }
  0x88   : > { %s2618_s20 = smov [#allocation7]   ;;  %s2619_s14 = smov [#allocation10]  }
  0x89   : > { %s348_s17 = sshll.u32 %s2618_s20, 4  ;;  %s369_s16 = sshll.u32 %s2619_s14, 4  ;;  %s349_s17 = int_to_ptr.vmem [resolvable:$true] %s348_s17  ;;  %s370_s16 = int_to_ptr.vmem [resolvable:$true] %s369_s16 }
  0x8a   : > { %s3310_s2 = sld [smem:[#allocation35_spill]] }
  0x90   : > { %s2321_s12 = scalar_lea.hbm %s3310_s2, 16 }
  0x91   : > { %p2322_p13 = scmp.ne.s32.totalorder %s3310_s2, %s2321_s12  ;;  %p2328_p3 = scmp.lt.u32.totalorder %s2321_s12, %s3310_s2 }
  0x93   : > { %p2324_p0 = pnand %p2322_p13, %p2757_p8 }
  0x95   : > { %p2325_p1 = pneg %p2324_p0 }
  0x97   : > { %p2330_p2 = pnand %p2328_p3, %p2325_p1 }
  0x99   : > { %2333 = shalt.err (!%p2330_p2)
}
  0x9a   : > { %s2334_s29 = scalar_lea.vmem %s349_s17, 16  ;;  %s2341_s28 = scalar_lea.vmem %s349_s17, 32 }
  0x9b   : > { %p2335_p5 = scmp.ne.s32.totalorder %s349_s17, %s2334_s29  ;;  %p2342_p4 = scmp.lt.s32.totalorder %s349_s17, %s349_s17 }
  0x9c   : > { %p2343_p10 = scmp.lt.s32.totalorder %s2341_s28, %s2334_s29 }
  0x9d   : > { %p2337_p7 = pnand %p2335_p5, %p2757_p8 }
  0x9e   : > { %p2344_p11 = por %p2343_p10, %p2342_p4 }
  0x9f   : > { %p2338_p9 = pneg %p2337_p7 }
  0xa1   : > { %p2345_p12 = pnand %p2344_p11, %p2338_p9 }
  0xa3   : > { %2348 = shalt.err (!%p2345_p12)
}
  0xa4   : > { %2011 = dma.hbm_to_vmem [thread:$0]  (!%p2741_p6), %s3310_s2, 16, %s349_s17, [#allocation6]  }
  0xa5   : > { %s2349_s12 = scalar_lea.hbm %s3280_s4, 512 }
  0xa6   : > { %p2350_p13 = scmp.ne.s32.totalorder %s3280_s4, %s2349_s12  ;;  %p2356_p3 = scmp.lt.u32.totalorder %s2349_s12, %s3280_s4 }
  0xa8   : > { %p2352_p0 = pnand %p2350_p13, %p2757_p8 }
  0xaa   : > { %p2353_p1 = pneg %p2352_p0 }
  0xac   : > { %p2358_p2 = pnand %p2356_p3, %p2353_p1 }
  0xae   : > { %2361 = shalt.err (!%p2358_p2)
}
  0xaf   : > { %s2362_s29 = scalar_lea.vmem %s370_s16, 512  ;;  %p2370_p4 = scmp.lt.s32.totalorder %s370_s16, %s370_s16 }
  0xb0   : > { %p2363_p5 = scmp.ne.s32.totalorder %s370_s16, %s2362_s29  ;;  %p2371_p10 = scmp.lt.s32.totalorder %s2362_s29, %s2362_s29 }
  0xb2   : > { %p2365_p7 = pnand %p2363_p5, %p2757_p8  ;;  %p2372_p11 = por %p2371_p10, %p2370_p4 }
  0xb4   : > { %p2366_p9 = pneg %p2365_p7 }
  0xb6   : > { %p2373_p12 = pnand %p2372_p11, %p2366_p9 }
  0xb8   : > { %2376 = shalt.err (!%p2373_p12)
}
  0xb9   : > { %s2620_s17 = smov 64   ;;  %s2621_s28 = smov 4  }
  0xba   : > { %2017 = dma.hbm_to_vmem [thread:$0]  (!%p2741_p6), %s3280_s4, 512, %s370_s16, [#allocation9], %s2620_s17, %s2620_s17, %s2621_s28  }
  0xbb   : > { %s2622_s26 = smov [#allocation13]   ;;  %s2623_s12 = smov [#allocation16]  }
  0xbc   : > { %s393_s30 = sshll.u32 %s2622_s26, 4  ;;  %s417_s0 = sshll.u32 %s2623_s12, 4  ;;  %s394_s30 = int_to_ptr.vmem [resolvable:$true] %s393_s30  ;;  %s418_s0 = int_to_ptr.vmem [resolvable:$true] %s417_s0 }
  0xbd   : > { %s2377_s27 = scalar_lea.hbm %s3282_s6, 512 }
  0xbe   : > { %p2378_p13 = scmp.ne.s32.totalorder %s3282_s6, %s2377_s27  ;;  %p2384_p3 = scmp.lt.u32.totalorder %s2377_s27, %s3282_s6 }
  0xc0   : > { %p2380_p0 = pnand %p2378_p13, %p2757_p8 }
  0xc2   : > { %p2381_p1 = pneg %p2380_p0 }
  0xc4   : > { %p2386_p2 = pnand %p2384_p3, %p2381_p1 }
  0xc6   : > { %2389 = shalt.err (!%p2386_p2)
}
  0xc7   : > { %s2390_s16 = scalar_lea.vmem %s394_s30, 512  ;;  %p2398_p4 = scmp.lt.s32.totalorder %s394_s30, %s394_s30 }
  0xc8   : > { %p2391_p5 = scmp.ne.s32.totalorder %s394_s30, %s2390_s16  ;;  %p2399_p10 = scmp.lt.s32.totalorder %s2390_s16, %s2390_s16 }
  0xca   : > { %p2393_p7 = pnand %p2391_p5, %p2757_p8  ;;  %p2400_p11 = por %p2399_p10, %p2398_p4 }
  0xcc   : > { %p2394_p9 = pneg %p2393_p7 }
  0xce   : > { %p2401_p12 = pnand %p2400_p11, %p2394_p9 }
  0xd0   : > { %2404 = shalt.err (!%p2401_p12)
}
  0xd1   : > { %2023 = dma.hbm_to_vmem [thread:$0]  (!%p2741_p6), %s3282_s6, 512, %s394_s30, [#allocation12], %s2620_s17, %s2620_s17, %s2621_s28  }
  0xd2   : > { %s2405_s14 = scalar_lea.hbm %s3284_s8, 512 }
  0xd3   : > { %p2406_p13 = scmp.ne.s32.totalorder %s3284_s8, %s2405_s14  ;;  %p2412_p3 = scmp.lt.u32.totalorder %s2405_s14, %s3284_s8 }
  0xd5   : > { %p2408_p0 = pnand %p2406_p13, %p2757_p8 }
  0xd7   : > { %p2409_p1 = pneg %p2408_p0 }
  0xd9   : > { %p2414_p2 = pnand %p2412_p3, %p2409_p1 }
  0xdb   : > { %2417 = shalt.err (!%p2414_p2)
}
  0xdc   : > { %s2418_s27 = scalar_lea.vmem %s418_s0, 512  ;;  %p2426_p4 = scmp.lt.s32.totalorder %s418_s0, %s418_s0 }
  0xdd   : > { %p2419_p5 = scmp.ne.s32.totalorder %s418_s0, %s2418_s27  ;;  %p2427_p10 = scmp.lt.s32.totalorder %s2418_s27, %s2418_s27 }
  0xdf   : > { %p2421_p7 = pnand %p2419_p5, %p2757_p8  ;;  %p2428_p11 = por %p2427_p10, %p2426_p4 }
  0xe1   : > { %p2422_p9 = pneg %p2421_p7 }
  0xe3   : > { %p2429_p12 = pnand %p2428_p11, %p2422_p9 }
  0xe5   : > { %2432 = shalt.err (!%p2429_p12)
}
  0xe6   : > { %2029 = dma.hbm_to_vmem [thread:$0]  (!%p2741_p6), %s3284_s8, 512, %s418_s0, [#allocation15], %s2620_s17, %s2620_s17, %s2621_s28  }
  0xe7   : > { %s2624_s16 = smov [#allocation19]   ;;  %s2625_s2 = smov [#allocation20]  }
  0xe8   : > { %s442_s1 = sshll.u32 %s2624_s16, 4  ;;  %s453_s18 = sshll.u32 %s2625_s2, 4  ;;  %s443_s1 = int_to_ptr.vmem [resolvable:$true] %s442_s1  ;;  %s454_s18 = int_to_ptr.vmem [resolvable:$true] %s453_s18 }
  0xe9   : > { %s2433_s26 = scalar_lea.hbm %s3286_s10, 16 }
  0xea   : > { %p2434_p13 = scmp.ne.s32.totalorder %s3286_s10, %s2433_s26  ;;  %p2440_p3 = scmp.lt.u32.totalorder %s2433_s26, %s3286_s10 }
  0xec   : > { %p2436_p0 = pnand %p2434_p13, %p2757_p8 }
  0xee   : > { %p2437_p1 = pneg %p2436_p0 }
  0xf0   : > { %p2442_p2 = pnand %p2440_p3, %p2437_p1 }
  0xf2   : > { %2445 = shalt.err (!%p2442_p2)
}
  0xf3   : > { %s2446_s17 = scalar_lea.vmem %s443_s1, 16  ;;  %s2453_s28 = scalar_lea.vmem %s443_s1, 32 }
  0xf4   : > { %p2447_p5 = scmp.ne.s32.totalorder %s443_s1, %s2446_s17  ;;  %p2454_p4 = scmp.lt.s32.totalorder %s443_s1, %s443_s1 }
  0xf5   : > { %p2455_p10 = scmp.lt.s32.totalorder %s2453_s28, %s2446_s17 }
  0xf6   : > { %p2449_p7 = pnand %p2447_p5, %p2757_p8 }
  0xf7   : > { %p2456_p11 = por %p2455_p10, %p2454_p4 }
  0xf8   : > { %p2450_p9 = pneg %p2449_p7 }
  0xfa   : > { %p2457_p12 = pnand %p2456_p11, %p2450_p9 }
  0xfc   : > { %2460 = shalt.err (!%p2457_p12)
}
  0xfd   : > { %2035 = dma.hbm_to_vmem [thread:$0]  (!%p2741_p6), %s3286_s10, 16, %s443_s1, [#allocation18]  }
  0xfe   : > { %s2461_s2 = scalar_lea.hbm %s3287_s11, 16 }
  0xff   : > { %p2462_p13 = scmp.ne.s32.totalorder %s3287_s11, %s2461_s2  ;;  %p2468_p3 = scmp.lt.u32.totalorder %s2461_s2, %s3287_s11 }
 0x101   : > { %p2464_p0 = pnand %p2462_p13, %p2757_p8 }
 0x103   : > { %p2465_p1 = pneg %p2464_p0 }
 0x105   : > { %p2470_p2 = pnand %p2468_p3, %p2465_p1 }
 0x107   : > { %2473 = shalt.err (!%p2470_p2)
}
 0x108   : > { %s2474_s15 = scalar_lea.vmem %s454_s18, 16  ;;  %s2481_s1 = scalar_lea.vmem %s454_s18, 32 }
 0x109   : > { %p2475_p5 = scmp.ne.s32.totalorder %s454_s18, %s2474_s15  ;;  %p2482_p4 = scmp.lt.s32.totalorder %s454_s18, %s454_s18 }
 0x10a   : > { %p2483_p10 = scmp.lt.s32.totalorder %s2481_s1, %s2474_s15 }
 0x10b   : > { %p2477_p7 = pnand %p2475_p5, %p2757_p8 }
 0x10c   : > { %p2484_p11 = por %p2483_p10, %p2482_p4 }
 0x10d   : > { %p2478_p9 = pneg %p2477_p7 }
 0x10f   : > { %p2485_p12 = pnand %p2484_p11, %p2478_p9 }
 0x111   : > { %2488 = shalt.err (!%p2485_p12)
}
 0x112   : > { %s3311_s25 = sld [smem:[#allocation31_spill]]  ;;  %s1756_s17 = sadd.s32 4294967294, %s2609_s24  }
 0x113   : > { %2038 = dma.hbm_to_vmem [thread:$0]  (!%p2741_p6), %s3287_s11, 16, %s454_s18, [#allocation21]  }
 0x114   : > { %s2984_s13 = sadd.s32 1, %s2609_s24   ;;  %s41_s28 = sadd.s32 1, %s2605_s23 }
 0x115   : > { %s38_s0 = ssub.s32 %s2609_s24, %s2984_s13  ;;  %p48_p8 = scmp.ne.s32.totalorder %s2605_s23, %s2601_s22 }
 0x116   : > { %p39_p13 = scmp.eq.s32.totalorder %s38_s0, 0  ;;  %p49_p0 = scmp.eq.s32.totalorder %s2609_s24, 0 }
 0x117   : > { %p54_p1 = scmp.ne.s32.totalorder %s2601_s22, %s2597_s21  ;;  %p315_p9 = scmp.eq.s32.totalorder %s1756_s17, 1 }
 0x118   : > { %p309_p3 = scmp.eq.s32.totalorder %s3311_s25, 1  ;;  %p50_p2 = por %p49_p0, %p48_p8 }
 0x119   : > { %s2996_s30 = scalar_select %p39_p13, %s2605_s23, %s41_s28  }
 0x11a   : > { %p3312_p5 = scmp.eq.s32.totalorder %s3311_s25, 0  ;;  %p3004_p6 = por %p309_p3, %p48_p8 }
 0x11b   : > { %p2058_p4 = scmp.lt.s32.totalorder %s2609_s24, 2  ;;  %s464_s16 = sand.u32 1, %s2605_s23  }
 0x11c   : > { %p3000_p7 = por %p3312_p5, %p54_p1  ;;  %p3010_p10 = por %p315_p9, %p54_p1 }
 0x11d   : > { %s3314_s18 = scalar_select %p3004_p6, 1, 0 }
 0x11e   : > { %s3315_s2 = scalar_select %p3010_p10, 1, 0 }
 0x11f   : > { %s1770_s20 = sshll.u32 %s464_s16, 4  ;;  %s1825_s14 = sshll.u32 %s2609_s24, 8 }
 0x120   : > { %s3316_s15 = sld [smem:[#allocation33_spill]]  ;;  %s468_s19 = scalar_lea.vmem [#allocation2], %s1770_s20 }
 0x121   : > { %s475_s27 = sshll.u32 %s468_s19, 4  ;;  %p3020_p11 = pnand %p2058_p4, %p50_p2  ;;  %s3024_s27 = int_to_ptr.vmem [resolvable:$true] %s475_s27 }
 0x122   : > { %s3026_s17 = scalar_lea.sflag [#allocation3], %s464_s16 }
 0x123   : > { %p2491_p8 = pneg %p3020_p11 }
 0x126   : > { %s3018_s1 = scalar_lea.hbm %s3316_s15, %s1825_s14  ;;  %s2494_s14 = scalar_lea.hbm %s3316_s15, 512 }
 0x127   : > { %s2489_s28 = scalar_lea.hbm %s3018_s1, 256  ;;  %p2495_p1 = scmp.lt.u32.totalorder %s3018_s1, %s3316_s15 }
 0x128   : > { %p2490_p12 = scmp.ne.s32.totalorder %s3018_s1, %s2489_s28  ;;  %p2496_p3 = scmp.lt.u32.totalorder %s2494_s14, %s2489_s28 }
 0x129   : > { %p2498_p5 = scmp.lt.u32.totalorder %s2489_s28, %s3018_s1 }
 0x12a   : > { %p2492_p13 = pnand %p2491_p8, %p2490_p12  ;;  %p2497_p2 = por %p2496_p3, %p2495_p1 }
 0x12c   : > { %p2493_p0 = pneg %p2492_p13  ;;  %p2499_p9 = por %p2498_p5, %p2497_p2 }
 0x12e   : > { %p2500_p4 = pnand %p2499_p9, %p2493_p0 }
 0x130   : > { %2503 = shalt.err (!%p2500_p4)
}
 0x131   : > { %s2504_s16 = scalar_lea.vmem %s3024_s27, 256  ;;  %s2626_s19 = smov [#allocation2]  }
 0x132   : > { %p2505_p12 = scmp.ne.s32.totalorder %s3024_s27, %s2504_s16  ;;  %s2509_s0 = sshll.u32 %s2626_s19, 4  ;;  %s2510_s0 = int_to_ptr.vmem [resolvable:$false] %s2509_s0 }
 0x133   : > { %s2511_s20 = scalar_lea.vmem %s2510_s0, 512  ;;  %p2512_p6 = scmp.lt.s32.totalorder %s3024_s27, %s2510_s0 }
 0x134   : > { %p2507_p13 = pnand %p2505_p12, %p2491_p8  ;;  %p2513_p1 = scmp.lt.s32.totalorder %s2511_s20, %s2504_s16 }
 0x136   : > { %p2508_p10 = pneg %p2507_p13  ;;  %p2514_p3 = por %p2513_p1, %p2512_p6 }
 0x138   : > { %p2515_p2 = pnand %p2514_p3, %p2508_p10 }
 0x13a   : > { %2518 = shalt.err (!%p2515_p2)
}
 0x13b   : > { %s3318_s28 = smov 8   ;;  %s3319_s14 = smov 128  }
 0x13c   : > { %2042 = dma.hbm_to_vmem [thread:$0]  (!%p3020_p11), %s3018_s1, 256, %s3024_s27, %s3026_s17, %s3319_s14, %s3319_s14, %s3318_s28  }
 0x13d   : > { %s3320_s26 = sld [smem:[#allocation32_spill]] }
 0x143   : > { %p3321_p8 = scmp.ne.s32.totalorder %s3320_s26, 0 }
 0x144   : > { %s3060_s12 = sand.u32 (!%p3321_p8), 1, %s2601_s22  }
 0x145   : > { %487 = sbr.rel (%p3321_p8) target bundleno = 3627 (0xe2b), region = 68  ;;  %s1774_s16 = sshll.u32 (!%p3321_p8), %s3060_s12, 4 }
 0x146   : > { %s490_s19 = scalar_lea.sflag (!%p3321_p8), [#allocation3], %s3060_s12  ;;  %s493_s25 = scalar_lea.vmem (!%p3321_p8), [#allocation2], %s1774_s16 }
 0x14c   : > { %2564 = dma.done.wait (%p3000_p7), %s490_s19, 256  }
 0x14d   : > { %2566 = vsyncadd (%p3000_p7), %s490_s19, 4294967040  ;;  %s3322_s1 = sld [smem:[#allocation31_spill]] }
 0x153   : > { %p3323_p6 = scmp.eq.s32.totalorder %s3322_s1, 0 }
 0x155   : > { %2568 = dma.done.wait (%p3323_p6), [#allocation6], 272   ;;  %p3324_p10 = pmov %p3323_p6 }
 0x156   : > { %p3325_p11 = pmov %p3323_p6 }
 0x157   : > { %2570 = vsyncadd (%p3324_p10), [#allocation6], 4294967024 }
 0x158   : > { %2572 = dma.done.wait (%p3325_p11), [#allocation9], 528   ;;  %p3326_p0 = pmov %p3323_p6 }
 0x15a   : > { %2574 = vsyncadd (%p3326_p0), [#allocation9], 4294966768  ;;  %p3327_p5 = pmov %p3326_p0 }
 0x15b   : > { %p3328_p9 = pmov %p3326_p0 }
 0x15c   : > { %2576 = dma.done.wait (%p3327_p5), [#allocation12], 528  }
 0x15d   : > { %2578 = vsyncadd (%p3328_p9), [#allocation12], 4294966768  ;;  %p3329_p7 = pmov %p3326_p0 }
 0x15e   : > { %p3330_p4 = pmov %p3326_p0 }
 0x15f   : > { %2580 = dma.done.wait (%p3329_p7), [#allocation15], 528  }
 0x160   : > { %2582 = vsyncadd (%p3330_p4), [#allocation15], 4294966768  ;;  %p3331_p12 = pmov %p3326_p0 }
 0x161   : > { %p3332_p13 = pmov %p3326_p0 }
 0x162   : > { %2584 = dma.done.wait (%p3331_p12), [#allocation18], 32  }
 0x163   : > { %2586 = vsyncadd (%p3332_p13), [#allocation18], 4294967264  ;;  %p3333_p1 = pmov %p3326_p0 }
 0x164   : > { %p3334_p3 = pmov %p3326_p0 }
 0x165   : > { %2588 = dma.done.wait (%p3333_p1), [#allocation21], 16  }
 0x166   : > { %2590 = vsyncadd (%p3334_p3), [#allocation21], 4294967280  ;;  %vm583_vm0 = vcmask 523264   ;;  %v3094_v0 = vld [vmem:[%s493_s25] sm:$0xff]  ;;  %v3096_v1 = vld [vmem:[%s493_s25 + $0x8] sm:$0xff]  ;;  %v2627_v15 = vmov 0.0  }
 0x167   : > { %v584_v2 = vsel %vm583_vm0, %v3094_v0, 0.0  ;;  %v587_v3 = vsel %vm583_vm0, %v3096_v1, 0.0  ;;  %v2129_v14 = vld [vmem:[#allocation13] sm:$0xff]   ;;  %1873 = vmatprep.subr.bf16.mxu1 %v2627_v15  ;;  %1861 = vmatprep.subr.bf16.mxu0 %v2627_v15  ;;  %v2131_v17 = vld [vmem:[#allocation13 + $0x8] sm:$0xff]   ;;  %v2133_v19 = vld [vmem:[#allocation13 + $0x10] sm:$0xff]   ;;  %vm2628_vm1 = vmmov 0  }
 0x168   : > { %585 = vadd.xlane.f32.xlu0 %v584_v2  ;;  %1874 = vmatpush3.bf16.msra.mxu1 %v2129_v14  ;;  %v2130_v16 = vld [vmem:[#allocation10] sm:$0xff]   ;;  %v2132_v18 = vld [vmem:[#allocation10 + $0x8] sm:$0xff]   ;;  %v2134_v20 = vld [vmem:[#allocation10 + $0x10] sm:$0xff]   ;;  %s2629_s29 = smov 48   ;;  %s2630_s27 = smov 64   ;;  %vm813_vm2 = vcmask 130048  }
 0x169   : > { %1875 = vmatprep.subr.bf16.mxu1 %v2627_v15  ;;  %1862 = vmatpush3.bf16.msra.mxu0 %v2130_v16  ;;  %v2135_v21 = vld [vmem:[#allocation13 + $0x18] sm:$0xff]   ;;  %v627_v38 = vld [vmem:[#allocation5] sm:$0xff]  ;;  %v1795_v45 = vld [vmem:[#allocation14] ss:$0 sm:$0xff]  ;;  %s2631_s17 = smov 112   ;;  %s2632_s0 = smov 96  }
 0x16a   : > { %1863 = vmatprep.subr.bf16.mxu0 %v2627_v15  ;;  %1881 = vmatprep.mubr.msk.bf16.mxu1 %vm2628_vm1, %v2627_v15  ;;  %v2136_v22 = vld [vmem:[#allocation10 + $0x18] sm:$0xff]   ;;  %v1789_v48 = vld [vmem:[#allocation11] ss:$0 sm:$0xff]  ;;  %s2633_s20 = smov 32   ;;  %s2634_s28 = smov 16  }
 0x16b   : > { %1869 = vmatprep.mubr.msk.bf16.mxu0 %vm2628_vm1, %v2627_v15  ;;  %v1787_v30 = vld [vmem:[#allocation7] ss:$0 sm:$0xff]  ;;  %v1788_v34 = vld [vmem:[#allocation8] ss:$0 sm:$0xff]  ;;  %v628_v39 = vld [vmem:[#allocation5 + $0x8] sm:$0xff]  ;;  %s2635_s14 = smov 80  }
 0x16c   : > { %588 = vadd.xlane.f32.xlu0 %v587_v3  ;;  %1876 = vmatpush3.bf16.msra.mxu1 %v2131_v17  ;;  %s1826_s26 = sshll.u32 %s3322_s1, 8  ;;  %s577_s19 = scalar_lea.vmem [#allocation22], %s1774_s16 }
 0x16d   : > { %1877 = vmatprep.subr.bf16.mxu1 %v2627_v15  ;;  %1864 = vmatpush3.bf16.msra.mxu0 %v2132_v18  ;;  %s1578_s25 = sshll.u32 %s577_s19, 4  ;;  %s1565_s1 = scalar_lea.sflag [#allocation4], %s3060_s12  ;;  %s3230_s25 = int_to_ptr.vmem [resolvable:$true] %s1578_s25 }
 0x16e   : > { %1865 = vmatprep.subr.bf16.mxu0 %v2627_v15  ;;  %s2519_s16 = scalar_lea.vmem %s3230_s25, 256  ;;  %p3336_p8 = scmp.ne.s32.totalorder %s3314_s18, 0 }
 0x16f   : > { %p2520_p2 = scmp.ne.s32.totalorder %s3230_s25, %s2519_s16 }
 0x170   : > { %1878 = vmatpush3.bf16.msra.mxu1 %v2133_v19 }
 0x171   : > { %1879 = vmatprep.subr.bf16.mxu1 %v2627_v15  ;;  %1866 = vmatpush3.bf16.msra.mxu0 %v2134_v20  ;;  %p2521_p6 = pnand %p2520_p2, %p3336_p8 }
 0x172   : > { %1867 = vmatprep.subr.bf16.mxu0 %v2627_v15 }
 0x173   : > { %p2522_p10 = pneg %p2521_p6 }
 0x174   : > { %1880 = vmatpush3.bf16.msra.mxu1 %v2135_v21 }
 0x175   : > { %1891 = vmatprep.subr.bf16.mxu1 %v2627_v15  ;;  %1868 = vmatpush3.bf16.msra.mxu0 %v2136_v22 }
 0x176   : > { %1885 = vmatprep.subr.bf16.mxu0 %v2627_v15 }
 0x1f5   : > { %v586_v4 = vpop.xlane.xlu0 %585 }
 0x1f6   : > { %v591_v5 = vmul.f32 0.015625, %v586_v4 }
 0x1f8   : > { %v593_v6 = vsub.f32 %v3094_v0, %v591_v5 }
 0x1f9   : > { %v589_v7 = vpop.xlane.xlu0 %588 }
 0x1fa   : > { %v592_v8 = vmul.f32 0.015625, %v589_v7  ;;  %v595_v9 = vmul.f32 %v593_v6, %v593_v6 }
 0x1fc   : > { %v594_v10 = vsub.f32 %v3096_v1, %v592_v8  ;;  %v597_v11 = vsel %vm583_vm0, %v595_v9, 0.0 }
 0x1fd   : > { %598 = vadd.xlane.f32.xlu1 %v597_v11 }
 0x1fe   : > { %v596_v12 = vmul.f32 %v594_v10, %v594_v10 }
 0x200   : > { %v600_v13 = vsel %vm583_vm0, %v596_v12, 0.0 }
 0x201   : > { %601 = vadd.xlane.f32.xlu1 %v600_v13 }
 0x28a   : > { %v599_v23 = vpop.xlane.xlu1 %598 }
 0x28b   : > { %v603_v24 = vmul.f32 0.015625, %v599_v23 }
 0x28d   : > { %v605_v25 = vadd.f32 1e-05, %v603_v24 }
 0x28e   : > { %v602_v26 = vpop.xlane.xlu1 %601 }
 0x28f   : > { %2141 = vrsqrt.f32 %v605_v25  ;;  %v604_v27 = vmul.f32 0.015625, %v602_v26 }
 0x291   : > { %v606_v28 = vadd.f32 1e-05, %v604_v27 }
 0x293   : > { %2143 = vrsqrt.f32 %v606_v28 }
 0x299   : > { %v2142_v29 = vpop.eup %2141 }
 0x29a   : > { %v609_v31 = vmul.f32 %v2142_v29, %v593_v6 }
 0x29c   : > { %v617_v32 = vmul.f32 %v1787_v30, %v609_v31 }
 0x29d   : > { %v2144_v33 = vpop.eup %2143 }
 0x29e   : > { %v610_v35 = vmul.f32 %v2144_v33, %v594_v10  ;;  %v625_v37 = vadd.f32 %v1788_v34, %v617_v32 }
 0x2a0   : > { %v618_v36 = vmul.f32 %v1787_v30, %v610_v35  ;;  %v629_v42 = vadd.f32 %v627_v38, %v625_v37 }
 0x2a2   : > { %v626_v40 = vadd.f32 %v1788_v34, %v618_v36 }
 0x2a4   : > { %v715_v41 = vpack.c.bf16 %v626_v40, %v625_v37  ;;  %v630_v43 = vadd.f32 %v628_v39, %v626_v40 }
 0x2a6   : > { %1882 = vmatmul.mubr.msk.bf16.vlgmr.msra.gmra.mrb[0].mxu1 %vm583_vm0, %v715_v41  ;;  %v631_v44 = vpack.c.bf16 %v630_v43, %v629_v42 }
 0x2a7   : > { %1893 = vmatprep.mubr.msk.bf16.mxu1 %vm2628_vm1, %v2627_v15 }
 0x2a8   : > { %1870 = vmatmul.mubr.msk.bf16.vlgmr.msra.gmra.mrb[0].mxu0 %vm583_vm0, %v631_v44 }
 0x2a9   : > { %1887 = vmatprep.mubr.msk.bf16.mxu0 %vm2628_vm1, %v2627_v15 }
 0x379   : > { %v792_v46 = vpop.f32.mrb[0].mxu1 }
 0x37a   : > { %v1883_v47 = vpop.f32.mrb[1].mxu1  ;;  %v793_v51 = vadd.f32 %v1795_v45, %v792_v46 }
 0x37b   : > { %v708_v49 = vpop.f32.mrb[0].mxu0  ;;  %v795_v50 = vpop.f32.mrb[2].mxu1 }
 0x37c   : > { %v796_v52 = vadd.f32 %v1795_v45, %v795_v50  ;;  %v1871_v53 = vpop.f32.mrb[1].mxu0  ;;  %v1884_v54 = vpop.f32.mrb[3].mxu1  ;;  %v709_v56 = vadd.f32 %v1789_v48, %v708_v49 }
 0x37d   : > { %v711_v55 = vpop.f32.mrb[2].mxu0 }
 0x37e   : > { %v3126_v57 = vpack.c.bf16 %v796_v52, %v793_v51  ;;  %v712_v58 = vadd.f32 %v1789_v48, %v711_v55  ;;  %v1872_v59 = vpop.f32.mrb[3].mxu0 }
 0x380   : > { %v3128_v60 = vpack.c.bf16 %v712_v58, %v709_v56  ;;  %1892 = vmatpush3.bf16.msra.mxu1 %v3126_v57  ;;  %v2137_v56 = vld [vmem:[#allocation16] sm:$0xff]   ;;  %v2138_v58 = vld [vmem:[#allocation16 + $0x8] sm:$0xff]  }
 0x381   : > { %1903 = vmatprep.subr.bf16.mxu1 %v2627_v15 }
 0x382   : > { %933 = vrot.lane.b32.xlu1 %v3128_v60, %s2629_s29  ;;  %811 = vrot.lane.b32.xlu0 %v3128_v60, %s2630_s27 }
 0x386   : > { %931 = vrot.lane.b32.xlu1 %v3128_v60, %s2631_s17 }
 0x3f4   : > { %v812_v61 = vpop.permute.xlu0 %811  ;;  %v934_v63 = vpop.permute.xlu1 %933 }
 0x3f5   : > { %v818_v62 = vsel %vm813_vm2, %v812_v61, 0  ;;  %v939_v2 = vsel %vm813_vm2, %v934_v63, 0 }
 0x3f6   : > { %1886 = vmatpush3.bf16.xpose.msra.mxu0 %v818_v62 }
 0x3f7   : > { %1897 = vmatprep.subr.bf16.mxu0 %v2627_v15 }
 0x3f8   : > { %v932_v3 = vpop.permute.xlu1 %931 }
 0x3fd   : > { %1888 = vmatmul.mubr.msk.bf16.vlgmr.msra.gmra.mrb[4].mxu0 %vm813_vm2, %v3128_v60 }
 0x3fe   : > { %1898 = vmatpush3.bf16.xpose.msra.mxu0 %v939_v2  ;;  %1899 = vmatprep.mubr.msk.bf16.mxu0 %vm2628_vm1, %v2627_v15 }
 0x3ff   : > { %1909 = vmatprep.subr.bf16.mxu0 %v2627_v15 }
 0x405   : > { %1900 = vmatmul.mubr.msk.bf16.vlgmr.msra.gmra.mrb[8].mxu0 %vm813_vm2, %v932_v3 }
 0x406   : > { %1911 = vmatprep.mubr.msk.bf16.mxu0 %vm2628_vm1, %v2627_v15  ;;  %1910 = vmatpush3.bf16.msra.mxu0 %v2138_v58 }
 0x407   : > { %1921 = vmatprep.subr.bf16.mxu0 %v2627_v15 }
 0x4d0   : > { %v854_v4 = vpop.f32.mrb[4].mxu0 }
 0x4d1   : > { %v861_v5 = vmul.f32 0.25, %v854_v4  ;;  %v1889_v6 = vpop.f32.mrb[5].mxu0 }
 0x4d2   : > { %v857_v7 = vpop.f32.mrb[6].mxu0 }
 0x4d3   : > { %v862_v8 = vmul.f32 0.25, %v857_v7  ;;  %v1890_v9 = vpop.f32.mrb[7].mxu0  ;;  %v863_v10 = vsel %vm813_vm2, %v861_v5, -inf }
 0x4d4   : > { %864 = vmax.xlane.f32.xlu1 %v863_v10 }
 0x4d5   : > { %v866_v11 = vsel %vm813_vm2, %v862_v8, -inf }
 0x4d6   : > { %867 = vmax.xlane.f32.xlu0 %v866_v11 }
 0x4d8   : > { %v975_v12 = vpop.f32.mrb[8].mxu0 }
 0x4d9   : > { %v982_v13 = vmul.f32 0.25, %v975_v12  ;;  %v1901_v14 = vpop.f32.mrb[9].mxu0 }
 0x4da   : > { %v978_v16 = vpop.f32.mrb[10].mxu0 }
 0x4db   : > { %v983_v17 = vmul.f32 0.25, %v978_v16  ;;  %v1902_v18 = vpop.f32.mrb[11].mxu0  ;;  %v984_v19 = vsel %vm813_vm2, %v982_v13, -inf }
 0x4dc   : > { %985 = vmax.xlane.f32.xlu0 %v984_v19 }
 0x4dd   : > { %v987_v20 = vsel %vm813_vm2, %v983_v17, -inf }
 0x4e0   : > { %988 = vmax.xlane.f32.xlu0 %v987_v20 }
 0x561   : > { %v865_v21 = vpop.xlane.xlu1 %864 }
 0x562   : > { %v869_v22 = vsub.f32 %v861_v5, %v865_v21 }
 0x563   : > { %v868_v23 = vpop.xlane.xlu0 %867 }
 0x564   : > { %v871_v24 = vmul.f32 1.442695, %v869_v22  ;;  %v870_v25 = vsub.f32 %v862_v8, %v868_v23 }
 0x566   : > { %2145 = vpow2.f32 %v871_v24  ;;  %v873_v26 = vmul.f32 1.442695, %v870_v25 }
 0x568   : > { %2147 = vpow2.f32 %v873_v26 }
 0x569   : > { %v986_v27 = vpop.xlane.xlu0 %985 }
 0x56a   : > { %v990_v28 = vsub.f32 %v982_v13, %v986_v27 }
 0x56c   : > { %v992_v29 = vmul.f32 1.442695, %v990_v28 }
 0x56d   : > { %v989_v30 = vpop.xlane.xlu0 %988 }
 0x56e   : > { %2149 = vpow2.f32 %v992_v29  ;;  %v991_v31 = vsub.f32 %v983_v17, %v989_v30 }
 0x570   : > { %v2146_v32 = vpop.eup %2145  ;;  %v994_v33 = vmul.f32 1.442695, %v991_v31 }
 0x571   : > { %v875_v34 = vsel %vm813_vm2, %v2146_v32, 0.0 }
 0x572   : > { %v2148_v35 = vpop.eup %2147  ;;  %2151 = vpow2.f32 %v994_v33  ;;  %876 = vadd.xlane.f32.xlu1 %v875_v34 }
 0x573   : > { %v878_v36 = vsel %vm813_vm2, %v2148_v35, 0.0 }
 0x574   : > { %879 = vadd.xlane.f32.xlu0 %v878_v36 }
 0x578   : > { %v2150_v37 = vpop.eup %2149 }
 0x579   : > { %v996_v38 = vsel %vm813_vm2, %v2150_v37, 0.0 }
 0x57a   : > { %997 = vadd.xlane.f32.xlu1 %v996_v38 }
 0x57c   : > { %v2152_v39 = vpop.eup %2151 }
 0x57d   : > { %v999_v40 = vsel %vm813_vm2, %v2152_v39, 0.0 }
 0x57e   : > { %1000 = vadd.xlane.f32.xlu0 %v999_v40 }
 0x58b   : > { %1008 = vrot.lane.b32.xlu1 %v3126_v57, %s2631_s17  ;;  %s3335_s17 = sld [smem:[#allocation36_spill]] }
 0x58f   : > { %1156 = vrot.lane.b32.xlu1 %v3128_v60, %s2632_s0 }
 0x594   : > { %1158 = vrot.lane.b32.xlu0 %v3128_v60, %s2633_s20  ;;  %s2636_s20 = smov [#allocation22]  }
 0x5ff   : > { %v877_v41 = vpop.xlane.xlu1 %876 }
 0x600   : > { %2153 = vrcp.f32 %v877_v41 }
 0x601   : > { %v880_v42 = vpop.xlane.xlu0 %879 }
 0x602   : > { %2155 = vrcp.f32 %v880_v42 }
 0x607   : > { %v998_v43 = vpop.xlane.xlu1 %997 }
 0x608   : > { %2157 = vrcp.f32 %v998_v43 }
 0x60a   : > { %v2154_v44 = vpop.eup %2153 }
 0x60b   : > { %v1001_v45 = vpop.xlane.xlu0 %1000  ;;  %v883_v47 = vmul.f32 %v2154_v44, %v2146_v32  ;;  %v1009_v50 = vpop.permute.xlu1 %1008 }
 0x60c   : > { %v2156_v46 = vpop.eup %2155  ;;  %2159 = vrcp.f32 %v1001_v45 }
 0x60d   : > { %v884_v48 = vmul.f32 %v2156_v46, %v2148_v35 }
 0x60f   : > { %v885_v49 = vpack.c.bf16 %v884_v48, %v883_v47  ;;  %v1159_v5 = vpop.permute.xlu0 %1158  ;;  %v1157_v10 = vpop.permute.xlu1 %1156 }
 0x610   : > { %v1164_v9 = vsel %vm813_vm2, %v1159_v5, 0 }
 0x611   : > { %1894 = vmatmul.mubr.msk.bf16.vlgmr.msra.gmra.mrb[4].mxu1 %vm813_vm2, %v885_v49 }
 0x612   : > { %1904 = vmatpush3.bf16.msra.mxu1 %v1009_v50  ;;  %1905 = vmatprep.mubr.msk.bf16.mxu1 %vm2628_vm1, %v2627_v15  ;;  %v2158_v51 = vpop.eup %2157  ;;  %v2139_v50 = vld [vmem:[#allocation16 + $0x10] sm:$0xff]  }
 0x613   : > { %1915 = vmatprep.subr.bf16.mxu1 %v2627_v15  ;;  %v1004_v53 = vmul.f32 %v2158_v51, %v2150_v37 }
 0x616   : > { %v2160_v52 = vpop.eup %2159 }
 0x617   : > { %v1005_v54 = vmul.f32 %v2160_v52, %v2152_v39 }
 0x619   : > { %v1006_v55 = vpack.c.bf16 %v1005_v54, %v1004_v53 }
 0x61b   : > { %1906 = vmatmul.mubr.msk.bf16.vlgmr.msra.gmra.mrb[8].mxu1 %vm813_vm2, %v1006_v55 }
 0x61c   : > { %1917 = vmatprep.mubr.msk.bf16.mxu1 %vm2628_vm1, %v2627_v15  ;;  %1916 = vmatpush3.bf16.msra.mxu1 %v2137_v56 }
 0x61d   : > { %1927 = vmatprep.subr.bf16.mxu1 %v2627_v15 }
 0x6e4   : > { %v923_v59 = vpop.f32.mrb[4].mxu1 }
 0x6e5   : > { %v1895_v61 = vpop.f32.mrb[5].mxu1 }
 0x6e6   : > { %v926_v62 = vpop.f32.mrb[6].mxu1 }
 0x6e7   : > { %v930_v63 = vpack.c.bf16 %v926_v62, %v923_v59  ;;  %v1896_v2 = vpop.f32.mrb[7].mxu1 }
 0x6e9   : > { %1918 = vmatmul.mubr.msk.bf16.vlgmr.msra.gmra.mrb[12].mxu1 %vm813_vm2, %v930_v63 }
 0x6ea   : > { %1929 = vmatprep.mubr.msk.bf16.mxu1 %vm2628_vm1, %v2627_v15 }
 0x6ee   : > { %v1048_v3 = vpop.f32.mrb[8].mxu1 }
 0x6ef   : > { %v1907_v4 = vpop.f32.mrb[9].mxu1 }
 0x6f0   : > { %v1051_v6 = vpop.f32.mrb[10].mxu1 }
 0x6f1   : > { %v1055_v7 = vpack.c.bf16 %v1051_v6, %v1048_v3  ;;  %v1908_v8 = vpop.f32.mrb[11].mxu1 }
 0x6f3   : > { %1912 = vmatmul.mubr.msk.bf16.vlgmr.msra.gmra.mrb[12].mxu0 %vm813_vm2, %v1055_v7 }
 0x6f4   : > { %1922 = vmatpush3.bf16.xpose.msra.mxu0 %v1164_v9  ;;  %1923 = vmatprep.mubr.msk.bf16.mxu0 %vm2628_vm1, %v2627_v15 }
 0x6f5   : > { %1933 = vmatprep.subr.bf16.mxu0 %v2627_v15 }
 0x6fb   : > { %1924 = vmatmul.mubr.msk.bf16.vlgmr.msra.gmra.mrb[16].mxu0 %vm813_vm2, %v1157_v10 }
 0x6fc   : > { %1935 = vmatprep.mubr.msk.bf16.mxu0 %vm2628_vm1, %v2627_v15  ;;  %1934 = vmatpush3.bf16.msra.mxu0 %v2139_v50 }
 0x6fd   : > { %1945 = vmatprep.subr.bf16.mxu0 %v2627_v15 }
 0x7bc   : > { %v1149_v11 = vpop.f32.mrb[12].mxu1 }
 0x7bd   : > { %v1919_v12 = vpop.f32.mrb[13].mxu1 }
 0x7be   : > { %v1152_v13 = vpop.f32.mrb[14].mxu1 }
 0x7bf   : > { %v1920_v14 = vpop.f32.mrb[15].mxu1 }
 0x7c0   : > { %v2140_v14 = vld [vmem:[#allocation16 + $0x18] sm:$0xff]  }
 0x7c6   : > { %v1099_v16 = vpop.f32.mrb[12].mxu0 }
 0x7c7   : > { %v3180_v17 = vadd.f32 %v1149_v11, %v1099_v16  ;;  %v1913_v18 = vpop.f32.mrb[13].mxu0 }
 0x7c8   : > { %v1102_v19 = vpop.f32.mrb[14].mxu0 }
 0x7c9   : > { %v3182_v20 = vadd.f32 %v1152_v13, %v1102_v19  ;;  %v1914_v21 = vpop.f32.mrb[15].mxu0 }
 0x7ce   : > { %v1200_v22 = vpop.f32.mrb[16].mxu0 }
 0x7cf   : > { %v1207_v23 = vmul.f32 0.25, %v1200_v22  ;;  %v1925_v24 = vpop.f32.mrb[17].mxu0 }
 0x7d0   : > { %v1203_v25 = vpop.f32.mrb[18].mxu0 }
 0x7d1   : > { %v1208_v26 = vmul.f32 0.25, %v1203_v25  ;;  %v1926_v27 = vpop.f32.mrb[19].mxu0  ;;  %v1209_v28 = vsel %vm813_vm2, %v1207_v23, -inf }
 0x7d2   : > { %1210 = vmax.xlane.f32.xlu1 %v1209_v28 }
 0x7d3   : > { %v1212_v29 = vsel %vm813_vm2, %v1208_v26, -inf }
 0x7d4   : > { %1213 = vmax.xlane.f32.xlu0 %v1212_v29 }
 0x85f   : > { %v1211_v30 = vpop.xlane.xlu1 %1210 }
 0x860   : > { %v1215_v31 = vsub.f32 %v1207_v23, %v1211_v30 }
 0x861   : > { %v1214_v32 = vpop.xlane.xlu0 %1213 }
 0x862   : > { %v1217_v33 = vmul.f32 1.442695, %v1215_v31  ;;  %v1216_v34 = vsub.f32 %v1208_v26, %v1214_v32 }
 0x864   : > { %2161 = vpow2.f32 %v1217_v33  ;;  %v1219_v35 = vmul.f32 1.442695, %v1216_v34  ;;  %v1817_v34 = vld [vmem:[#allocation17] ss:$0 sm:$0xff] }
 0x866   : > { %2163 = vpow2.f32 %v1219_v35 }
 0x86e   : > { %v2162_v36 = vpop.eup %2161 }
 0x86f   : > { %v1221_v37 = vsel %vm813_vm2, %v2162_v36, 0.0 }
 0x870   : > { %v2164_v38 = vpop.eup %2163  ;;  %1222 = vadd.xlane.f32.xlu0 %v1221_v37 }
 0x871   : > { %v1224_v39 = vsel %vm813_vm2, %v2164_v38, 0.0 }
 0x872   : > { %1225 = vadd.xlane.f32.xlu1 %v1224_v39 }
 0x883   : > { %1334 = vrot.lane.b32.xlu1 %v3128_v60, %s2634_s28  ;;  %s2523_s28 = sshll.u32 %s2636_s20, 4  ;;  %s2524_s28 = int_to_ptr.vmem [resolvable:$false] %s2523_s28 }
 0x884   : > { %p2526_p11 = scmp.lt.s32.totalorder %s3230_s25, %s2524_s28 }
 0x886   : > { %1232 = vrot.lane.b32.xlu0 %v3126_v57, %s2632_s0  ;;  %s3228_s0 = scalar_lea.hbm %s3335_s17, %s1826_s26 }
 0x887   : > { %1332 = vrot.lane.b32.xlu1 %v3128_v60, %s2635_s14 }
 0x8fd   : > { %v1223_v40 = vpop.xlane.xlu0 %1222 }
 0x8fe   : > { %2165 = vrcp.f32 %v1223_v40 }
 0x8ff   : > { %v1226_v41 = vpop.xlane.xlu1 %1225 }
 0x900   : > { %2167 = vrcp.f32 %v1226_v41 }
 0x901   : > { %v1233_v42 = vpop.permute.xlu0 %1232 }
 0x902   : > { %1928 = vmatpush3.bf16.msra.mxu1 %v1233_v42 }
 0x903   : > { %1939 = vmatprep.subr.bf16.mxu1 %v2627_v15  ;;  %v1335_v47 = vpop.permute.xlu1 %1334 }
 0x904   : > { %v1340_v49 = vsel %vm813_vm2, %v1335_v47, 0 }
 0x907   : > { %v1333_v60 = vpop.permute.xlu1 %1332 }
 0x908   : > { %v2166_v43 = vpop.eup %2165 }
 0x909   : > { %v1229_v45 = vmul.f32 %v2166_v43, %v2162_v36 }
 0x90a   : > { %v2168_v44 = vpop.eup %2167 }
 0x90b   : > { %v1230_v46 = vmul.f32 %v2168_v44, %v2164_v38 }
 0x90d   : > { %v1231_v48 = vpack.c.bf16 %v1230_v46, %v1229_v45 }
 0x90f   : > { %1930 = vmatmul.mubr.msk.bf16.vlgmr.msra.gmra.mrb[16].mxu1 %vm813_vm2, %v1231_v48 }
 0x910   : > { %1940 = vmatpush3.bf16.xpose.msra.mxu1 %v1340_v49  ;;  %1941 = vmatprep.mubr.msk.bf16.mxu1 %vm2628_vm1, %v2627_v15 }
 0x911   : > { %1951 = vmatprep.subr.bf16.mxu1 %v2627_v15 }
 0x917   : > { %1942 = vmatmul.mubr.msk.bf16.vlgmr.msra.gmra.mrb[20].mxu1 %vm813_vm2, %v1333_v60 }
 0x918   : > { %1953 = vmatprep.mubr.msk.bf16.mxu1 %vm2628_vm1, %v2627_v15  ;;  %1952 = vmatpush3.bf16.msra.mxu1 %v2140_v14 }
 0x9e2   : > { %v1272_v51 = vpop.f32.mrb[16].mxu1 }
 0x9e3   : > { %v1931_v52 = vpop.f32.mrb[17].mxu1 }
 0x9e4   : > { %v1275_v53 = vpop.f32.mrb[18].mxu1 }
 0x9e5   : > { %v1279_v54 = vpack.c.bf16 %v1275_v53, %v1272_v51  ;;  %v1932_v55 = vpop.f32.mrb[19].mxu1 }
 0x9e7   : > { %1936 = vmatmul.mubr.msk.bf16.vlgmr.msra.gmra.mrb[20].mxu0 %vm813_vm2, %v1279_v54 }
 0x9e8   : > { %1947 = vmatprep.mubr.msk.bf16.mxu0 %vm2628_vm1, %v2627_v15 }
 0x9ea   : > { %v1376_v56 = vpop.f32.mrb[20].mxu1 }
 0x9eb   : > { %v1383_v58 = vmul.f32 0.25, %v1376_v56  ;;  %v1943_v59 = vpop.f32.mrb[21].mxu1 }
 0x9ec   : > { %v1379_v61 = vpop.f32.mrb[22].mxu1 }
 0x9ed   : > { %v1384_v62 = vmul.f32 0.25, %v1379_v61  ;;  %v1944_v63 = vpop.f32.mrb[23].mxu1  ;;  %v1385_v2 = vsel %vm813_vm2, %v1383_v58, -inf }
 0x9ee   : > { %1386 = vmax.xlane.f32.xlu1 %v1385_v2  ;;  %v1819_v2 = vld [vmem:[#allocation20] ss:$0 sm:$0xff] }
 0x9ef   : > { %v1388_v3 = vsel %vm813_vm2, %v1384_v62, -inf }
 0x9f0   : > { %1389 = vmax.xlane.f32.xlu0 %v1388_v3 }
 0x9ff   : > { %1408 = vrot.lane.b32.xlu1 %v3126_v57, %s2635_s14  ;;  %s2525_s14 = scalar_lea.vmem %s2524_s28, 512 }
 0xa00   : > { %p2527_p0 = scmp.lt.s32.totalorder %s2525_s14, %s2519_s16 }
 0xa02   : > { %p2528_p5 = por %p2527_p0, %p2526_p11 }
 0xa04   : > { %p2529_p9 = pnand %p2528_p5, %p2522_p10 }
 0xa7b   : > { %v1387_v4 = vpop.xlane.xlu1 %1386 }
 0xa7c   : > { %v1391_v5 = vsub.f32 %v1383_v58, %v1387_v4 }
 0xa7d   : > { %v1390_v6 = vpop.xlane.xlu0 %1389 }
 0xa7e   : > { %v1393_v7 = vmul.f32 1.442695, %v1391_v5  ;;  %v1392_v15 = vsub.f32 %v1384_v62, %v1390_v6  ;;  %v1818_v62 = vld [vmem:[#allocation19] ss:$0 sm:$0xff] }
 0xa7f   : > { %v1409_v8 = vpop.permute.xlu1 %1408 }
 0xa80   : > { %2169 = vpow2.f32 %v1393_v7  ;;  %v1395_v9 = vmul.f32 1.442695, %v1392_v15  ;;  %1946 = vmatpush3.bf16.msra.mxu0 %v1409_v8 }
 0xa82   : > { %2171 = vpow2.f32 %v1395_v9 }
 0xa8a   : > { %v2170_v10 = vpop.eup %2169 }
 0xa8b   : > { %v1397_v11 = vsel %vm813_vm2, %v2170_v10, 0.0 }
 0xa8c   : > { %v2172_v12 = vpop.eup %2171  ;;  %1398 = vadd.xlane.f32.xlu0 %v1397_v11 }
 0xa8d   : > { %v1400_v13 = vsel %vm813_vm2, %v2172_v12, 0.0 }
 0xa90   : > { %1401 = vadd.xlane.f32.xlu0 %v1400_v13 }
 0xaba   : > { %v1323_v57 = vpop.f32.mrb[20].mxu0 }
 0xabb   : > { %v1330_v16 = vadd.f32 %v1323_v57, %v3180_v17  ;;  %v1937_v18 = vpop.f32.mrb[21].mxu0 }
 0xabc   : > { %v1326_v19 = vpop.f32.mrb[22].mxu0 }
 0xabd   : > { %v1331_v21 = vadd.f32 %v1326_v19, %v3182_v20  ;;  %v1938_v22 = vpop.f32.mrb[23].mxu0 }
 0xb19   : > { %v1399_v23 = vpop.xlane.xlu0 %1398 }
 0xb1a   : > { %2173 = vrcp.f32 %v1399_v23 }
 0xb1d   : > { %v1402_v24 = vpop.xlane.xlu0 %1401 }
 0xb1e   : > { %2175 = vrcp.f32 %v1402_v24 }
 0xb24   : > { %v2174_v25 = vpop.eup %2173 }
 0xb25   : > { %v1405_v27 = vmul.f32 %v2174_v25, %v2170_v10 }
 0xb28   : > { %v2176_v26 = vpop.eup %2175 }
 0xb29   : > { %v1406_v28 = vmul.f32 %v2176_v26, %v2172_v12 }
 0xb2b   : > { %v1407_v29 = vpack.c.bf16 %v1406_v28, %v1405_v27 }
 0xb2d   : > { %1948 = vmatmul.mubr.msk.bf16.vlgmr.msra.gmra.mrb[24].mxu0 %vm813_vm2, %v1407_v29 }
 0xc00   : > { %v1448_v30 = vpop.f32.mrb[24].mxu0 }
 0xc01   : > { %v1949_v31 = vpop.f32.mrb[25].mxu0 }
 0xc02   : > { %v1451_v32 = vpop.f32.mrb[26].mxu0 }
 0xc03   : > { %v1455_v17 = vpack.c.bf16 %v1451_v32, %v1448_v30  ;;  %v1950_v33 = vpop.f32.mrb[27].mxu0 }
 0xc05   : > { %1954 = vmatmul.mubr.msk.bf16.vlgmr.msra.gmra.mrb[24].mxu1 %vm813_vm2, %v1455_v17 }
 0xcd8   : > { %v1499_v20 = vpop.f32.mrb[24].mxu1 }
 0xcd9   : > { %v1506_v35 = vadd.f32 %v1499_v20, %v1330_v16  ;;  %v1955_v36 = vpop.f32.mrb[25].mxu1 }
 0xcda   : > { %v1502_v37 = vpop.f32.mrb[26].mxu1 }
 0xcdb   : > { %v1507_v38 = vadd.f32 %v1502_v37, %v1331_v21  ;;  %v1956_v39 = vpop.f32.mrb[27].mxu1  ;;  %v1514_v40 = vadd.f32 %v1817_v34, %v1506_v35 }
 0xcdd   : > { %v1518_v41 = vsel %vm583_vm0, %v1514_v40, 0.0  ;;  %v1515_v42 = vadd.f32 %v1817_v34, %v1507_v38 }
 0xcde   : > { %1519 = vadd.xlane.f32.xlu0 %v1518_v41 }
 0xcdf   : > { %v1521_v43 = vsel %vm583_vm0, %v1515_v42, 0.0 }
 0xce2   : > { %1522 = vadd.xlane.f32.xlu0 %v1521_v43 }
 0xd6b   : > { %v1520_v44 = vpop.xlane.xlu0 %1519 }
 0xd6c   : > { %v1524_v45 = vmul.f32 0.015625, %v1520_v44 }
 0xd6e   : > { %v1526_v46 = vsub.f32 %v1514_v40, %v1524_v45 }
 0xd6f   : > { %v1523_v47 = vpop.xlane.xlu0 %1522 }
 0xd70   : > { %v1525_v48 = vmul.f32 0.015625, %v1523_v47  ;;  %v1528_v49 = vmul.f32 %v1526_v46, %v1526_v46 }
 0xd72   : > { %v1527_v60 = vsub.f32 %v1515_v42, %v1525_v48  ;;  %v1530_v50 = vsel %vm583_vm0, %v1528_v49, 0.0 }
 0xd73   : > { %1531 = vadd.xlane.f32.xlu0 %v1530_v50 }
 0xd74   : > { %v1529_v51 = vmul.f32 %v1527_v60, %v1527_v60 }
 0xd76   : > { %v1533_v52 = vsel %vm583_vm0, %v1529_v51, 0.0 }
 0xd77   : > { %1534 = vadd.xlane.f32.xlu0 %v1533_v52 }
 0xe00   : > { %v1532_v53 = vpop.xlane.xlu0 %1531 }
 0xe01   : > { %v1536_v54 = vmul.f32 0.015625, %v1532_v53 }
 0xe03   : > { %v1538_v55 = vadd.f32 1e-05, %v1536_v54 }
 0xe04   : > { %v1535_v56 = vpop.xlane.xlu0 %1534 }
 0xe05   : > { %2177 = vrsqrt.f32 %v1538_v55  ;;  %v1537_v58 = vmul.f32 0.015625, %v1535_v56 }
 0xe07   : > { %v1539_v59 = vadd.f32 1e-05, %v1537_v58 }
 0xe09   : > { %2179 = vrsqrt.f32 %v1539_v59 }
 0xe0f   : > { %v2178_v61 = vpop.eup %2177 }
 0xe10   : > { %v1542_v63 = vmul.f32 %v2178_v61, %v1526_v46 }
 0xe12   : > { %v1550_v3 = vmul.f32 %v1818_v62, %v1542_v63 }
 0xe13   : > { %v2180_v4 = vpop.eup %2179 }
 0xe14   : > { %v1558_v5 = vadd.f32 %v1819_v2, %v1550_v3  ;;  %v1543_v6 = vmul.f32 %v2180_v4, %v1527_v60 }
 0xe16   : > { %v1560_v7 = vadd.f32 %v1558_v5, %v3094_v0  ;;  %v1551_v15 = vmul.f32 %v1818_v62, %v1543_v6 }
 0xe18   : > { %v1559_v8 = vadd.f32 %v1819_v2, %v1551_v15  ;;  %1562 = vst.msk [vmem:[%s577_s19] sm:$0xff] %vm583_vm0, %v1560_v7 }
 0xe1a   : > { %v1561_v0 = vadd.f32 %v1559_v8, %v3096_v1 }
 0xe1c   : > { %1563 = vst.msk [vmem:[%s577_s19 + $0x8] sm:$0xff] %vm583_vm0, %v1561_v0 }
 0xe1d   : > { %2532 = shalt.err (!%p2529_p9)
}
 0xe1e   : > { %s2533_s26 = scalar_lea.hbm %s3228_s0, 256  ;;  %s2537_s27 = scalar_lea.hbm %s3335_s17, 512 }
 0xe1f   : > { %p2534_p7 = scmp.ne.s32.totalorder %s3228_s0, %s2533_s26  ;;  %p2538_p13 = scmp.lt.u32.totalorder %s3228_s0, %s3335_s17 }
 0xe20   : > { %p2539_p1 = scmp.lt.u32.totalorder %s2537_s27, %s2533_s26  ;;  %p2541_p2 = scmp.lt.u32.totalorder %s2533_s26, %s3228_s0 }
 0xe21   : > { %p2535_p4 = pnand %p2534_p7, %p3336_p8 }
 0xe22   : > { %p2540_p3 = por %p2539_p1, %p2538_p13 }
 0xe23   : > { %p2536_p12 = pneg %p2535_p4 }
 0xe24   : > { %p2542_p6 = por %p2541_p2, %p2540_p3 }
 0xe26   : > { %p2543_p10 = pnand %p2542_p6, %p2536_p12 }
 0xe28   : > { %2546 = shalt.err (!%p2543_p10)
}
 0xe29   : > { %s2637_s16 = smov 128   ;;  %s2638_s14 = smov 8  }
 0xe2a   : > { %2003 = dma.vmem_to_hbm [thread:$0]  (%p3336_p8), %s3230_s25, 256, %s3228_s0, %s1565_s1, %s2637_s16, %s2637_s16, %s2638_s14  }
 0xe2b PF: > { %s1593_s19 = sand.u32 1, %s2597_s21   ;;  %p3337_p11 = scmp.ne.s32.totalorder %s3315_s2, 0 }
 0xe2c   : > { %p3338_p0 = scmp.ge.s32.totalorder %s2609_s24, 2  ;;  %s1594_s26 = scalar_lea.sflag [#allocation4], %s1593_s19 }
 0xe2e   : > { %p2044_p5 = pnand %p3338_p0, %p3337_p11 }
 0xe30   : > { %2592 = dma.done.wait (!%p2044_p5), %s1594_s26, 256  }
 0xe31   : > { %2594 = vsyncadd (!%p2044_p5), %s1594_s26, 4294967040  ;;  %p31_p9 = scmp.ge.s32.totalorder %s2984_s13, 4   ;;  %s3339_s21 = smov %s2601_s22 }
 0xe32   : > { %s3340_s22 = smov %s2605_s23  ;;  %s3341_s23 = smov %s2996_s30 }
 0xe33   : > { %s3342_s24 = smov %s2984_s13  ;;  %33 = sbr.rel (!%p31_p9) target bundleno = 16 (0x10), region = 157 }
 0xe3a   :  { %1599 = vsyncpa [#allocation3], 1 }
 0xe3b   :  { %1601 = vsyncpa [#allocation3 + $0x1], 1 }
 0xe3c   :  { %1602 = vsyncpa [#allocation6], 1 }
 0xe3d   :  { %1603 = vsyncpa [#allocation9], 1 }
 0xe3e   :  { %1604 = vsyncpa [#allocation12], 1 }
 0xe3f   :  { %1605 = vsyncpa [#allocation15], 1 }
 0xe40   :  { %1606 = vsyncpa [#allocation18], 1 }
 0xe41   :  { %1607 = vsyncpa [#allocation21], 1 }
 0xe42   :  { %1608 = vsyncpa [#allocation4], 1 }
 0xe43   :  { %1610 = vsyncpa [#allocation4 + $0x1], 1 }

// kernel: decoder_forward.9
= control target key start
LH: loop header
LB: loop body
LE: loop exit
PB: predicated region body
PF: predicated region fallthrough
CT: control target
= control target key end

     0   :  { %s1977_s0 = inlined_call_operand.hbm [shape: f32[2,16,64], index: 0, kind: input, shape index: {}]   ;;  %s1978_s1 = inlined_call_operand.hbm [shape: f32[1,64], index: 1, kind: input, shape index: {}]   ;;  %s1979_s2 = inlined_call_operand.hbm [shape: f32[1,64], index: 2, kind: input, shape index: {}]   ;;  %s1980_s3 = inlined_call_operand.hbm [shape: bf16[64,128], index: 3, kind: input, shape index: {}]   ;;  %s1981_s4 = inlined_call_operand.hbm [shape: f32[1,128], index: 4, kind: input, shape index: {}]   ;;  %s1982_s5 = inlined_call_operand.hbm [shape: f32[1,128], index: 5, kind: input, shape index: {}]   ;;  %s1983_s6 = inlined_call_operand.hbm [shape: f32[1,128], index: 6, kind: input, shape index: {}]   ;;  %s1984_s7 = inlined_call_operand.hbm [shape: bf16[128,64], index: 7, kind: input, shape index: {}]   ;;  %s1985_s8 = inlined_call_operand.hbm [shape: f32[1,64], index: 8, kind: input, shape index: {}]   ;;  %s1986_s9 = inlined_call_operand.hbm [shape: f32[2,16,64], index: 9, kind: output, shape index: {}]  }
   0x1   :  { %1992 = sst [smem:[#allocation24_spill]] %s1978_s1 }
   0x2   :  { %14 = vsyncpa [#allocation3], 0 }
   0x3   :  { %16 = vsyncpa [#allocation3 + $0x1], 0 }
   0x4   :  { %17 = vsyncpa [#allocation6], 0 }
   0x5   :  { %18 = vsyncpa [#allocation9], 0 }
   0x6   :  { %19 = vsyncpa [#allocation12], 0 }
   0x7   :  { %20 = vsyncpa [#allocation15], 0 }
   0x8   :  { %21 = vsyncpa [#allocation4], 0 }
   0x9   :  { %23 = vsyncpa [#allocation4 + $0x1], 0  ;;  %s1569_s30 = smov 0   ;;  %s1571_s10 = smov 0  }
   0xa   :  { %s1573_s11 = smov 0   ;;  %s1575_s12 = smov 0  }
   0xb LB: > { %s1501_s13 = smov [#allocation5]   ;;  %s1590_s15 = sadd.s32 4294967295, %s1499_s12   ;;  %s1499_s12 = sphi %s1575_s12, %s2020_s12   ;;  %s1495_s11 = sphi %s1573_s11, %s2019_s11   ;;  %s1491_s10 = sphi %s1571_s10, %s2018_s10   ;;  %s1487_s30 = sphi %s1569_s30, %s2017_s30  }
   0xc   : > { %s267_s14 = sshll.u32 %s1501_s13, 4  ;;  %p912_p0 = scmp.ge.s32.totalorder %s1499_s12, 1  ;;  %s1595_s14 = int_to_ptr.vmem [resolvable:$true] %s267_s14 }
   0xd   : > { %p1989_p1 = scmp.eq.s32.totalorder %s1590_s15, 0  ;;  %p254_p2 = scmp.lt.s32.totalorder %s1499_s12, 3 }
   0xe   : > { %s1502_s17 = smov [#allocation8]   ;;  %s1503_s20 = smov [#allocation11]  }
   0xf   : > { %p1597_p3 = pnand %p912_p0, %p254_p2  ;;  %s288_s18 = sshll.u32 %s1502_s17, 4  ;;  %s1604_s18 = int_to_ptr.vmem [resolvable:$true] %s288_s18 }
  0x10   : > { %s313_s21 = sshll.u32 %s1503_s20, 4  ;;  %s1995_s1 = sld [smem:[#allocation24_spill]]  ;;  %s1612_s21 = int_to_ptr.vmem [resolvable:$true] %s313_s21 }
  0x11   : > { %s1993_s16 = scalar_select %p1597_p3, 1, 0 }
  0x12   : > { %p1044_p5 = pneg %p1597_p3 }
  0x14   : > { %p1608_p6 = pnand %p1044_p5, %p1989_p1 }
  0x16   : > { %s1163_s24 = scalar_lea.hbm %s1995_s1, 16  ;;  %p1622_p8 = pneg %p1608_p6 }
  0x17   : > { %p1164_p7 = scmp.ne.s32.totalorder %s1995_s1, %s1163_s24  ;;  %p1170_p11 = scmp.lt.u32.totalorder %s1163_s24, %s1995_s1 }
  0x19   : > { %p1166_p9 = pnand %p1622_p8, %p1164_p7 }
  0x1b   : > { %p1167_p10 = pneg %p1166_p9 }
  0x1d   : > { %p1172_p12 = pnand %p1170_p11, %p1167_p10 }
  0x1f   : > { %1175 = shalt.err (!%p1172_p12)
}
  0x20   : > { %s1176_s13 = scalar_lea.vmem %s1595_s14, 16  ;;  %s1183_s17 = scalar_lea.vmem %s1595_s14, 32 }
  0x21   : > { %p1177_p13 = scmp.ne.s32.totalorder %s1595_s14, %s1176_s13  ;;  %p1184_p5 = scmp.lt.s32.totalorder %s1595_s14, %s1595_s14 }
  0x22   : > { %p1185_p7 = scmp.lt.s32.totalorder %s1183_s17, %s1176_s13 }
  0x23   : > { %p1179_p0 = pnand %p1177_p13, %p1622_p8 }
  0x24   : > { %p1186_p9 = por %p1185_p7, %p1184_p5 }
  0x25   : > { %p1180_p2 = pneg %p1179_p0 }
  0x27   : > { %p1187_p4 = pnand %p1186_p9, %p1180_p2 }
  0x29   : > { %1190 = shalt.err (!%p1187_p4)
}
  0x2a   : > { %1047 = dma.hbm_to_vmem [thread:$0]  (!%p1608_p6), %s1995_s1, 16, %s1595_s14, [#allocation6]  }
  0x2b   : > { %s1191_s25 = scalar_lea.hbm %s1980_s3, 512 }
  0x2c   : > { %p1192_p10 = scmp.ne.s32.totalorder %s1980_s3, %s1191_s25  ;;  %p1198_p4 = scmp.lt.u32.totalorder %s1191_s25, %s1980_s3 }
  0x2e   : > { %p1194_p11 = pnand %p1192_p10, %p1622_p8 }
  0x30   : > { %p1195_p12 = pneg %p1194_p11 }
  0x32   : > { %p1200_p13 = pnand %p1198_p4, %p1195_p12 }
  0x34   : > { %1203 = shalt.err (!%p1200_p13)
}
  0x35   : > { %s1204_s14 = scalar_lea.vmem %s1604_s18, 512  ;;  %p1212_p7 = scmp.lt.s32.totalorder %s1604_s18, %s1604_s18 }
  0x36   : > { %p1205_p0 = scmp.ne.s32.totalorder %s1604_s18, %s1204_s14  ;;  %p1213_p9 = scmp.lt.s32.totalorder %s1204_s14, %s1204_s14 }
  0x38   : > { %p1207_p2 = pnand %p1205_p0, %p1622_p8  ;;  %p1214_p10 = por %p1213_p9, %p1212_p7 }
  0x3a   : > { %p1208_p5 = pneg %p1207_p2 }
  0x3c   : > { %p1215_p11 = pnand %p1214_p10, %p1208_p5 }
  0x3e   : > { %1218 = shalt.err (!%p1215_p11)
}
  0x3f   : > { %s1987_s17 = smov 64   ;;  %s1988_s20 = smov 4  }
  0x40   : > { %1053 = dma.hbm_to_vmem [thread:$0]  (!%p1608_p6), %s1980_s3, 512, %s1604_s18, [#allocation9], %s1987_s17, %s1987_s17, %s1988_s20  }
  0x41   : > { %s1219_s26 = scalar_lea.hbm %s1982_s5, 16 }
  0x42   : > { %p1220_p12 = scmp.ne.s32.totalorder %s1982_s5, %s1219_s26  ;;  %p1226_p0 = scmp.lt.u32.totalorder %s1219_s26, %s1982_s5 }
  0x44   : > { %p1222_p4 = pnand %p1220_p12, %p1622_p8 }
  0x46   : > { %p1223_p13 = pneg %p1222_p4 }
  0x48   : > { %p1228_p2 = pnand %p1226_p0, %p1223_p13 }
  0x4a   : > { %1231 = shalt.err (!%p1228_p2)
}
  0x4b   : > { %s1232_s18 = scalar_lea.vmem %s1612_s21, 16  ;;  %s1239_s22 = scalar_lea.vmem %s1612_s21, 32 }
  0x4c   : > { %p1233_p5 = scmp.ne.s32.totalorder %s1612_s21, %s1232_s18  ;;  %p1240_p10 = scmp.lt.s32.totalorder %s1612_s21, %s1612_s21 }
  0x4d   : > { %p1241_p11 = scmp.lt.s32.totalorder %s1239_s22, %s1232_s18 }
  0x4e   : > { %p1235_p7 = pnand %p1233_p5, %p1622_p8 }
  0x4f   : > { %p1242_p12 = por %p1241_p11, %p1240_p10 }
  0x50   : > { %p1236_p9 = pneg %p1235_p7 }
  0x52   : > { %p1243_p4 = pnand %p1242_p12, %p1236_p9 }
  0x54   : > { %1246 = shalt.err (!%p1243_p4)
}
  0x55   : > { %1059 = dma.hbm_to_vmem [thread:$0]  (!%p1608_p6), %s1982_s5, 16, %s1612_s21, [#allocation12]  }
  0x56   : > { %s1506_s25 = smov [#allocation14]   ;;  %s1507_s28 = smov [#allocation7]  }
  0x57   : > { %s334_s26 = sshll.u32 %s1506_s25, 4  ;;  %s278_s29 = sshll.u32 %s1507_s28, 4  ;;  %s335_s26 = int_to_ptr.vmem [resolvable:$true] %s334_s26  ;;  %s279_s29 = int_to_ptr.vmem [resolvable:$true] %s278_s29 }
  0x58   : > { %s1247_s18 = scalar_lea.hbm %s1984_s7, 1024 }
  0x59   : > { %p1248_p13 = scmp.ne.s32.totalorder %s1984_s7, %s1247_s18  ;;  %p1254_p5 = scmp.lt.u32.totalorder %s1247_s18, %s1984_s7 }
  0x5b   : > { %p1250_p0 = pnand %p1248_p13, %p1622_p8 }
  0x5d   : > { %p1251_p2 = pneg %p1250_p0 }
  0x5f   : > { %p1256_p7 = pnand %p1254_p5, %p1251_p2 }
  0x61   : > { %1259 = shalt.err (!%p1256_p7)
}
  0x62   : > { %s1260_s21 = scalar_lea.vmem %s335_s26, 1024  ;;  %p1268_p12 = scmp.lt.s32.totalorder %s335_s26, %s335_s26 }
  0x63   : > { %p1261_p9 = scmp.ne.s32.totalorder %s335_s26, %s1260_s21  ;;  %p1269_p4 = scmp.lt.s32.totalorder %s1260_s21, %s1260_s21 }
  0x65   : > { %p1263_p10 = pnand %p1261_p9, %p1622_p8  ;;  %p1270_p1 = por %p1269_p4, %p1268_p12 }
  0x67   : > { %p1264_p11 = pneg %p1263_p10 }
  0x69   : > { %p1271_p3 = pnand %p1270_p1, %p1264_p11 }
  0x6b   : > { %1274 = shalt.err (!%p1271_p3)
}
  0x6c   : > { %s1997_s17 = smov 4   ;;  %s1998_s24 = smov 64  }
  0x6d   : > { %1065 = dma.hbm_to_vmem [thread:$0]  (!%p1608_p6), %s1984_s7, 1024, %s335_s26, [#allocation15], %s1998_s24, %s1998_s24, %s1997_s17  }
  0x6e   : > { %s1275_s14 = scalar_lea.hbm %s1979_s2, 16 }
  0x6f   : > { %p1276_p1 = scmp.ne.s32.totalorder %s1979_s2, %s1275_s14  ;;  %p1282_p0 = scmp.lt.u32.totalorder %s1275_s14, %s1979_s2 }
  0x71   : > { %p1278_p3 = pnand %p1276_p1, %p1622_p8 }
  0x73   : > { %p1279_p13 = pneg %p1278_p3 }
  0x75   : > { %p1284_p2 = pnand %p1282_p0, %p1279_p13 }
  0x77   : > { %1287 = shalt.err (!%p1284_p2)
}
  0x78   : > { %s1288_s20 = scalar_lea.vmem %s279_s29, 16  ;;  %s1295_s26 = scalar_lea.vmem %s279_s29, 32 }
  0x79   : > { %p1289_p5 = scmp.ne.s32.totalorder %s279_s29, %s1288_s20  ;;  %p1296_p10 = scmp.lt.s32.totalorder %s279_s29, %s279_s29 }
  0x7a   : > { %p1297_p11 = scmp.lt.s32.totalorder %s1295_s26, %s1288_s20 }
  0x7b   : > { %p1291_p7 = pnand %p1289_p5, %p1622_p8 }
  0x7c   : > { %p1298_p12 = por %p1297_p11, %p1296_p10 }
  0x7d   : > { %p1292_p9 = pneg %p1291_p7 }
  0x7f   : > { %p1299_p4 = pnand %p1298_p12, %p1292_p9 }
  0x81   : > { %1302 = shalt.err (!%p1299_p4)
}
  0x82   : > { %1050 = dma.hbm_to_vmem [thread:$0]  (!%p1608_p6), %s1979_s2, 16, %s279_s29, [#allocation6]  }
  0x83   : > { %s1508_s25 = smov [#allocation10]   ;;  %s1509_s13 = smov [#allocation13]  }
  0x84   : > { %s302_s28 = sshll.u32 %s1508_s25, 4  ;;  %s324_s14 = sshll.u32 %s1509_s13, 4  ;;  %s303_s28 = int_to_ptr.vmem [resolvable:$true] %s302_s28  ;;  %s325_s14 = int_to_ptr.vmem [resolvable:$true] %s324_s14 }
  0x85   : > { %s1303_s23 = scalar_lea.hbm %s1981_s4, 16 }
  0x86   : > { %p1304_p1 = scmp.ne.s32.totalorder %s1981_s4, %s1303_s23  ;;  %p1310_p0 = scmp.lt.u32.totalorder %s1303_s23, %s1981_s4 }
  0x88   : > { %p1306_p3 = pnand %p1304_p1, %p1622_p8 }
  0x8a   : > { %p1307_p13 = pneg %p1306_p3 }
  0x8c   : > { %p1312_p2 = pnand %p1310_p0, %p1307_p13 }
  0x8e   : > { %1315 = shalt.err (!%p1312_p2)
}
  0x8f   : > { %s1316_s29 = scalar_lea.vmem %s303_s28, 16  ;;  %s1323_s24 = scalar_lea.vmem %s303_s28, 32 }
  0x90   : > { %p1317_p5 = scmp.ne.s32.totalorder %s303_s28, %s1316_s29  ;;  %p1324_p10 = scmp.lt.s32.totalorder %s303_s28, %s303_s28 }
  0x91   : > { %p1325_p11 = scmp.lt.s32.totalorder %s1323_s24, %s1316_s29 }
  0x92   : > { %p1319_p7 = pnand %p1317_p5, %p1622_p8 }
  0x93   : > { %p1326_p12 = por %p1325_p11, %p1324_p10 }
  0x94   : > { %p1320_p9 = pneg %p1319_p7 }
  0x96   : > { %p1327_p4 = pnand %p1326_p12, %p1320_p9 }
  0x98   : > { %1330 = shalt.err (!%p1327_p4)
}
  0x99   : > { %1056 = dma.hbm_to_vmem [thread:$0]  (!%p1608_p6), %s1981_s4, 16, %s303_s28, [#allocation9]  }
  0x9a   : > { %s1331_s23 = scalar_lea.hbm %s1983_s6, 16 }
  0x9b   : > { %p1332_p1 = scmp.ne.s32.totalorder %s1983_s6, %s1331_s23  ;;  %p1338_p0 = scmp.lt.u32.totalorder %s1331_s23, %s1983_s6 }
  0x9d   : > { %p1334_p3 = pnand %p1332_p1, %p1622_p8 }
  0x9f   : > { %p1335_p13 = pneg %p1334_p3 }
  0xa1   : > { %p1340_p2 = pnand %p1338_p0, %p1335_p13 }
  0xa3   : > { %1343 = shalt.err (!%p1340_p2)
}
  0xa4   : > { %s1344_s29 = scalar_lea.vmem %s325_s14, 16  ;;  %s1351_s28 = scalar_lea.vmem %s325_s14, 32 }
  0xa5   : > { %p1345_p5 = scmp.ne.s32.totalorder %s325_s14, %s1344_s29  ;;  %p1352_p10 = scmp.lt.s32.totalorder %s325_s14, %s325_s14 }
  0xa6   : > { %p1353_p11 = scmp.lt.s32.totalorder %s1351_s28, %s1344_s29 }
  0xa7   : > { %p1347_p7 = pnand %p1345_p5, %p1622_p8 }
  0xa8   : > { %p1354_p12 = por %p1353_p11, %p1352_p10 }
  0xa9   : > { %p1348_p9 = pneg %p1347_p7 }
  0xab   : > { %p1355_p4 = pnand %p1354_p12, %p1348_p9 }
  0xad   : > { %1358 = shalt.err (!%p1355_p4)
}
  0xae   : > { %1062 = dma.hbm_to_vmem [thread:$0]  (!%p1608_p6), %s1983_s6, 16, %s325_s14, [#allocation12]  }
  0xaf   : > { %s1510_s13 = smov [#allocation16]   ;;  %s1359_s21 = scalar_lea.hbm %s1985_s8, 16 }
  0xb0   : > { %s348_s18 = sshll.u32 %s1510_s13, 4  ;;  %p1360_p1 = scmp.ne.s32.totalorder %s1985_s8, %s1359_s21  ;;  %s349_s18 = int_to_ptr.vmem [resolvable:$true] %s348_s18 }
  0xb1   : > { %p1366_p0 = scmp.lt.u32.totalorder %s1359_s21, %s1985_s8 }
  0xb2   : > { %p1362_p3 = pnand %p1360_p1, %p1622_p8 }
  0xb4   : > { %p1363_p13 = pneg %p1362_p3 }
  0xb6   : > { %p1368_p2 = pnand %p1366_p0, %p1363_p13 }
  0xb8   : > { %1371 = shalt.err (!%p1368_p2)
}
  0xb9   : > { %s1372_s14 = scalar_lea.vmem %s349_s18, 16  ;;  %s1379_s28 = scalar_lea.vmem %s349_s18, 32 }
  0xba   : > { %p1373_p5 = scmp.ne.s32.totalorder %s349_s18, %s1372_s14  ;;  %p1380_p10 = scmp.lt.s32.totalorder %s349_s18, %s349_s18 }
  0xbb   : > { %p1381_p11 = scmp.lt.s32.totalorder %s1379_s28, %s1372_s14 }
  0xbc   : > { %p1375_p7 = pnand %p1373_p5, %p1622_p8 }
  0xbd   : > { %p1382_p12 = por %p1381_p11, %p1380_p10 }
  0xbe   : > { %p1376_p9 = pneg %p1375_p7 }
  0xc0   : > { %p1383_p4 = pnand %p1382_p12, %p1376_p9 }
  0xc2   : > { %1386 = shalt.err (!%p1383_p4)
}
  0xc3   : > { %1068 = dma.hbm_to_vmem [thread:$0]  (!%p1608_p6), %s1985_s8, 16, %s349_s18, [#allocation15]  }
  0xc4   : > { %s911_s27 = sadd.s32 4294967294, %s1499_s12   ;;  %s1789_s19 = sadd.s32 1, %s1499_s12  }
  0xc5   : > { %s33_s13 = ssub.s32 %s1499_s12, %s1789_s19  ;;  %s36_s22 = sadd.s32 1, %s1495_s11 }
  0xc6   : > { %p34_p8 = scmp.eq.s32.totalorder %s33_s13, 0  ;;  %p43_p1 = scmp.ne.s32.totalorder %s1495_s11, %s1491_s10 }
  0xc7   : > { %p44_p3 = scmp.eq.s32.totalorder %s1499_s12, 0  ;;  %p49_p13 = scmp.ne.s32.totalorder %s1491_s10, %s1487_s30 }
  0xc8   : > { %s1800_s23 = scalar_select %p34_p8, %s1495_s11, %s36_s22  }
  0xc9   : > { %p1802_p0 = por %p44_p3, %p43_p1  ;;  %p2000_p2 = scmp.eq.s32.totalorder %s1590_s15, 0 }
  0xca   : > { %p241_p5 = scmp.eq.s32.totalorder %s1590_s15, 1  ;;  %p247_p7 = scmp.eq.s32.totalorder %s911_s27, 1 }
  0xcb   : > { %p1808_p6 = por %p2000_p2, %p49_p13  ;;  %p1085_p9 = scmp.lt.s32.totalorder %s1499_s12, 2 }
  0xcc   : > { %s359_s20 = sand.u32 1, %s1495_s11   ;;  %p1815_p10 = por %p241_p5, %p43_p1 }
  0xcd   : > { %p1819_p11 = por %p247_p7, %p49_p13  ;;  %s922_s29 = sshll.u32 %s359_s20, 4 }
  0xce   : > { %s2002_s26 = scalar_select %p1815_p10, 1, 0 }
  0xcf   : > { %s2003_s17 = scalar_select %p1819_p11, 1, 0 }
  0xd0   : > { %s960_s14 = sshll.u32 %s1499_s12, 8  ;;  %s363_s27 = scalar_lea.vmem [#allocation2], %s922_s29 }
  0xd1   : > { %s1827_s25 = scalar_lea.hbm %s1977_s0, %s960_s14  ;;  %s370_s13 = sshll.u32 %s363_s27, 4  ;;  %s1829_s13 = int_to_ptr.vmem [resolvable:$true] %s370_s13 }
  0xd2   : > { %p1833_p12 = pnand %p1085_p9, %p1802_p0  ;;  %s1837_s1 = scalar_lea.sflag [#allocation3], %s359_s20 }
  0xd3   : > { %s1387_s28 = scalar_lea.hbm %s1827_s25, 256  ;;  %s1392_s21 = scalar_lea.hbm %s1977_s0, 512 }
  0xd4   : > { %p1388_p4 = scmp.ne.s32.totalorder %s1827_s25, %s1387_s28  ;;  %p1389_p8 = pneg %p1833_p12 }
  0xd5   : > { %p1393_p13 = scmp.lt.u32.totalorder %s1827_s25, %s1977_s0  ;;  %p1394_p0 = scmp.lt.u32.totalorder %s1392_s21, %s1387_s28 }
  0xd6   : > { %p1390_p1 = pnand %p1389_p8, %p1388_p4  ;;  %p1396_p5 = scmp.lt.u32.totalorder %s1387_s28, %s1827_s25 }
  0xd7   : > { %p1395_p2 = por %p1394_p0, %p1393_p13 }
  0xd8   : > { %p1391_p3 = pneg %p1390_p1 }
  0xd9   : > { %p1397_p7 = por %p1396_p5, %p1395_p2 }
  0xdb   : > { %p1398_p9 = pnand %p1397_p7, %p1391_p3 }
  0xdd   : > { %1401 = shalt.err (!%p1398_p9)
}
  0xde   : > { %s1402_s20 = scalar_lea.vmem %s1829_s13, 256  ;;  %s1511_s29 = smov [#allocation2]  }
  0xdf   : > { %p1403_p4 = scmp.ne.s32.totalorder %s1829_s13, %s1402_s20  ;;  %s1407_s14 = sshll.u32 %s1511_s29, 4  ;;  %s1408_s14 = int_to_ptr.vmem [resolvable:$false] %s1407_s14 }
  0xe0   : > { %s1409_s24 = scalar_lea.vmem %s1408_s14, 512  ;;  %p1410_p10 = scmp.lt.s32.totalorder %s1829_s13, %s1408_s14 }
  0xe1   : > { %p1405_p1 = pnand %p1403_p4, %p1389_p8  ;;  %p1411_p13 = scmp.lt.s32.totalorder %s1409_s24, %s1402_s20 }
  0xe3   : > { %p1406_p11 = pneg %p1405_p1  ;;  %p1412_p0 = por %p1411_p13, %p1410_p10 }
  0xe5   : > { %p1413_p2 = pnand %p1412_p0, %p1406_p11 }
  0xe7   : > { %1416 = shalt.err (!%p1413_p2)
}
  0xe8   : > { %s1512_s28 = smov 128   ;;  %s1513_s21 = smov 8  }
  0xe9   : > { %1072 = dma.hbm_to_vmem [thread:$0]  (!%p1833_p12), %s1827_s25, 256, %s1829_s13, %s1837_s1, %s1512_s28, %s1512_s28, %s1513_s21  }
  0xea   : > { %p2005_p8 = scmp.ne.s32.totalorder %s1993_s16, 0 }
  0xeb   : > { %s1868_s27 = sand.u32 (!%p2005_p8), 1, %s1491_s10  }
  0xec   : > { %382 = sbr.rel (%p2005_p8) target bundleno = 1341 (0x53d), region = 56  ;;  %s926_s20 = sshll.u32 (!%p2005_p8), %s1868_s27, 4 }
  0xed   : > { %s385_s29 = scalar_lea.sflag (!%p2005_p8), [#allocation3], %s1868_s27  ;;  %s388_s14 = scalar_lea.vmem (!%p2005_p8), [#allocation2], %s926_s20 }
  0xf3   : > { %1462 = dma.done.wait (%p1808_p6), %s385_s29, 256  }
  0xf4   : > { %1464 = vsyncadd (%p1808_p6), %s385_s29, 4294967040  ;;  %p2006_p10 = scmp.eq.s32.totalorder %s1590_s15, 0 }
  0xf6   : > { %1466 = dma.done.wait (%p2006_p10), [#allocation6], 32   ;;  %p2007_p11 = pmov %p2006_p10 }
  0xf7   : > { %p2008_p12 = pmov %p2006_p10 }
  0xf8   : > { %1468 = vsyncadd (%p2007_p11), [#allocation6], 4294967264 }
  0xf9   : > { %1470 = dma.done.wait (%p2008_p12), [#allocation9], 528   ;;  %p2009_p3 = pmov %p2006_p10 }
  0xfb   : > { %1472 = vsyncadd (%p2009_p3), [#allocation9], 4294966768  ;;  %p2010_p5 = pmov %p2009_p3 }
  0xfc   : > { %p2011_p7 = pmov %p2009_p3 }
  0xfd   : > { %1474 = dma.done.wait (%p2010_p5), [#allocation12], 32  }
  0xfe   : > { %1476 = vsyncadd (%p2011_p7), [#allocation12], 4294967264  ;;  %p2012_p6 = pmov %p2009_p3 }
  0xff   : > { %p2013_p9 = pmov %p2009_p3 }
 0x100   : > { %1478 = dma.done.wait (%p2012_p6), [#allocation15], 1040  }
 0x101   : > { %1480 = vsyncadd (%p2013_p9), [#allocation15], 4294966256  ;;  %vm460_vm0 = vcmask 523264   ;;  %v1894_v0 = vld [vmem:[%s388_s14] sm:$0xff]  ;;  %v1896_v1 = vld [vmem:[%s388_s14 + $0x8] sm:$0xff]  ;;  %v1514_v15 = vmov 0.0  }
 0x102   : > { %v461_v2 = vsel %vm460_vm0, %v1894_v0, 0.0  ;;  %v464_v3 = vsel %vm460_vm0, %v1896_v1, 0.0  ;;  %v1143_v14 = vld [vmem:[#allocation8] sm:$0xff]   ;;  %976 = vmatprep.subr.bf16.mxu0 %v1514_v15  ;;  %988 = vmatprep.subr.bf16.mxu1 %v1514_v15  ;;  %v1144_v16 = vld [vmem:[#allocation8 + $0x8] sm:$0xff]   ;;  %v1145_v17 = vld [vmem:[#allocation8 + $0x10] sm:$0xff]   ;;  %vm1515_vm1 = vmmov 0  }
 0x103   : > { %462 = vadd.xlane.f32.xlu0 %v461_v2  ;;  %977 = vmatpush3.bf16.msra.mxu0 %v1143_v14  ;;  %v1146_v18 = vld [vmem:[#allocation8 + $0x18] sm:$0xff]   ;;  %v938_v36 = vld [vmem:[#allocation10] ss:$0 sm:$0xff]  ;;  %v1147_v45 = vld [vmem:[#allocation14] sm:$0xff]   ;;  %s961_s1 = sshll.u32 %s1590_s15, 8  ;;  %s454_s16 = scalar_lea.vmem [#allocation17], %s926_s20 }
 0x104   : > { %978 = vmatprep.subr.bf16.mxu0 %v1514_v15  ;;  %984 = vmatprep.mubr.msk.bf16.mxu0 %vm1515_vm1, %v1514_v15  ;;  %v936_v27 = vld [vmem:[#allocation5] ss:$0 sm:$0xff]  ;;  %v937_v31 = vld [vmem:[#allocation7] ss:$0 sm:$0xff]  ;;  %v1148_v46 = vld [vmem:[#allocation14 + $0x8] sm:$0xff]   ;;  %s762_s18 = sshll.u32 %s454_s16, 4  ;;  %s1928_s22 = scalar_lea.hbm %s1986_s9, %s961_s1  ;;  %s1930_s18 = int_to_ptr.vmem [resolvable:$true] %s762_s18 }
 0x105   : > { %1004 = vmatprep.mubr.msk.bf16.mxu1 %vm1515_vm1, %v1514_v15  ;;  %989 = vmatpush3.bf16.msra.mxu1 %v1147_v45  ;;  %v1149_v55 = vld [vmem:[#allocation14 + $0x10] sm:$0xff]   ;;  %v1150_v56 = vld [vmem:[#allocation14 + $0x18] sm:$0xff]   ;;  %v1151_v57 = vld [vmem:[#allocation14 + $0x20] sm:$0xff]   ;;  %s749_s15 = scalar_lea.sflag [#allocation4], %s1868_s27  ;;  %s1417_s24 = scalar_lea.vmem %s1930_s18, 256 }
 0x106   : > { %990 = vmatprep.subr.bf16.mxu1 %v1514_v15  ;;  %v1152_v58 = vld [vmem:[#allocation14 + $0x28] sm:$0xff]   ;;  %v1153_v59 = vld [vmem:[#allocation14 + $0x30] sm:$0xff]   ;;  %v1154_v60 = vld [vmem:[#allocation14 + $0x38] sm:$0xff]   ;;  %p1418_p4 = scmp.ne.s32.totalorder %s1930_s18, %s1417_s24  ;;  %p2014_p1 = scmp.ne.s32.totalorder %s2002_s26, 0 }
 0x107   : > { %465 = vadd.xlane.f32.xlu0 %v464_v3  ;;  %979 = vmatpush3.bf16.msra.mxu0 %v1144_v16  ;;  %v946_v16 = vld [vmem:[#allocation16] ss:$0 sm:$0xff]  ;;  %s1516_s28 = smov [#allocation17]  }
 0x108   : > { %980 = vmatprep.subr.bf16.mxu0 %v1514_v15  ;;  %p1419_p13 = pnand %p1418_p4, %p2014_p1  ;;  %s1421_s21 = sshll.u32 %s1516_s28, 4  ;;  %s1422_s21 = int_to_ptr.vmem [resolvable:$false] %s1421_s21 }
 0x109   : > { %991 = vmatpush3.bf16.msra.mxu1 %v1148_v46  ;;  %s1423_s20 = scalar_lea.vmem %s1422_s21, 512  ;;  %p1424_p2 = scmp.lt.s32.totalorder %s1930_s18, %s1422_s21 }
 0x10a   : > { %992 = vmatprep.subr.bf16.mxu1 %v1514_v15  ;;  %p1420_p0 = pneg %p1419_p13  ;;  %p1425_p8 = scmp.lt.s32.totalorder %s1423_s20, %s1417_s24 }
 0x10b   : > { %981 = vmatpush3.bf16.msra.mxu0 %v1145_v17 }
 0x10c   : > { %982 = vmatprep.subr.bf16.mxu0 %v1514_v15  ;;  %p1426_p10 = por %p1425_p8, %p1424_p2 }
 0x10d   : > { %993 = vmatpush3.bf16.msra.mxu1 %v1149_v55 }
 0x10e   : > { %994 = vmatprep.subr.bf16.mxu1 %v1514_v15  ;;  %p1427_p11 = pnand %p1426_p10, %p1420_p0 }
 0x10f   : > { %983 = vmatpush3.bf16.msra.mxu0 %v1146_v18 }
 0x111   : > { %995 = vmatpush3.bf16.msra.mxu1 %v1150_v56 }
 0x112   : > { %996 = vmatprep.subr.bf16.mxu1 %v1514_v15 }
 0x115   : > { %997 = vmatpush3.bf16.msra.mxu1 %v1151_v57 }
 0x116   : > { %998 = vmatprep.subr.bf16.mxu1 %v1514_v15 }
 0x119   : > { %999 = vmatpush3.bf16.msra.mxu1 %v1152_v58 }
 0x11a   : > { %1000 = vmatprep.subr.bf16.mxu1 %v1514_v15 }
 0x11d   : > { %1001 = vmatpush3.bf16.msra.mxu1 %v1153_v59 }
 0x11e   : > { %1002 = vmatprep.subr.bf16.mxu1 %v1514_v15 }
 0x121   : > { %1003 = vmatpush3.bf16.msra.mxu1 %v1154_v60 }
 0x190   : > { %v463_v4 = vpop.xlane.xlu0 %462 }
 0x191   : > { %v468_v5 = vmul.f32 0.015625, %v463_v4 }
 0x193   : > { %v470_v6 = vsub.f32 %v1894_v0, %v468_v5 }
 0x194   : > { %v466_v7 = vpop.xlane.xlu0 %465 }
 0x195   : > { %v469_v8 = vmul.f32 0.015625, %v466_v7  ;;  %v472_v9 = vmul.f32 %v470_v6, %v470_v6 }
 0x197   : > { %v471_v10 = vsub.f32 %v1896_v1, %v469_v8  ;;  %v474_v11 = vsel %vm460_vm0, %v472_v9, 0.0 }
 0x198   : > { %475 = vadd.xlane.f32.xlu1 %v474_v11  ;;  %v945_v11 = vld [vmem:[#allocation13] ss:$0 sm:$0xff] }
 0x199   : > { %v473_v12 = vmul.f32 %v471_v10, %v471_v10 }
 0x19b   : > { %v477_v13 = vsel %vm460_vm0, %v473_v12, 0.0 }
 0x19c   : > { %478 = vadd.xlane.f32.xlu1 %v477_v13 }
 0x225   : > { %v476_v19 = vpop.xlane.xlu1 %475 }
 0x226   : > { %v480_v20 = vmul.f32 0.015625, %v476_v19 }
 0x228   : > { %v482_v21 = vadd.f32 1e-05, %v480_v20 }
 0x229   : > { %v479_v22 = vpop.xlane.xlu1 %478 }
 0x22a   : > { %1155 = vrsqrt.f32 %v482_v21  ;;  %v481_v23 = vmul.f32 0.015625, %v479_v22 }
 0x22c   : > { %v483_v24 = vadd.f32 1e-05, %v481_v23 }
 0x22e   : > { %1157 = vrsqrt.f32 %v483_v24 }
 0x234   : > { %v1156_v25 = vpop.eup %1155 }
 0x235   : > { %v486_v26 = vmul.f32 %v1156_v25, %v470_v6  ;;  %v944_v6 = vld [vmem:[#allocation11] ss:$0 sm:$0xff] }
 0x237   : > { %v494_v30 = vmul.f32 %v936_v27, %v486_v26 }
 0x238   : > { %v1158_v28 = vpop.eup %1157 }
 0x239   : > { %v487_v29 = vmul.f32 %v1158_v28, %v471_v10  ;;  %v502_v33 = vadd.f32 %v937_v31, %v494_v30 }
 0x23b   : > { %v495_v32 = vmul.f32 %v936_v27, %v487_v29 }
 0x23d   : > { %v503_v34 = vadd.f32 %v937_v31, %v495_v32 }
 0x23f   : > { %v504_v35 = vpack.c.bf16 %v503_v34, %v502_v33 }
 0x241   : > { %985 = vmatmul.mubr.msk.bf16.vlgmr.msra.gmra.mrb[0].mxu0 %vm460_vm0, %v504_v35 }
 0x314   : > { %v581_v37 = vpop.f32.mrb[0].mxu0 }
 0x315   : > { %v582_v38 = vadd.f32 %v938_v36, %v581_v37  ;;  %v986_v39 = vpop.f32.mrb[1].mxu0 }
 0x316   : > { %v584_v40 = vpop.f32.mrb[2].mxu0 }
 0x317   : > { %v588_v41 = vmax.f32 %v582_v38, 0.0  ;;  %v585_v42 = vadd.f32 %v938_v36, %v584_v40  ;;  %v987_v43 = vpop.f32.mrb[3].mxu0 }
 0x319   : > { %v589_v44 = vmax.f32 %v585_v42, 0.0  ;;  %592 = vadd.xlane.f32.xlu0 %v588_v41 }
 0x31b   : > { %594 = vadd.xlane.f32.xlu1 %v589_v44 }
 0x3a6   : > { %v593_v47 = vpop.xlane.xlu0 %592 }
 0x3a7   : > { %v597_v48 = vmul.f32 0.0078125, %v593_v47 }
 0x3a8   : > { %v595_v49 = vpop.xlane.xlu1 %594 }
 0x3a9   : > { %v599_v50 = vsub.f32 %v588_v41, %v597_v48  ;;  %v598_v51 = vmul.f32 0.0078125, %v595_v49 }
 0x3ab   : > { %v600_v52 = vsub.f32 %v589_v44, %v598_v51  ;;  %v601_v53 = vmul.f32 %v599_v50, %v599_v50 }
 0x3ad   : > { %603 = vadd.xlane.f32.xlu0 %v601_v53  ;;  %v602_v54 = vmul.f32 %v600_v52, %v600_v52 }
 0x3af   : > { %605 = vadd.xlane.f32.xlu1 %v602_v54 }
 0x43a   : > { %v604_v61 = vpop.xlane.xlu0 %603 }
 0x43b   : > { %v607_v62 = vmul.f32 0.0078125, %v604_v61 }
 0x43c   : > { %v606_v63 = vpop.xlane.xlu1 %605 }
 0x43d   : > { %v609_v2 = vadd.f32 1e-05, %v607_v62  ;;  %v608_v3 = vmul.f32 0.0078125, %v606_v63 }
 0x43f   : > { %1159 = vrsqrt.f32 %v609_v2  ;;  %v610_v4 = vadd.f32 1e-05, %v608_v3 }
 0x441   : > { %1161 = vrsqrt.f32 %v610_v4 }
 0x449   : > { %v1160_v5 = vpop.eup %1159 }
 0x44a   : > { %v613_v7 = vmul.f32 %v1160_v5, %v599_v50 }
 0x44b   : > { %v1162_v8 = vpop.eup %1161 }
 0x44c   : > { %v614_v9 = vmul.f32 %v1162_v8, %v600_v52  ;;  %v621_v10 = vmul.f32 %v944_v6, %v613_v7 }
 0x44e   : > { %v622_v12 = vmul.f32 %v944_v6, %v614_v9  ;;  %v629_v13 = vadd.f32 %v945_v11, %v621_v10 }
 0x450   : > { %v630_v14 = vadd.f32 %v945_v11, %v622_v12 }
 0x452   : > { %v631_v15 = vpack.c.bf16 %v630_v14, %v629_v13 }
 0x454   : > { %1005 = vmatmul.mubr.bf16.vlgmr.msra.gmra.mrb[0].mxu1 %v631_v15 }
 0x527   : > { %v737_v17 = vpop.f32.mrb[0].mxu1 }
 0x528   : > { %v738_v18 = vadd.f32 %v946_v16, %v737_v17  ;;  %v1006_v19 = vpop.f32.mrb[1].mxu1 }
 0x529   : > { %v740_v20 = vpop.f32.mrb[2].mxu1 }
 0x52a   : > { %v744_v21 = vadd.f32 %v738_v18, %v1894_v0  ;;  %v741_v22 = vadd.f32 %v946_v16, %v740_v20  ;;  %v1007_v23 = vpop.f32.mrb[3].mxu1 }
 0x52c   : > { %746 = vst.msk [vmem:[%s454_s16] sm:$0xff] %vm460_vm0, %v744_v21  ;;  %v745_v24 = vadd.f32 %v741_v22, %v1896_v1 }
 0x52e   : > { %747 = vst.msk [vmem:[%s454_s16 + $0x8] sm:$0xff] %vm460_vm0, %v745_v24 }
 0x52f   : > { %1430 = shalt.err (!%p1427_p11)
}
 0x530   : > { %s1431_s29 = scalar_lea.hbm %s1928_s22, 256  ;;  %s1435_s16 = scalar_lea.hbm %s1986_s9, 512 }
 0x531   : > { %p1432_p12 = scmp.ne.s32.totalorder %s1928_s22, %s1431_s29  ;;  %p1436_p7 = scmp.lt.u32.totalorder %s1928_s22, %s1986_s9 }
 0x532   : > { %p1437_p6 = scmp.lt.u32.totalorder %s1435_s16, %s1431_s29  ;;  %p1439_p4 = scmp.lt.u32.totalorder %s1431_s29, %s1928_s22 }
 0x533   : > { %p1433_p3 = pnand %p1432_p12, %p2014_p1 }
 0x534   : > { %p1438_p9 = por %p1437_p6, %p1436_p7 }
 0x535   : > { %p1434_p5 = pneg %p1433_p3 }
 0x536   : > { %p1440_p13 = por %p1439_p4, %p1438_p9 }
 0x538   : > { %p1441_p0 = pnand %p1440_p13, %p1434_p5 }
 0x53a   : > { %1444 = shalt.err (!%p1441_p0)
}
 0x53b   : > { %s1517_s24 = smov 128   ;;  %s1518_s28 = smov 8  }
 0x53c   : > { %1042 = dma.vmem_to_hbm [thread:$0]  (%p2014_p1), %s1930_s18, 256, %s1928_s22, %s749_s15, %s1517_s24, %s1517_s24, %s1518_s28  }
 0x53d PF: > { %s777_s21 = sand.u32 1, %s1487_s30   ;;  %p2015_p2 = scmp.ne.s32.totalorder %s2003_s17, 0 }
 0x53e   : > { %p2016_p8 = scmp.ge.s32.totalorder %s1499_s12, 2  ;;  %s778_s20 = scalar_lea.sflag [#allocation4], %s777_s21 }
 0x540   : > { %p1074_p10 = pnand %p2016_p8, %p2015_p2 }
 0x542   : > { %1482 = dma.done.wait (!%p1074_p10), %s778_s20, 256  }
 0x543   : > { %1484 = vsyncadd (!%p1074_p10), %s778_s20, 4294967040  ;;  %p26_p11 = scmp.ge.s32.totalorder %s1789_s19, 4   ;;  %s2017_s30 = smov %s1491_s10 }
 0x544   : > { %s2018_s10 = smov %s1495_s11  ;;  %s2019_s11 = smov %s1800_s23 }
 0x545   : > { %s2020_s12 = smov %s1789_s19  ;;  %28 = sbr.rel (!%p26_p11) target bundleno = 11 (0xb), region = 133 }
 0x54c   :  { %783 = vsyncpa [#allocation3], 1 }
 0x54d   :  { %785 = vsyncpa [#allocation3 + $0x1], 1 }
 0x54e   :  { %786 = vsyncpa [#allocation6], 1 }
 0x54f   :  { %787 = vsyncpa [#allocation9], 1 }
 0x550   :  { %788 = vsyncpa [#allocation12], 1 }
 0x551   :  { %789 = vsyncpa [#allocation15], 1 }
 0x552   :  { %790 = vsyncpa [#allocation4], 1 }
 0x553   :  { %792 = vsyncpa [#allocation4 + $0x1], 1 }

</bundles_post_ra>
